<compile_context>
chip_gen: v7x
topology: tpu7x:2x2x1
jax: 0.10.0
libtpu: 0.0.40
codegen_flags: <defaults>
</compile_context>

<pallas_src>
import functools

import numpy as np

import jax
import jax.numpy as jnp
from jax.experimental import pallas as pl
from jax.experimental.pallas import tpu as pltpu

_NEG_SLOPE = 0.2          # leakyrelu-0.2
_BN_EPS = 1e-5            # PyTorch BatchNorm2d default
_VMEM_LIMIT = 32 * 1024 * 1024


def _round_up(x, m):
    return (x + m - 1) // m * m


# ------------------------- constant im2col gather ---------------------------- #

def _gather_matrix(N, H, W, K, stride, pad):
    """Constant 0/1 tap-gather matrices: G[t] @ x_flat == tap-t shifted window.

    x_flat is the [N*H*W, C] row-major (n, h, w) flattening of an NHWC tensor.
    Row m = (n*Ho+oh)*Wo+ow of G[t] (t = ki*K+kj) selects input row
    (n, stride*oh + ki - pad, stride*ow + kj - pad); out-of-bounds ('same'
    zero padding) rows are all-zero. Built once in NumPy (pure constants).
    """
    Ho = (H + 2 * pad - K) // stride + 1
    Wo = (W + 2 * pad - K) // stride + 1
    M = N * Ho * Wo
    G = np.zeros((K * K, M, N * H * W), dtype=np.float32)
    for ki in range(K):
        for kj in range(K):
            t = ki * K + kj
            for n in range(N):
                for oh in range(Ho):
                    h = stride * oh + ki - pad
                    if h < 0 or h >= H:
                        continue
                    for ow in range(Wo):
                        w = stride * ow + kj - pad
                        if w < 0 or w >= W:
                            continue
                        G[t, (n * Ho + oh) * Wo + ow, (n * H + h) * W + w] = 1.0
    return G, Ho, Wo


# ------------------------------ fused kernel --------------------------------- #

def _fused_forward_kernel(x_ref, g1_ref, w1_ref, b1_ref, gamma_ref, beta_ref,
                          g2_ref, w2_ref, b2_ref, wc_ref, bc_ref, out_ref,
                          *, taps1, taps2, m1, m2, c1, c2):
    # ---- Conv1 (3x3 s2 'same'): 9 shifted tap matmuls on the MXU, f32 acc ----
    x = x_ref[...]                                         # [N*H*W, Cin_pad] bf16
    acc1 = jnp.zeros((m1, c1), jnp.float32)
    for t in range(taps1):                                 # static, unrolled
        tap = jnp.dot(g1_ref[t], x,
                      preferred_element_type=jnp.float32)  # exact gather [m1,Cin_pad]
        acc1 = acc1 + jnp.dot(tap.astype(jnp.bfloat16), w1_ref[t],
                              preferred_element_type=jnp.float32)   # [m1, c1]
    acc1 = acc1 + b1_ref[...]                              # bias broadcast [1,c1]

    # ---- BatchNorm (training batch stats) + LeakyReLU, fully fused ----------
    inv_m = 1.0 / float(m1)
    mean = jnp.sum(acc1, axis=0, keepdims=True) * inv_m    # [1,c1]
    xc = acc1 - mean
    var = jnp.sum(xc * xc, axis=0, keepdims=True) * inv_m  # biased batch var
    inv = jax.lax.rsqrt(var + _BN_EPS)
    y = xc * (gamma_ref[...] * inv) + beta_ref[...]
    y = jnp.where(y >= 0, y, _NEG_SLOPE * y)
    h1 = y.astype(jnp.bfloat16)                            # [m1, c1] stays in VMEM

    # ---- Conv2 (3x3 s2 'same'): same shifted-tap structure ------------------
    acc2 = jnp.zeros((m2, c2), jnp.float32)
    for t in range(taps2):
        tap = jnp.dot(g2_ref[t], h1,
                      preferred_element_type=jnp.float32)  # [m2, c1]
        acc2 = acc2 + jnp.dot(tap.astype(jnp.bfloat16), w2_ref[t],
                              preferred_element_type=jnp.float32)   # [m2, c2]
    acc2 = acc2 + b2_ref[...]

    # ---- 1x1 classifier (Cout=1): VPU mul + lane reduce (no N=1 MXU matmul) --
    scores = jnp.sum(acc2 * wc_ref[...], axis=1, keepdims=True) + bc_ref[...]
    out_ref[...] = scores.astype(out_ref.dtype)            # [m2, 1] f32


# ------------------------------ model builder -------------------------------- #

_ARCH = [(3, 64, 2), (3, 128, 2)]  # (kernel, out_channels, stride); 'same' pad


def init_params(key, cin):
    """Deterministic parameter init (PyTorch-style uniform fan-in bounds)."""
    layers = []
    c = cin
    keys = jax.random.split(key, len(_ARCH) + 1)
    for k, (K, Cout, S) in zip(keys[:-1], _ARCH):
        kw, kb = jax.random.split(k)
        bound = 1.0 / float(np.sqrt(c * K * K))
        w = jax.random.uniform(kw, (Cout, c, K, K), jnp.float32, -bound, bound)
        b = jax.random.uniform(kb, (Cout,), jnp.float32, -bound, bound)
        layers.append(dict(
            w=w, b=b,
            gamma=jnp.ones((Cout,), jnp.float32),   # BN weight default
            beta=jnp.zeros((Cout,), jnp.float32),   # BN bias default
            K=K, S=S, P=(K - 1) // 2,               # 'same' padding
        ))
        c = Cout
    kw, kb = jax.random.split(keys[-1])
    bound = 1.0 / float(np.sqrt(c))
    w_cls = jax.random.uniform(kw, (1, c, 1, 1), jnp.float32, -bound, bound)
    b_cls = jax.random.uniform(kb, (1,), jnp.float32, -bound, bound)
    return layers, (w_cls, b_cls)


def build_patch_discriminator(layers, cls_params, input_shape):
    """Specialize the fused kernel for a fixed (N, Cin, H, W); returns jit'd fwd.

    layout_dim=0 in this instantiation, so forward(x) takes the plain image; a
    nonzero layout_dim would simply build with Cin = 3 + layout_dim and the
    caller would concatenate [x, layout] along channels before calling.
    """
    N, Cin, H, W = input_shape
    assert len(layers) == 2, "fused kernel is specialized to C3-64-2,C3-128-2"
    l1, l2 = layers
    c1 = l1["w"].shape[0]
    c2 = l2["w"].shape[0]
    cin_pad = _round_up(Cin, 8)   # sublane-align the tiny Cin (no K->128 padding)

    # Constant gather matrices (exact 0/1 values, bf16-safe), built once.
    G1, H1, W1 = _gather_matrix(N, H, W, l1["K"], l1["S"], l1["P"])
    G2, H2, W2 = _gather_matrix(N, H1, W1, l2["K"], l2["S"], l2["P"])
    m1 = N * H1 * W1
    m2 = N * H2 * W2
    g1 = jnp.asarray(G1, jnp.bfloat16)                    # [9, m1, N*H*W]
    g2 = jnp.asarray(G2, jnp.bfloat16)                    # [9, m2, m1]

    # Kernel-format weights, prepared ONCE at build time (not per call).
    # PyTorch [Cout, Cin, kh, kw] -> per-tap [kh*kw, Cin, Cout], bf16 for MXU.
    w1 = jnp.transpose(l1["w"], (2, 3, 1, 0)).reshape(l1["K"] ** 2, Cin, c1)
    w1 = jnp.pad(w1, ((0, 0), (0, cin_pad - Cin), (0, 0))).astype(jnp.bfloat16)
    w2 = jnp.transpose(l2["w"], (2, 3, 1, 0)).reshape(l2["K"] ** 2, c1, c2)
    w2 = w2.astype(jnp.bfloat16)
    b1 = l1["b"].reshape(1, c1).astype(jnp.float32)
    b2 = l2["b"].reshape(1, c2).astype(jnp.float32)
    gamma = l1["gamma"].reshape(1, c1).astype(jnp.float32)
    beta = l1["beta"].reshape(1, c1).astype(jnp.float32)
    w_cls, b_cls = cls_params
    wc = w_cls.reshape(1, c2).astype(jnp.float32)
    bc = b_cls.reshape(1, 1).astype(jnp.float32)

    kernel = functools.partial(
        _fused_forward_kernel,
        taps1=l1["K"] ** 2, taps2=l2["K"] ** 2, m1=m1, m2=m2, c1=c1, c2=c2)

    vmem = pl.BlockSpec(memory_space=pltpu.MemorySpace.VMEM)
    fused_call = pl.pallas_call(
        kernel,
        out_shape=jax.ShapeDtypeStruct((m2, 1), jnp.float32),
        in_specs=[vmem] * 11,
        out_specs=vmem,
        compiler_params=pltpu.CompilerParams(vmem_limit_bytes=_VMEM_LIMIT),
    )

    @jax.jit
    def forward(x_nchw):
        # Only per-call host work: NCHW -> NHWC -> [N*H*W, Cin_pad] bf16.
        xf = jnp.transpose(x_nchw, (0, 2, 3, 1)).reshape(N * H * W, Cin)
        xf = jnp.pad(xf, ((0, 0), (0, cin_pad - Cin))).astype(jnp.bfloat16)
        scores = fused_call(xf, g1, w1, b1, gamma, beta, g2, w2, b2, wc, bc)
        return scores.reshape(N, H2, W2)[:, None, :, :]   # NCHW [N,1,H2,W2] f32

    return forward


# ------------------------- pure-JAX reference (check) ------------------------ #

def _reference_forward(x_nchw, layers, cls_params):
    def conv(x, w, b, stride, pad):
        y = jax.lax.conv_general_dilated(
            x, w, window_strides=(stride, stride),
            padding=[(pad, pad), (pad, pad)],
            dimension_numbers=("NCHW", "OIHW", "NCHW"))
        return y + b.reshape(1, -1, 1, 1)

    l1, l2 = layers
    y = conv(x_nchw, l1["w"], l1["b"], l1["S"], l1["P"])
    mean = y.mean(axis=(0, 2, 3), keepdims=True)
    var = ((y - mean) ** 2).mean(axis=(0, 2, 3), keepdims=True)   # biased
    y = (y - mean) * jax.lax.rsqrt(var + _BN_EPS)
    y = y * l1["gamma"].reshape(1, -1, 1, 1) + l1["beta"].reshape(1, -1, 1, 1)
    y = jnp.where(y >= 0, y, _NEG_SLOPE * y)
    y = conv(y, l2["w"], l2["b"], l2["S"], l2["P"])
    w_cls, b_cls = cls_params
    return conv(y, w_cls, b_cls, 1, 0)


# ---------------------------------- main -------------------------------------- #

if __name__ == "__main__":
    key = jax.random.PRNGKey(0)
    k_x, k_p = jax.random.split(key)

    # input_dim = 3 + layout_dim(=0); spatial 16x16, batch 2.
    x = jax.random.normal(k_x, (2, 3, 16, 16), jnp.float32)
    layers, cls_params = init_params(k_p, cin=3)

    forward = build_patch_discriminator(layers, cls_params, x.shape)
    out = jax.block_until_ready(forward(x))

    # 16 -> 8 -> 4 spatial (two stride-2 'same' convs); 1x1 classifier keeps 4x4.
    assert out.shape == (2, 1, 4, 4), out.shape
    assert out.dtype == jnp.float32

    # Correctness check against a pure-JAX reference (bf16 MXU inputs / f32
    # accumulation => ~1e-2-level tolerance).
    ref = _reference_forward(x, layers, cls_params)
    np.testing.assert_allclose(np.asarray(out), np.asarray(ref),
                               rtol=5e-2, atol=3e-2)

    print("KERNEL_OK")
</pallas_src>

<mosaic_0001>
module attributes {stable_mosaic.version = 11 : i64} {
  func.func @_fused_forward_kernel(%arg0: memref<512x8xbf16, #tpu.memory_space<vmem>>, %arg1: memref<9x128x512xbf16, #tpu.memory_space<vmem>>, %arg2: memref<9x8x64xbf16, #tpu.memory_space<vmem>>, %arg3: memref<1x64xf32, #tpu.memory_space<vmem>>, %arg4: memref<1x64xf32, #tpu.memory_space<vmem>>, %arg5: memref<1x64xf32, #tpu.memory_space<vmem>>, %arg6: memref<9x32x128xbf16, #tpu.memory_space<vmem>>, %arg7: memref<9x64x128xbf16, #tpu.memory_space<vmem>>, %arg8: memref<1x128xf32, #tpu.memory_space<vmem>>, %arg9: memref<1x128xf32, #tpu.memory_space<vmem>>, %arg10: memref<1x1xf32, #tpu.memory_space<vmem>>, %arg11: memref<32x1xf32, #tpu.memory_space<vmem>>) attributes {dimension_semantics = [], scalar_prefetch = 0 : i64, scratch_operands = 0 : i64, tpu.core_type = #tpu.core_type<tc>} {
    %c0 = arith.constant 0 : index
    %c0_0 = arith.constant 0 : index
    %0 = vector.load %arg0[%c0, %c0_0] : memref<512x8xbf16, #tpu.memory_space<vmem>>, vector<512x8xbf16>
    %cst = arith.constant 0.000000e+00 : f32
    %1 = vector.broadcast %cst : f32 to vector<128x64xf32>
    %c0_1 = arith.constant 0 : index
    %c0_2 = arith.constant 0 : index
    %c0_3 = arith.constant 0 : index
    %2 = vector.load %arg1[%c0_1, %c0_2, %c0_3] : memref<9x128x512xbf16, #tpu.memory_space<vmem>>, vector<1x128x512xbf16>
    %3 = vector.shape_cast %2 : vector<1x128x512xbf16> to vector<128x512xbf16>
    %cst_4 = arith.constant dense<0.000000e+00> : vector<128x8xf32>
    %4 = tpu.matmul %3, %0, %cst_4 {dimension_numbers = #tpu.dot_dimension_numbers<[1], [0], [0], [1], [0, 0, 1, 1], [], []>} : vector<128x512xbf16>, vector<512x8xbf16>, vector<128x8xf32> -> vector<128x8xf32>
    %5 = arith.truncf %4 : vector<128x8xf32> to vector<128x8xbf16>
    %c0_5 = arith.constant 0 : index
    %c0_6 = arith.constant 0 : index
    %c0_7 = arith.constant 0 : index
    %6 = vector.load %arg2[%c0_5, %c0_6, %c0_7] : memref<9x8x64xbf16, #tpu.memory_space<vmem>>, vector<1x8x64xbf16>
    %7 = vector.shape_cast %6 : vector<1x8x64xbf16> to vector<8x64xbf16>
    %cst_8 = arith.constant dense<0.000000e+00> : vector<128x64xf32>
    %8 = tpu.matmul %5, %7, %cst_8 {dimension_numbers = #tpu.dot_dimension_numbers<[1], [0], [0], [1], [0, 0, 1, 1], [], []>} : vector<128x8xbf16>, vector<8x64xbf16>, vector<128x64xf32> -> vector<128x64xf32>
    %9 = arith.addf %1, %8 : vector<128x64xf32>
    %c1 = arith.constant 1 : index
    %c0_9 = arith.constant 0 : index
    %c0_10 = arith.constant 0 : index
    %10 = vector.load %arg1[%c1, %c0_9, %c0_10] : memref<9x128x512xbf16, #tpu.memory_space<vmem>>, vector<1x128x512xbf16>
    %11 = vector.shape_cast %10 : vector<1x128x512xbf16> to vector<128x512xbf16>
    %cst_11 = arith.constant dense<0.000000e+00> : vector<128x8xf32>
    %12 = tpu.matmul %11, %0, %cst_11 {dimension_numbers = #tpu.dot_dimension_numbers<[1], [0], [0], [1], [0, 0, 1, 1], [], []>} : vector<128x512xbf16>, vector<512x8xbf16>, vector<128x8xf32> -> vector<128x8xf32>
    %13 = arith.truncf %12 : vector<128x8xf32> to vector<128x8xbf16>
    %c1_12 = arith.constant 1 : index
    %c0_13 = arith.constant 0 : index
    %c0_14 = arith.constant 0 : index
    %14 = vector.load %arg2[%c1_12, %c0_13, %c0_14] : memref<9x8x64xbf16, #tpu.memory_space<vmem>>, vector<1x8x64xbf16>
    %15 = vector.shape_cast %14 : vector<1x8x64xbf16> to vector<8x64xbf16>
    %cst_15 = arith.constant dense<0.000000e+00> : vector<128x64xf32>
    %16 = tpu.matmul %13, %15, %cst_15 {dimension_numbers = #tpu.dot_dimension_numbers<[1], [0], [0], [1], [0, 0, 1, 1], [], []>} : vector<128x8xbf16>, vector<8x64xbf16>, vector<128x64xf32> -> vector<128x64xf32>
    %17 = arith.addf %9, %16 : vector<128x64xf32>
    %c2 = arith.constant 2 : index
    %c0_16 = arith.constant 0 : index
    %c0_17 = arith.constant 0 : index
    %18 = vector.load %arg1[%c2, %c0_16, %c0_17] : memref<9x128x512xbf16, #tpu.memory_space<vmem>>, vector<1x128x512xbf16>
    %19 = vector.shape_cast %18 : vector<1x128x512xbf16> to vector<128x512xbf16>
    %cst_18 = arith.constant dense<0.000000e+00> : vector<128x8xf32>
    %20 = tpu.matmul %19, %0, %cst_18 {dimension_numbers = #tpu.dot_dimension_numbers<[1], [0], [0], [1], [0, 0, 1, 1], [], []>} : vector<128x512xbf16>, vector<512x8xbf16>, vector<128x8xf32> -> vector<128x8xf32>
    %21 = arith.truncf %20 : vector<128x8xf32> to vector<128x8xbf16>
    %c2_19 = arith.constant 2 : index
    %c0_20 = arith.constant 0 : index
    %c0_21 = arith.constant 0 : index
    %22 = vector.load %arg2[%c2_19, %c0_20, %c0_21] : memref<9x8x64xbf16, #tpu.memory_space<vmem>>, vector<1x8x64xbf16>
    %23 = vector.shape_cast %22 : vector<1x8x64xbf16> to vector<8x64xbf16>
    %cst_22 = arith.constant dense<0.000000e+00> : vector<128x64xf32>
    %24 = tpu.matmul %21, %23, %cst_22 {dimension_numbers = #tpu.dot_dimension_numbers<[1], [0], [0], [1], [0, 0, 1, 1], [], []>} : vector<128x8xbf16>, vector<8x64xbf16>, vector<128x64xf32> -> vector<128x64xf32>
    %25 = arith.addf %17, %24 : vector<128x64xf32>
    %c3 = arith.constant 3 : index
    %c0_23 = arith.constant 0 : index
    %c0_24 = arith.constant 0 : index
    %26 = vector.load %arg1[%c3, %c0_23, %c0_24] : memref<9x128x512xbf16, #tpu.memory_space<vmem>>, vector<1x128x512xbf16>
    %27 = vector.shape_cast %26 : vector<1x128x512xbf16> to vector<128x512xbf16>
    %cst_25 = arith.constant dense<0.000000e+00> : vector<128x8xf32>
    %28 = tpu.matmul %27, %0, %cst_25 {dimension_numbers = #tpu.dot_dimension_numbers<[1], [0], [0], [1], [0, 0, 1, 1], [], []>} : vector<128x512xbf16>, vector<512x8xbf16>, vector<128x8xf32> -> vector<128x8xf32>
    %29 = arith.truncf %28 : vector<128x8xf32> to vector<128x8xbf16>
    %c3_26 = arith.constant 3 : index
    %c0_27 = arith.constant 0 : index
    %c0_28 = arith.constant 0 : index
    %30 = vector.load %arg2[%c3_26, %c0_27, %c0_28] : memref<9x8x64xbf16, #tpu.memory_space<vmem>>, vector<1x8x64xbf16>
    %31 = vector.shape_cast %30 : vector<1x8x64xbf16> to vector<8x64xbf16>
    %cst_29 = arith.constant dense<0.000000e+00> : vector<128x64xf32>
    %32 = tpu.matmul %29, %31, %cst_29 {dimension_numbers = #tpu.dot_dimension_numbers<[1], [0], [0], [1], [0, 0, 1, 1], [], []>} : vector<128x8xbf16>, vector<8x64xbf16>, vector<128x64xf32> -> vector<128x64xf32>
    %33 = arith.addf %25, %32 : vector<128x64xf32>
    %c4 = arith.constant 4 : index
    %c0_30 = arith.constant 0 : index
    %c0_31 = arith.constant 0 : index
    %34 = vector.load %arg1[%c4, %c0_30, %c0_31] : memref<9x128x512xbf16, #tpu.memory_space<vmem>>, vector<1x128x512xbf16>
    %35 = vector.shape_cast %34 : vector<1x128x512xbf16> to vector<128x512xbf16>
    %cst_32 = arith.constant dense<0.000000e+00> : vector<128x8xf32>
    %36 = tpu.matmul %35, %0, %cst_32 {dimension_numbers = #tpu.dot_dimension_numbers<[1], [0], [0], [1], [0, 0, 1, 1], [], []>} : vector<128x512xbf16>, vector<512x8xbf16>, vector<128x8xf32> -> vector<128x8xf32>
    %37 = arith.truncf %36 : vector<128x8xf32> to vector<128x8xbf16>
    %c4_33 = arith.constant 4 : index
    %c0_34 = arith.constant 0 : index
    %c0_35 = arith.constant 0 : index
    %38 = vector.load %arg2[%c4_33, %c0_34, %c0_35] : memref<9x8x64xbf16, #tpu.memory_space<vmem>>, vector<1x8x64xbf16>
    %39 = vector.shape_cast %38 : vector<1x8x64xbf16> to vector<8x64xbf16>
    %cst_36 = arith.constant dense<0.000000e+00> : vector<128x64xf32>
    %40 = tpu.matmul %37, %39, %cst_36 {dimension_numbers = #tpu.dot_dimension_numbers<[1], [0], [0], [1], [0, 0, 1, 1], [], []>} : vector<128x8xbf16>, vector<8x64xbf16>, vector<128x64xf32> -> vector<128x64xf32>
    %41 = arith.addf %33, %40 : vector<128x64xf32>
    %c5 = arith.constant 5 : index
    %c0_37 = arith.constant 0 : index
    %c0_38 = arith.constant 0 : index
    %42 = vector.load %arg1[%c5, %c0_37, %c0_38] : memref<9x128x512xbf16, #tpu.memory_space<vmem>>, vector<1x128x512xbf16>
    %43 = vector.shape_cast %42 : vector<1x128x512xbf16> to vector<128x512xbf16>
    %cst_39 = arith.constant dense<0.000000e+00> : vector<128x8xf32>
    %44 = tpu.matmul %43, %0, %cst_39 {dimension_numbers = #tpu.dot_dimension_numbers<[1], [0], [0], [1], [0, 0, 1, 1], [], []>} : vector<128x512xbf16>, vector<512x8xbf16>, vector<128x8xf32> -> vector<128x8xf32>
    %45 = arith.truncf %44 : vector<128x8xf32> to vector<128x8xbf16>
    %c5_40 = arith.constant 5 : index
    %c0_41 = arith.constant 0 : index
    %c0_42 = arith.constant 0 : index
    %46 = vector.load %arg2[%c5_40, %c0_41, %c0_42] : memref<9x8x64xbf16, #tpu.memory_space<vmem>>, vector<1x8x64xbf16>
    %47 = vector.shape_cast %46 : vector<1x8x64xbf16> to vector<8x64xbf16>
    %cst_43 = arith.constant dense<0.000000e+00> : vector<128x64xf32>
    %48 = tpu.matmul %45, %47, %cst_43 {dimension_numbers = #tpu.dot_dimension_numbers<[1], [0], [0], [1], [0, 0, 1, 1], [], []>} : vector<128x8xbf16>, vector<8x64xbf16>, vector<128x64xf32> -> vector<128x64xf32>
    %49 = arith.addf %41, %48 : vector<128x64xf32>
    %c6 = arith.constant 6 : index
    %c0_44 = arith.constant 0 : index
    %c0_45 = arith.constant 0 : index
    %50 = vector.load %arg1[%c6, %c0_44, %c0_45] : memref<9x128x512xbf16, #tpu.memory_space<vmem>>, vector<1x128x512xbf16>
    %51 = vector.shape_cast %50 : vector<1x128x512xbf16> to vector<128x512xbf16>
    %cst_46 = arith.constant dense<0.000000e+00> : vector<128x8xf32>
    %52 = tpu.matmul %51, %0, %cst_46 {dimension_numbers = #tpu.dot_dimension_numbers<[1], [0], [0], [1], [0, 0, 1, 1], [], []>} : vector<128x512xbf16>, vector<512x8xbf16>, vector<128x8xf32> -> vector<128x8xf32>
    %53 = arith.truncf %52 : vector<128x8xf32> to vector<128x8xbf16>
    %c6_47 = arith.constant 6 : index
    %c0_48 = arith.constant 0 : index
    %c0_49 = arith.constant 0 : index
    %54 = vector.load %arg2[%c6_47, %c0_48, %c0_49] : memref<9x8x64xbf16, #tpu.memory_space<vmem>>, vector<1x8x64xbf16>
    %55 = vector.shape_cast %54 : vector<1x8x64xbf16> to vector<8x64xbf16>
    %cst_50 = arith.constant dense<0.000000e+00> : vector<128x64xf32>
    %56 = tpu.matmul %53, %55, %cst_50 {dimension_numbers = #tpu.dot_dimension_numbers<[1], [0], [0], [1], [0, 0, 1, 1], [], []>} : vector<128x8xbf16>, vector<8x64xbf16>, vector<128x64xf32> -> vector<128x64xf32>
    %57 = arith.addf %49, %56 : vector<128x64xf32>
    %c7 = arith.constant 7 : index
    %c0_51 = arith.constant 0 : index
    %c0_52 = arith.constant 0 : index
    %58 = vector.load %arg1[%c7, %c0_51, %c0_52] : memref<9x128x512xbf16, #tpu.memory_space<vmem>>, vector<1x128x512xbf16>
    %59 = vector.shape_cast %58 : vector<1x128x512xbf16> to vector<128x512xbf16>
    %cst_53 = arith.constant dense<0.000000e+00> : vector<128x8xf32>
    %60 = tpu.matmul %59, %0, %cst_53 {dimension_numbers = #tpu.dot_dimension_numbers<[1], [0], [0], [1], [0, 0, 1, 1], [], []>} : vector<128x512xbf16>, vector<512x8xbf16>, vector<128x8xf32> -> vector<128x8xf32>
    %61 = arith.truncf %60 : vector<128x8xf32> to vector<128x8xbf16>
    %c7_54 = arith.constant 7 : index
    %c0_55 = arith.constant 0 : index
    %c0_56 = arith.constant 0 : index
    %62 = vector.load %arg2[%c7_54, %c0_55, %c0_56] : memref<9x8x64xbf16, #tpu.memory_space<vmem>>, vector<1x8x64xbf16>
    %63 = vector.shape_cast %62 : vector<1x8x64xbf16> to vector<8x64xbf16>
    %cst_57 = arith.constant dense<0.000000e+00> : vector<128x64xf32>
    %64 = tpu.matmul %61, %63, %cst_57 {dimension_numbers = #tpu.dot_dimension_numbers<[1], [0], [0], [1], [0, 0, 1, 1], [], []>} : vector<128x8xbf16>, vector<8x64xbf16>, vector<128x64xf32> -> vector<128x64xf32>
    %65 = arith.addf %57, %64 : vector<128x64xf32>
    %c8 = arith.constant 8 : index
    %c0_58 = arith.constant 0 : index
    %c0_59 = arith.constant 0 : index
    %66 = vector.load %arg1[%c8, %c0_58, %c0_59] : memref<9x128x512xbf16, #tpu.memory_space<vmem>>, vector<1x128x512xbf16>
    %67 = vector.shape_cast %66 : vector<1x128x512xbf16> to vector<128x512xbf16>
    %cst_60 = arith.constant dense<0.000000e+00> : vector<128x8xf32>
    %68 = tpu.matmul %67, %0, %cst_60 {dimension_numbers = #tpu.dot_dimension_numbers<[1], [0], [0], [1], [0, 0, 1, 1], [], []>} : vector<128x512xbf16>, vector<512x8xbf16>, vector<128x8xf32> -> vector<128x8xf32>
    %69 = arith.truncf %68 : vector<128x8xf32> to vector<128x8xbf16>
    %c8_61 = arith.constant 8 : index
    %c0_62 = arith.constant 0 : index
    %c0_63 = arith.constant 0 : index
    %70 = vector.load %arg2[%c8_61, %c0_62, %c0_63] : memref<9x8x64xbf16, #tpu.memory_space<vmem>>, vector<1x8x64xbf16>
    %71 = vector.shape_cast %70 : vector<1x8x64xbf16> to vector<8x64xbf16>
    %cst_64 = arith.constant dense<0.000000e+00> : vector<128x64xf32>
    %72 = tpu.matmul %69, %71, %cst_64 {dimension_numbers = #tpu.dot_dimension_numbers<[1], [0], [0], [1], [0, 0, 1, 1], [], []>} : vector<128x8xbf16>, vector<8x64xbf16>, vector<128x64xf32> -> vector<128x64xf32>
    %73 = arith.addf %65, %72 : vector<128x64xf32>
    %c0_65 = arith.constant 0 : index
    %c0_66 = arith.constant 0 : index
    %74 = vector.load %arg3[%c0_65, %c0_66] : memref<1x64xf32, #tpu.memory_space<vmem>>, vector<1x64xf32>
    %75 = vector.broadcast %74 : vector<1x64xf32> to vector<128x64xf32>
    %76 = arith.addf %73, %75 : vector<128x64xf32>
    %cst_67 = arith.constant dense<0.000000e+00> : vector<64xf32>
    %77 = vector.multi_reduction <add>, %76, %cst_67 [0] : vector<128x64xf32> to vector<64xf32>
    %78 = vector.shape_cast %77 : vector<64xf32> to vector<1x64xf32>
    %cst_68 = arith.constant 7.812500e-03 : f32
    %79 = vector.broadcast %cst_68 : f32 to vector<1x64xf32>
    %80 = arith.mulf %78, %79 : vector<1x64xf32>
    %81 = vector.broadcast %80 : vector<1x64xf32> to vector<128x64xf32>
    %82 = arith.subf %76, %81 : vector<128x64xf32>
    %83 = arith.mulf %82, %82 : vector<128x64xf32>
    %cst_69 = arith.constant dense<0.000000e+00> : vector<64xf32>
    %84 = vector.multi_reduction <add>, %83, %cst_69 [0] : vector<128x64xf32> to vector<64xf32>
    %85 = vector.shape_cast %84 : vector<64xf32> to vector<1x64xf32>
    %cst_70 = arith.constant 7.812500e-03 : f32
    %86 = vector.broadcast %cst_70 : f32 to vector<1x64xf32>
    %87 = arith.mulf %85, %86 : vector<1x64xf32>
    %cst_71 = arith.constant 9.99999974E-6 : f32
    %88 = vector.broadcast %cst_71 : f32 to vector<1x64xf32>
    %89 = arith.addf %87, %88 : vector<1x64xf32>
    %90 = math.rsqrt %89 : vector<1x64xf32>
    %c0_72 = arith.constant 0 : index
    %c0_73 = arith.constant 0 : index
    %91 = vector.load %arg4[%c0_72, %c0_73] : memref<1x64xf32, #tpu.memory_space<vmem>>, vector<1x64xf32>
    %92 = arith.mulf %91, %90 : vector<1x64xf32>
    %93 = vector.broadcast %92 : vector<1x64xf32> to vector<128x64xf32>
    %94 = arith.mulf %82, %93 : vector<128x64xf32>
    %c0_74 = arith.constant 0 : index
    %c0_75 = arith.constant 0 : index
    %95 = vector.load %arg5[%c0_74, %c0_75] : memref<1x64xf32, #tpu.memory_space<vmem>>, vector<1x64xf32>
    %96 = vector.broadcast %95 : vector<1x64xf32> to vector<128x64xf32>
    %97 = arith.addf %94, %96 : vector<128x64xf32>
    %cst_76 = arith.constant 0.000000e+00 : f32
    %98 = vector.broadcast %cst_76 : f32 to vector<128x64xf32>
    %99 = arith.cmpf oge, %97, %98 : vector<128x64xf32>
    %cst_77 = arith.constant 2.000000e-01 : f32
    %100 = vector.broadcast %cst_77 : f32 to vector<128x64xf32>
    %101 = arith.mulf %100, %97 : vector<128x64xf32>
    %102 = arith.select %99, %97, %101 : vector<128x64xi1>, vector<128x64xf32>
    %103 = arith.truncf %102 : vector<128x64xf32> to vector<128x64xbf16>
    %cst_78 = arith.constant 0.000000e+00 : f32
    %104 = vector.broadcast %cst_78 : f32 to vector<32x128xf32>
    %c0_79 = arith.constant 0 : index
    %c0_80 = arith.constant 0 : index
    %c0_81 = arith.constant 0 : index
    %105 = vector.load %arg6[%c0_79, %c0_80, %c0_81] : memref<9x32x128xbf16, #tpu.memory_space<vmem>>, vector<1x32x128xbf16>
    %106 = vector.shape_cast %105 : vector<1x32x128xbf16> to vector<32x128xbf16>
    %cst_82 = arith.constant dense<0.000000e+00> : vector<32x64xf32>
    %107 = tpu.matmul %106, %103, %cst_82 {dimension_numbers = #tpu.dot_dimension_numbers<[1], [0], [0], [1], [0, 0, 1, 1], [], []>} : vector<32x128xbf16>, vector<128x64xbf16>, vector<32x64xf32> -> vector<32x64xf32>
    %108 = arith.truncf %107 : vector<32x64xf32> to vector<32x64xbf16>
    %c0_83 = arith.constant 0 : index
    %c0_84 = arith.constant 0 : index
    %c0_85 = arith.constant 0 : index
    %109 = vector.load %arg7[%c0_83, %c0_84, %c0_85] : memref<9x64x128xbf16, #tpu.memory_space<vmem>>, vector<1x64x128xbf16>
    %110 = vector.shape_cast %109 : vector<1x64x128xbf16> to vector<64x128xbf16>
    %cst_86 = arith.constant dense<0.000000e+00> : vector<32x128xf32>
    %111 = tpu.matmul %108, %110, %cst_86 {dimension_numbers = #tpu.dot_dimension_numbers<[1], [0], [0], [1], [0, 0, 1, 1], [], []>} : vector<32x64xbf16>, vector<64x128xbf16>, vector<32x128xf32> -> vector<32x128xf32>
    %112 = arith.addf %104, %111 : vector<32x128xf32>
    %c1_87 = arith.constant 1 : index
    %c0_88 = arith.constant 0 : index
    %c0_89 = arith.constant 0 : index
    %113 = vector.load %arg6[%c1_87, %c0_88, %c0_89] : memref<9x32x128xbf16, #tpu.memory_space<vmem>>, vector<1x32x128xbf16>
    %114 = vector.shape_cast %113 : vector<1x32x128xbf16> to vector<32x128xbf16>
    %cst_90 = arith.constant dense<0.000000e+00> : vector<32x64xf32>
    %115 = tpu.matmul %114, %103, %cst_90 {dimension_numbers = #tpu.dot_dimension_numbers<[1], [0], [0], [1], [0, 0, 1, 1], [], []>} : vector<32x128xbf16>, vector<128x64xbf16>, vector<32x64xf32> -> vector<32x64xf32>
    %116 = arith.truncf %115 : vector<32x64xf32> to vector<32x64xbf16>
    %c1_91 = arith.constant 1 : index
    %c0_92 = arith.constant 0 : index
    %c0_93 = arith.constant 0 : index
    %117 = vector.load %arg7[%c1_91, %c0_92, %c0_93] : memref<9x64x128xbf16, #tpu.memory_space<vmem>>, vector<1x64x128xbf16>
    %118 = vector.shape_cast %117 : vector<1x64x128xbf16> to vector<64x128xbf16>
    %cst_94 = arith.constant dense<0.000000e+00> : vector<32x128xf32>
    %119 = tpu.matmul %116, %118, %cst_94 {dimension_numbers = #tpu.dot_dimension_numbers<[1], [0], [0], [1], [0, 0, 1, 1], [], []>} : vector<32x64xbf16>, vector<64x128xbf16>, vector<32x128xf32> -> vector<32x128xf32>
    %120 = arith.addf %112, %119 : vector<32x128xf32>
    %c2_95 = arith.constant 2 : index
    %c0_96 = arith.constant 0 : index
    %c0_97 = arith.constant 0 : index
    %121 = vector.load %arg6[%c2_95, %c0_96, %c0_97] : memref<9x32x128xbf16, #tpu.memory_space<vmem>>, vector<1x32x128xbf16>
    %122 = vector.shape_cast %121 : vector<1x32x128xbf16> to vector<32x128xbf16>
    %cst_98 = arith.constant dense<0.000000e+00> : vector<32x64xf32>
    %123 = tpu.matmul %122, %103, %cst_98 {dimension_numbers = #tpu.dot_dimension_numbers<[1], [0], [0], [1], [0, 0, 1, 1], [], []>} : vector<32x128xbf16>, vector<128x64xbf16>, vector<32x64xf32> -> vector<32x64xf32>
    %124 = arith.truncf %123 : vector<32x64xf32> to vector<32x64xbf16>
    %c2_99 = arith.constant 2 : index
    %c0_100 = arith.constant 0 : index
    %c0_101 = arith.constant 0 : index
    %125 = vector.load %arg7[%c2_99, %c0_100, %c0_101] : memref<9x64x128xbf16, #tpu.memory_space<vmem>>, vector<1x64x128xbf16>
    %126 = vector.shape_cast %125 : vector<1x64x128xbf16> to vector<64x128xbf16>
    %cst_102 = arith.constant dense<0.000000e+00> : vector<32x128xf32>
    %127 = tpu.matmul %124, %126, %cst_102 {dimension_numbers = #tpu.dot_dimension_numbers<[1], [0], [0], [1], [0, 0, 1, 1], [], []>} : vector<32x64xbf16>, vector<64x128xbf16>, vector<32x128xf32> -> vector<32x128xf32>
    %128 = arith.addf %120, %127 : vector<32x128xf32>
    %c3_103 = arith.constant 3 : index
    %c0_104 = arith.constant 0 : index
    %c0_105 = arith.constant 0 : index
    %129 = vector.load %arg6[%c3_103, %c0_104, %c0_105] : memref<9x32x128xbf16, #tpu.memory_space<vmem>>, vector<1x32x128xbf16>
    %130 = vector.shape_cast %129 : vector<1x32x128xbf16> to vector<32x128xbf16>
    %cst_106 = arith.constant dense<0.000000e+00> : vector<32x64xf32>
    %131 = tpu.matmul %130, %103, %cst_106 {dimension_numbers = #tpu.dot_dimension_numbers<[1], [0], [0], [1], [0, 0, 1, 1], [], []>} : vector<32x128xbf16>, vector<128x64xbf16>, vector<32x64xf32> -> vector<32x64xf32>
    %132 = arith.truncf %131 : vector<32x64xf32> to vector<32x64xbf16>
    %c3_107 = arith.constant 3 : index
    %c0_108 = arith.constant 0 : index
    %c0_109 = arith.constant 0 : index
    %133 = vector.load %arg7[%c3_107, %c0_108, %c0_109] : memref<9x64x128xbf16, #tpu.memory_space<vmem>>, vector<1x64x128xbf16>
    %134 = vector.shape_cast %133 : vector<1x64x128xbf16> to vector<64x128xbf16>
    %cst_110 = arith.constant dense<0.000000e+00> : vector<32x128xf32>
    %135 = tpu.matmul %132, %134, %cst_110 {dimension_numbers = #tpu.dot_dimension_numbers<[1], [0], [0], [1], [0, 0, 1, 1], [], []>} : vector<32x64xbf16>, vector<64x128xbf16>, vector<32x128xf32> -> vector<32x128xf32>
    %136 = arith.addf %128, %135 : vector<32x128xf32>
    %c4_111 = arith.constant 4 : index
    %c0_112 = arith.constant 0 : index
    %c0_113 = arith.constant 0 : index
    %137 = vector.load %arg6[%c4_111, %c0_112, %c0_113] : memref<9x32x128xbf16, #tpu.memory_space<vmem>>, vector<1x32x128xbf16>
    %138 = vector.shape_cast %137 : vector<1x32x128xbf16> to vector<32x128xbf16>
    %cst_114 = arith.constant dense<0.000000e+00> : vector<32x64xf32>
    %139 = tpu.matmul %138, %103, %cst_114 {dimension_numbers = #tpu.dot_dimension_numbers<[1], [0], [0], [1], [0, 0, 1, 1], [], []>} : vector<32x128xbf16>, vector<128x64xbf16>, vector<32x64xf32> -> vector<32x64xf32>
    %140 = arith.truncf %139 : vector<32x64xf32> to vector<32x64xbf16>
    %c4_115 = arith.constant 4 : index
    %c0_116 = arith.constant 0 : index
    %c0_117 = arith.constant 0 : index
    %141 = vector.load %arg7[%c4_115, %c0_116, %c0_117] : memref<9x64x128xbf16, #tpu.memory_space<vmem>>, vector<1x64x128xbf16>
    %142 = vector.shape_cast %141 : vector<1x64x128xbf16> to vector<64x128xbf16>
    %cst_118 = arith.constant dense<0.000000e+00> : vector<32x128xf32>
    %143 = tpu.matmul %140, %142, %cst_118 {dimension_numbers = #tpu.dot_dimension_numbers<[1], [0], [0], [1], [0, 0, 1, 1], [], []>} : vector<32x64xbf16>, vector<64x128xbf16>, vector<32x128xf32> -> vector<32x128xf32>
    %144 = arith.addf %136, %143 : vector<32x128xf32>
    %c5_119 = arith.constant 5 : index
    %c0_120 = arith.constant 0 : index
    %c0_121 = arith.constant 0 : index
    %145 = vector.load %arg6[%c5_119, %c0_120, %c0_121] : memref<9x32x128xbf16, #tpu.memory_space<vmem>>, vector<1x32x128xbf16>
    %146 = vector.shape_cast %145 : vector<1x32x128xbf16> to vector<32x128xbf16>
    %cst_122 = arith.constant dense<0.000000e+00> : vector<32x64xf32>
    %147 = tpu.matmul %146, %103, %cst_122 {dimension_numbers = #tpu.dot_dimension_numbers<[1], [0], [0], [1], [0, 0, 1, 1], [], []>} : vector<32x128xbf16>, vector<128x64xbf16>, vector<32x64xf32> -> vector<32x64xf32>
    %148 = arith.truncf %147 : vector<32x64xf32> to vector<32x64xbf16>
    %c5_123 = arith.constant 5 : index
    %c0_124 = arith.constant 0 : index
    %c0_125 = arith.constant 0 : index
    %149 = vector.load %arg7[%c5_123, %c0_124, %c0_125] : memref<9x64x128xbf16, #tpu.memory_space<vmem>>, vector<1x64x128xbf16>
    %150 = vector.shape_cast %149 : vector<1x64x128xbf16> to vector<64x128xbf16>
    %cst_126 = arith.constant dense<0.000000e+00> : vector<32x128xf32>
    %151 = tpu.matmul %148, %150, %cst_126 {dimension_numbers = #tpu.dot_dimension_numbers<[1], [0], [0], [1], [0, 0, 1, 1], [], []>} : vector<32x64xbf16>, vector<64x128xbf16>, vector<32x128xf32> -> vector<32x128xf32>
    %152 = arith.addf %144, %151 : vector<32x128xf32>
    %c6_127 = arith.constant 6 : index
    %c0_128 = arith.constant 0 : index
    %c0_129 = arith.constant 0 : index
    %153 = vector.load %arg6[%c6_127, %c0_128, %c0_129] : memref<9x32x128xbf16, #tpu.memory_space<vmem>>, vector<1x32x128xbf16>
    %154 = vector.shape_cast %153 : vector<1x32x128xbf16> to vector<32x128xbf16>
    %cst_130 = arith.constant dense<0.000000e+00> : vector<32x64xf32>
    %155 = tpu.matmul %154, %103, %cst_130 {dimension_numbers = #tpu.dot_dimension_numbers<[1], [0], [0], [1], [0, 0, 1, 1], [], []>} : vector<32x128xbf16>, vector<128x64xbf16>, vector<32x64xf32> -> vector<32x64xf32>
    %156 = arith.truncf %155 : vector<32x64xf32> to vector<32x64xbf16>
    %c6_131 = arith.constant 6 : index
    %c0_132 = arith.constant 0 : index
    %c0_133 = arith.constant 0 : index
    %157 = vector.load %arg7[%c6_131, %c0_132, %c0_133] : memref<9x64x128xbf16, #tpu.memory_space<vmem>>, vector<1x64x128xbf16>
    %158 = vector.shape_cast %157 : vector<1x64x128xbf16> to vector<64x128xbf16>
    %cst_134 = arith.constant dense<0.000000e+00> : vector<32x128xf32>
    %159 = tpu.matmul %156, %158, %cst_134 {dimension_numbers = #tpu.dot_dimension_numbers<[1], [0], [0], [1], [0, 0, 1, 1], [], []>} : vector<32x64xbf16>, vector<64x128xbf16>, vector<32x128xf32> -> vector<32x128xf32>
    %160 = arith.addf %152, %159 : vector<32x128xf32>
    %c7_135 = arith.constant 7 : index
    %c0_136 = arith.constant 0 : index
    %c0_137 = arith.constant 0 : index
    %161 = vector.load %arg6[%c7_135, %c0_136, %c0_137] : memref<9x32x128xbf16, #tpu.memory_space<vmem>>, vector<1x32x128xbf16>
    %162 = vector.shape_cast %161 : vector<1x32x128xbf16> to vector<32x128xbf16>
    %cst_138 = arith.constant dense<0.000000e+00> : vector<32x64xf32>
    %163 = tpu.matmul %162, %103, %cst_138 {dimension_numbers = #tpu.dot_dimension_numbers<[1], [0], [0], [1], [0, 0, 1, 1], [], []>} : vector<32x128xbf16>, vector<128x64xbf16>, vector<32x64xf32> -> vector<32x64xf32>
    %164 = arith.truncf %163 : vector<32x64xf32> to vector<32x64xbf16>
    %c7_139 = arith.constant 7 : index
    %c0_140 = arith.constant 0 : index
    %c0_141 = arith.constant 0 : index
    %165 = vector.load %arg7[%c7_139, %c0_140, %c0_141] : memref<9x64x128xbf16, #tpu.memory_space<vmem>>, vector<1x64x128xbf16>
    %166 = vector.shape_cast %165 : vector<1x64x128xbf16> to vector<64x128xbf16>
    %cst_142 = arith.constant dense<0.000000e+00> : vector<32x128xf32>
    %167 = tpu.matmul %164, %166, %cst_142 {dimension_numbers = #tpu.dot_dimension_numbers<[1], [0], [0], [1], [0, 0, 1, 1], [], []>} : vector<32x64xbf16>, vector<64x128xbf16>, vector<32x128xf32> -> vector<32x128xf32>
    %168 = arith.addf %160, %167 : vector<32x128xf32>
    %c8_143 = arith.constant 8 : index
    %c0_144 = arith.constant 0 : index
    %c0_145 = arith.constant 0 : index
    %169 = vector.load %arg6[%c8_143, %c0_144, %c0_145] : memref<9x32x128xbf16, #tpu.memory_space<vmem>>, vector<1x32x128xbf16>
    %170 = vector.shape_cast %169 : vector<1x32x128xbf16> to vector<32x128xbf16>
    %cst_146 = arith.constant dense<0.000000e+00> : vector<32x64xf32>
    %171 = tpu.matmul %170, %103, %cst_146 {dimension_numbers = #tpu.dot_dimension_numbers<[1], [0], [0], [1], [0, 0, 1, 1], [], []>} : vector<32x128xbf16>, vector<128x64xbf16>, vector<32x64xf32> -> vector<32x64xf32>
    %172 = arith.truncf %171 : vector<32x64xf32> to vector<32x64xbf16>
    %c8_147 = arith.constant 8 : index
    %c0_148 = arith.constant 0 : index
    %c0_149 = arith.constant 0 : index
    %173 = vector.load %arg7[%c8_147, %c0_148, %c0_149] : memref<9x64x128xbf16, #tpu.memory_space<vmem>>, vector<1x64x128xbf16>
    %174 = vector.shape_cast %173 : vector<1x64x128xbf16> to vector<64x128xbf16>
    %cst_150 = arith.constant dense<0.000000e+00> : vector<32x128xf32>
    %175 = tpu.matmul %172, %174, %cst_150 {dimension_numbers = #tpu.dot_dimension_numbers<[1], [0], [0], [1], [0, 0, 1, 1], [], []>} : vector<32x64xbf16>, vector<64x128xbf16>, vector<32x128xf32> -> vector<32x128xf32>
    %176 = arith.addf %168, %175 : vector<32x128xf32>
    %c0_151 = arith.constant 0 : index
    %c0_152 = arith.constant 0 : index
    %177 = vector.load %arg8[%c0_151, %c0_152] : memref<1x128xf32, #tpu.memory_space<vmem>>, vector<1x128xf32>
    %178 = vector.broadcast %177 : vector<1x128xf32> to vector<32x128xf32>
    %179 = arith.addf %176, %178 : vector<32x128xf32>
    %c0_153 = arith.constant 0 : index
    %c0_154 = arith.constant 0 : index
    %180 = vector.load %arg9[%c0_153, %c0_154] : memref<1x128xf32, #tpu.memory_space<vmem>>, vector<1x128xf32>
    %181 = vector.broadcast %180 : vector<1x128xf32> to vector<32x128xf32>
    %182 = arith.mulf %179, %181 : vector<32x128xf32>
    %cst_155 = arith.constant dense<0.000000e+00> : vector<32xf32>
    %183 = vector.multi_reduction <add>, %182, %cst_155 [1] : vector<32x128xf32> to vector<32xf32>
    %184 = vector.shape_cast %183 : vector<32xf32> to vector<32x1xf32>
    %c0_156 = arith.constant 0 : index
    %c0_157 = arith.constant 0 : index
    %185 = vector.load %arg10[%c0_156, %c0_157] : memref<1x1xf32, #tpu.memory_space<vmem>>, vector<1x1xf32>
    %186 = vector.broadcast %185 : vector<1x1xf32> to vector<32x1xf32>
    %187 = arith.addf %184, %186 : vector<32x1xf32>
    %c0_158 = arith.constant 0 : index
    %c0_159 = arith.constant 0 : index
    %188 = vector.load %arg11[%c0_158, %c0_159] : memref<32x1xf32, #tpu.memory_space<vmem>>, vector<32x1xf32>
    tpu.vector_store %arg11[%c0_158, %c0_159], %187 {strides = array<i32>} : memref<32x1xf32, #tpu.memory_space<vmem>>, vector<32x1xf32>,
    return
  }
}

</mosaic_0001>

<bundles_post_ra>
// kernel: forward.1
= control target key start
LH: loop header
LB: loop body
LE: loop exit
PB: predicated region body
PF: predicated region fallthrough
CT: control target
= control target key end

     0   :  { %vm1114_vm0 = vcmask 1043456   ;;  %vm1089_vm1 = vcmask 64512   ;;  %vm13195_vm2 = vcmask 523264   ;;  %s13175_s0 = inlined_call_operand.vmem [shape: bf16[512,8], index: 0, kind: input, shape index: {}]   ;;  %s13176_s1 = inlined_call_operand.vmem [shape: bf16[9,128,512], index: 1, kind: input, shape index: {}]   ;;  %s13177_s2 = inlined_call_operand.vmem [shape: bf16[9,8,64], index: 2, kind: input, shape index: {}]   ;;  %s13178_s3 = inlined_call_operand.vmem [shape: f32[1,64], index: 3, kind: input, shape index: {}]   ;;  %s13179_s6 = inlined_call_operand.vmem [shape: bf16[9,32,128], index: 6, kind: input, shape index: {}]   ;;  %s13180_s4 = inlined_call_operand.vmem [shape: f32[1,64], index: 4, kind: input, shape index: {}]   ;;  %s13181_s5 = inlined_call_operand.vmem [shape: f32[1,64], index: 5, kind: input, shape index: {}]   ;;  %s13182_s7 = inlined_call_operand.vmem [shape: bf16[9,64,128], index: 7, kind: input, shape index: {}]   ;;  %s13183_s10 = inlined_call_operand.<no memory space> [shape: f32[1,1], index: 10, kind: input, shape index: {}]   ;;  %s13184_s8 = inlined_call_operand.vmem [shape: f32[1,128], index: 8, kind: input, shape index: {}]   ;;  %s13185_s9 = inlined_call_operand.vmem [shape: f32[1,128], index: 9, kind: input, shape index: {}]   ;;  %s13186_s11 = inlined_call_operand.vmem [shape: f32[32,1], index: 11, kind: output, shape index: {}]  }
   0x1   :  { %v10319_v0 = vld [vmem:[%s13175_s0 + $0x40] sm:$0xff]   ;;  %v10342_v4 = vld [vmem:[%s13175_s0 + $0x48] sm:$0xff]   ;;  %v10366_v8 = vld [vmem:[%s13175_s0 + $0x50] sm:$0xff]  }
   0x2   :  { %v10324_v1 = vld [vmem:[%s13175_s0 + $0xc0] sm:$0xff]   ;;  %7644 = vmatprep.subr.bf16.mxu0 %v10319_v0  ;;  %v10348_v5 = vld [vmem:[%s13175_s0 + $0xc8] sm:$0xff]   ;;  %v10372_v9 = vld [vmem:[%s13175_s0 + $0xd0] sm:$0xff]  }
   0x3   :  { %v10330_v2 = vld [vmem:[%s13175_s0] sm:$0xff]   ;;  %7708 = vmatprep.subr.bf16.mxu1 %v10324_v1  ;;  %v10354_v6 = vld [vmem:[%s13175_s0 + $0x8] sm:$0xff]   ;;  %v10378_v10 = vld [vmem:[%s13175_s0 + $0x10] sm:$0xff]  }
   0x4   :  { %v10336_v3 = vld [vmem:[%s13175_s0 + $0x80] sm:$0xff]   ;;  %7645 = vmatpush3.bf16.msra.mxu0 %v10330_v2  ;;  %v10360_v7 = vld [vmem:[%s13175_s0 + $0x88] sm:$0xff]   ;;  %v10384_v11 = vld [vmem:[%s13175_s0 + $0x90] sm:$0xff]  }
   0x5   :  { %7709 = vmatpush3.bf16.msra.mxu1 %v10336_v3  ;;  %7646 = vmatprep.subr.bf16.mxu0 %v10342_v4  ;;  %v10390_v12 = vld [vmem:[%s13175_s0 + $0x58] sm:$0xff]   ;;  %v10414_v16 = vld [vmem:[%s13175_s0 + $0x60] sm:$0xff]   ;;  %v10438_v20 = vld [vmem:[%s13175_s0 + $0x68] sm:$0xff]  }
   0x6   :  { %7710 = vmatprep.subr.bf16.mxu1 %v10348_v5  ;;  %v10396_v13 = vld [vmem:[%s13175_s0 + $0xd8] sm:$0xff]   ;;  %v10420_v17 = vld [vmem:[%s13175_s0 + $0xe0] sm:$0xff]   ;;  %v10444_v21 = vld [vmem:[%s13175_s0 + $0xe8] sm:$0xff]  }
   0x7   :  { %v10402_v14 = vld [vmem:[%s13175_s0 + $0x18] sm:$0xff]   ;;  %v10426_v18 = vld [vmem:[%s13175_s0 + $0x20] sm:$0xff]   ;;  %v10450_v22 = vld [vmem:[%s13175_s0 + $0x28] sm:$0xff]  }
   0x8   :  { %7647 = vmatpush3.bf16.msra.mxu0 %v10354_v6  ;;  %v10408_v15 = vld [vmem:[%s13175_s0 + $0x98] sm:$0xff]   ;;  %v10432_v19 = vld [vmem:[%s13175_s0 + $0xa0] sm:$0xff]   ;;  %v10456_v23 = vld [vmem:[%s13175_s0 + $0xa8] sm:$0xff]  }
   0x9   :  { %7711 = vmatpush3.bf16.msra.mxu1 %v10360_v7  ;;  %7648 = vmatprep.subr.bf16.mxu0 %v10366_v8  ;;  %v10462_v24 = vld [vmem:[%s13175_s0 + $0x70] sm:$0xff]   ;;  %v10486_v28 = vld [vmem:[%s13175_s0 + $0x78] sm:$0xff]  }
   0xa   :  { %7712 = vmatprep.subr.bf16.mxu1 %v10372_v9  ;;  %v10468_v25 = vld [vmem:[%s13175_s0 + $0xf0] sm:$0xff]   ;;  %v10492_v29 = vld [vmem:[%s13175_s0 + $0xf8] sm:$0xff]  }
   0xb   :  { %v10474_v26 = vld [vmem:[%s13175_s0 + $0x30] sm:$0xff]   ;;  %v10498_v30 = vld [vmem:[%s13175_s0 + $0x38] sm:$0xff]  }
   0xc   :  { %7649 = vmatpush3.bf16.msra.mxu0 %v10378_v10  ;;  %v10480_v27 = vld [vmem:[%s13175_s0 + $0xb0] sm:$0xff]   ;;  %v10504_v31 = vld [vmem:[%s13175_s0 + $0xb8] sm:$0xff]  }
   0xd   :  { %7713 = vmatpush3.bf16.msra.mxu1 %v10384_v11  ;;  %7650 = vmatprep.subr.bf16.mxu0 %v10390_v12  ;;  %v9688_v32 = vld [vmem:[%s13176_s1] ss:$16 sps:$4 sm:$0xff]   ;;  %v9690_v33 = vld [vmem:[%s13176_s1 + $0x4] ss:$16 sps:$4 sm:$0xff]   ;;  %v9691_v34 = vld [vmem:[%s13176_s1 + $0x8] ss:$16 sps:$4 sm:$0xff]  }
   0xe   :  { %7714 = vmatprep.subr.bf16.mxu1 %v10396_v13  ;;  %v9693_v35 = vld [vmem:[%s13176_s1 + $0xc] ss:$16 sps:$4 sm:$0xff]   ;;  %521 = vmatprep.mubr.bf16.mxu0 %v9690_v33  ;;  %v9694_v36 = vld [vmem:[%s13176_s1 + $0x24] ss:$16 sps:$4 sm:$0xff]   ;;  %v9698_v38 = vld [vmem:[%s13176_s1 + $0x20] ss:$16 sps:$4 sm:$0xff]  }
   0xf   :  { %618 = vmatprep.mubr.bf16.mxu1 %v9693_v35  ;;  %v9696_v37 = vld [vmem:[%s13176_s1 + $0x2c] ss:$16 sps:$4 sm:$0xff]   ;;  %v9699_v39 = vld [vmem:[%s13176_s1 + $0x28] ss:$16 sps:$4 sm:$0xff]   ;;  %v9700_v40 = vld [vmem:[%s13176_s1 + $0x44] ss:$16 sps:$4 sm:$0xff]  }
  0x10   :  { %7651 = vmatpush3.bf16.msra.mxu0 %v10402_v14  ;;  %v9702_v41 = vld [vmem:[%s13176_s1 + $0x4c] ss:$16 sps:$4 sm:$0xff]   ;;  %v9704_v42 = vld [vmem:[%s13176_s1 + $0x40] ss:$16 sps:$4 sm:$0xff]   ;;  %v9705_v43 = vld [vmem:[%s13176_s1 + $0x48] ss:$16 sps:$4 sm:$0xff]  }
  0x11   :  { %7715 = vmatpush3.bf16.msra.mxu1 %v10408_v15  ;;  %7652 = vmatprep.subr.bf16.mxu0 %v10414_v16  ;;  %v9706_v44 = vld [vmem:[%s13176_s1 + $0x64] ss:$16 sps:$4 sm:$0xff]   ;;  %v9708_v45 = vld [vmem:[%s13176_s1 + $0x6c] ss:$16 sps:$4 sm:$0xff]   ;;  %v9710_v46 = vld [vmem:[%s13176_s1 + $0x60] ss:$16 sps:$4 sm:$0xff]  }
  0x12   :  { %7716 = vmatprep.subr.bf16.mxu1 %v10420_v17  ;;  %v9711_v47 = vld [vmem:[%s13176_s1 + $0x68] ss:$16 sps:$4 sm:$0xff]   ;;  %v9712_v48 = vld [vmem:[%s13176_s1 + $0x84] ss:$16 sps:$4 sm:$0xff]   ;;  %v9714_v49 = vld [vmem:[%s13176_s1 + $0x8c] ss:$16 sps:$4 sm:$0xff]  }
  0x13   :  { %v9716_v50 = vld [vmem:[%s13176_s1 + $0x80] ss:$16 sps:$4 sm:$0xff]   ;;  %v9717_v51 = vld [vmem:[%s13176_s1 + $0x88] ss:$16 sps:$4 sm:$0xff]   ;;  %v9718_v52 = vld [vmem:[%s13176_s1 + $0xa4] ss:$16 sps:$4 sm:$0xff]  }
  0x14   :  { %7653 = vmatpush3.bf16.msra.mxu0 %v10426_v18  ;;  %v9720_v53 = vld [vmem:[%s13176_s1 + $0xac] ss:$16 sps:$4 sm:$0xff]   ;;  %v9722_v54 = vld [vmem:[%s13176_s1 + $0xa0] ss:$16 sps:$4 sm:$0xff]   ;;  %v9723_v55 = vld [vmem:[%s13176_s1 + $0xa8] ss:$16 sps:$4 sm:$0xff]  }
  0x15   :  { %7717 = vmatpush3.bf16.msra.mxu1 %v10432_v19  ;;  %7654 = vmatprep.subr.bf16.mxu0 %v10438_v20  ;;  %v9724_v56 = vld [vmem:[%s13176_s1 + $0xc4] ss:$16 sps:$4 sm:$0xff]   ;;  %v9726_v57 = vld [vmem:[%s13176_s1 + $0xcc] ss:$16 sps:$4 sm:$0xff]   ;;  %v9728_v58 = vld [vmem:[%s13176_s1 + $0xc0] ss:$16 sps:$4 sm:$0xff]  }
  0x16   :  { %7718 = vmatprep.subr.bf16.mxu1 %v10444_v21  ;;  %v9729_v59 = vld [vmem:[%s13176_s1 + $0xc8] ss:$16 sps:$4 sm:$0xff]   ;;  %v9730_v60 = vld [vmem:[%s13176_s1 + $0xe4] ss:$16 sps:$4 sm:$0xff]   ;;  %v9732_v61 = vld [vmem:[%s13176_s1 + $0xec] ss:$16 sps:$4 sm:$0xff]  }
  0x17   :  { %v9734_v62 = vld [vmem:[%s13176_s1 + $0xe0] ss:$16 sps:$4 sm:$0xff]   ;;  %v9735_v63 = vld [vmem:[%s13176_s1 + $0xe8] ss:$16 sps:$4 sm:$0xff]   ;;  %v9739_v33 = vld [vmem:[%s13176_s1 + $0x124] ss:$16 sps:$4 sm:$0xff]  }
  0x18   :  { %7655 = vmatpush3.bf16.msra.mxu0 %v10450_v22  ;;  %v9747_v35 = vld [vmem:[%s13176_s1 + $0x14c] ss:$16 sps:$4 sm:$0xff]  }
  0x19   :  { %7719 = vmatpush3.bf16.msra.mxu1 %v10456_v23  ;;  %7656 = vmatprep.subr.bf16.mxu0 %v10462_v24 }
  0x1a   :  { %7720 = vmatprep.subr.bf16.mxu1 %v10468_v25 }
  0x1c   :  { %7657 = vmatpush3.bf16.msra.mxu0 %v10474_v26 }
  0x1d   :  { %7721 = vmatpush3.bf16.msra.mxu1 %v10480_v27  ;;  %7658 = vmatprep.subr.bf16.mxu0 %v10486_v28 }
  0x1e   :  { %7722 = vmatprep.subr.bf16.mxu1 %v10492_v29 }
  0x20   :  { %7659 = vmatpush3.bf16.msra.mxu0 %v10498_v30 }
  0x21   :  { %7723 = vmatpush3.bf16.msra.mxu1 %v10504_v31  ;;  %7772 = vmatprep.subr.bf16.mxu0 %v10319_v0 }
  0x22   :  { %9471 = vmatprep.subr.bf16.mxu1 %v10324_v1 }
  0x23   :  { %522 = vmatmul.mubr.bf16.vlgmr.msra.gmra.mrb[0].mxu0 %v9688_v32  ;;  %v9736_v32 = vld [vmem:[%s13176_s1 + $0x100] ss:$16 sps:$4 sm:$0xff]  }
  0x24   :  { %619 = vmatmul.mubr.bf16.vlgmr.msra.gmra.mrb[0].mxu1 %v9691_v34  ;;  %529 = vmatprep.mubr.bf16.mxu0 %v9694_v36  ;;  %v9741_v34 = vld [vmem:[%s13176_s1 + $0x128] ss:$16 sps:$4 sm:$0xff]   ;;  %v9744_v36 = vld [vmem:[%s13176_s1 + $0x120] ss:$16 sps:$4 sm:$0xff]  }
  0x25   :  { %626 = vmatprep.mubr.bf16.mxu1 %v9696_v37  ;;  %7773 = vmatpush3.bf16.msra.mxu0 %v10330_v2  ;;  %v9745_v37 = vld [vmem:[%s13176_s1 + $0x144] ss:$16 sps:$4 sm:$0xff]  }
  0x26   :  { %7774 = vmatprep.subr.bf16.mxu0 %v10342_v4  ;;  %9479 = vmatpush3.bf16.msra.mxu1 %v10336_v3 }
  0x27   :  { %9472 = vmatprep.subr.bf16.mxu1 %v10348_v5 }
  0x29   :  { %7775 = vmatpush3.bf16.msra.mxu0 %v10354_v6 }
  0x2a   :  { %7776 = vmatprep.subr.bf16.mxu0 %v10366_v8  ;;  %9480 = vmatpush3.bf16.msra.mxu1 %v10360_v7 }
  0x2b   :  { %530 = vmatmul.mubr.bf16.gmra.mrb[4].mxu0 %v9698_v38  ;;  %9473 = vmatprep.subr.bf16.mxu1 %v10372_v9  ;;  %v9750_v38 = vld [vmem:[%s13176_s1 + $0x148] ss:$16 sps:$4 sm:$0xff]  }
  0x2c   :  { %627 = vmatmul.mubr.bf16.gmra.mrb[4].mxu1 %v9699_v39  ;;  %537 = vmatprep.mubr.bf16.mxu0 %v9700_v40  ;;  %v9753_v39 = vld [vmem:[%s13176_s1 + $0x16c] ss:$16 sps:$4 sm:$0xff]   ;;  %v10180_v40 = vld [vmem:[%s13175_s0 + $0x50] sm:$0xff]  }
  0x2d   :  { %634 = vmatprep.mubr.bf16.mxu1 %v9702_v41  ;;  %7777 = vmatpush3.bf16.msra.mxu0 %v10378_v10  ;;  %v10181_v41 = vld [vmem:[%s13175_s0 + $0x10] sm:$0xff]  }
  0x2e   :  { %7778 = vmatprep.subr.bf16.mxu0 %v10390_v12  ;;  %9481 = vmatpush3.bf16.msra.mxu1 %v10384_v11 }
  0x2f   :  { %9474 = vmatprep.subr.bf16.mxu1 %v10396_v13 }
  0x31   :  { %7779 = vmatpush3.bf16.msra.mxu0 %v10402_v14 }
  0x32   :  { %7780 = vmatprep.subr.bf16.mxu0 %v10414_v16  ;;  %9482 = vmatpush3.bf16.msra.mxu1 %v10408_v15 }
  0x33   :  { %538 = vmatmul.mubr.bf16.gmra.mrb[8].mxu0 %v9704_v42  ;;  %9475 = vmatprep.subr.bf16.mxu1 %v10420_v17  ;;  %v10182_v42 = vld [vmem:[%s13175_s0 + $0x58] sm:$0xff]  }
  0x34   :  { %635 = vmatmul.mubr.bf16.gmra.mrb[8].mxu1 %v9705_v43  ;;  %545 = vmatprep.mubr.bf16.mxu0 %v9706_v44  ;;  %v9790_v43 = vld [vmem:[%s13176_s1 + $0x244] ss:$16 sps:$4 sm:$0xff]   ;;  %v10183_v44 = vld [vmem:[%s13175_s0 + $0x18] sm:$0xff]  }
  0x35   :  { %642 = vmatprep.mubr.bf16.mxu1 %v9708_v45  ;;  %7781 = vmatpush3.bf16.msra.mxu0 %v10426_v18  ;;  %v9792_v45 = vld [vmem:[%s13176_s1 + $0x240] ss:$16 sps:$4 sm:$0xff]  }
  0x36   :  { %7782 = vmatprep.subr.bf16.mxu0 %v10438_v20  ;;  %9483 = vmatpush3.bf16.msra.mxu1 %v10432_v19 }
  0x37   :  { %9476 = vmatprep.subr.bf16.mxu1 %v10444_v21 }
  0x39   :  { %7783 = vmatpush3.bf16.msra.mxu0 %v10450_v22 }
  0x3a   :  { %7784 = vmatprep.subr.bf16.mxu0 %v10462_v24  ;;  %9484 = vmatpush3.bf16.msra.mxu1 %v10456_v23 }
  0x3b   :  { %546 = vmatmul.mubr.bf16.gmra.mrb[12].mxu0 %v9710_v46  ;;  %9477 = vmatprep.subr.bf16.mxu1 %v10468_v25  ;;  %v10184_v46 = vld [vmem:[%s13175_s0 + $0x60] sm:$0xff]  }
  0x3c   :  { %643 = vmatmul.mubr.bf16.gmra.mrb[12].mxu1 %v9711_v47  ;;  %553 = vmatprep.mubr.bf16.mxu0 %v9712_v48  ;;  %v10185_v47 = vld [vmem:[%s13175_s0 + $0x20] sm:$0xff]   ;;  %v10186_v48 = vld [vmem:[%s13175_s0 + $0x68] sm:$0xff]  }
  0x3d   :  { %650 = vmatprep.mubr.bf16.mxu1 %v9714_v49  ;;  %7785 = vmatpush3.bf16.msra.mxu0 %v10474_v26  ;;  %v9793_v49 = vld [vmem:[%s13176_s1 + $0x264] ss:$16 sps:$4 sm:$0xff]  }
  0x3e   :  { %7786 = vmatprep.subr.bf16.mxu0 %v10486_v28  ;;  %9485 = vmatpush3.bf16.msra.mxu1 %v10480_v27 }
  0x3f   :  { %9478 = vmatprep.subr.bf16.mxu1 %v10492_v29 }
  0x41   :  { %7787 = vmatpush3.bf16.msra.mxu0 %v10498_v30 }
  0x42   :  { %9486 = vmatpush3.bf16.msra.mxu1 %v10504_v31  ;;  %7836 = vmatprep.subr.bf16.mxu0 %v10324_v1  ;;  %v9743_v1 = vld [vmem:[%s13176_s1 + $0x12c] ss:$16 sps:$4 sm:$0xff]  }
  0x43   :  { %554 = vmatmul.mubr.bf16.gmra.mrb[16].mxu0 %v9716_v50  ;;  %7918 = vmatprep.subr.bf16.mxu1 %v10319_v0  ;;  %v9738_v0 = vld [vmem:[%s13176_s1 + $0x104] ss:$16 sps:$4 sm:$0xff]   ;;  %v10187_v50 = vld [vmem:[%s13175_s0 + $0x28] sm:$0xff]  }
  0x44   :  { %651 = vmatmul.mubr.bf16.gmra.mrb[16].mxu1 %v9717_v51  ;;  %561 = vmatprep.mubr.bf16.mxu0 %v9718_v52  ;;  %v9795_v51 = vld [vmem:[%s13176_s1 + $0x260] ss:$16 sps:$4 sm:$0xff]  }
  0x45   :  { %658 = vmatprep.mubr.bf16.mxu1 %v9720_v53  ;;  %v10188_v52 = vld [vmem:[%s13175_s0 + $0x70] sm:$0xff]  }
  0x46   :  { %v10189_v53 = vld [vmem:[%s13175_s0 + $0x30] sm:$0xff]  }
  0x4b   :  { %562 = vmatmul.mubr.bf16.gmra.mrb[20].mxu0 %v9722_v54  ;;  %v10190_v54 = vld [vmem:[%s13175_s0 + $0x78] sm:$0xff]  }
  0x4c   :  { %659 = vmatmul.mubr.bf16.gmra.mrb[20].mxu1 %v9723_v55  ;;  %569 = vmatprep.mubr.bf16.mxu0 %v9724_v56  ;;  %v9796_v55 = vld [vmem:[%s13176_s1 + $0x284] ss:$16 sps:$4 sm:$0xff]   ;;  %v10191_v56 = vld [vmem:[%s13175_s0 + $0x38] sm:$0xff]  }
  0x4d   :  { %666 = vmatprep.mubr.bf16.mxu1 %v9726_v57  ;;  %v9798_v57 = vld [vmem:[%s13176_s1 + $0x280] ss:$16 sps:$4 sm:$0xff]  }
  0x53   :  { %570 = vmatmul.mubr.bf16.gmra.mrb[24].mxu0 %v9728_v58  ;;  %v10848_v58 = vld [vmem:[%s13175_s0 + $0xc0] sm:$0xff]  }
  0x54   :  { %667 = vmatmul.mubr.bf16.gmra.mrb[24].mxu1 %v9729_v59  ;;  %577 = vmatprep.mubr.bf16.mxu0 %v9730_v60  ;;  %v9799_v59 = vld [vmem:[%s13176_s1 + $0x2a4] ss:$16 sps:$4 sm:$0xff]   ;;  %v9801_v60 = vld [vmem:[%s13176_s1 + $0x2a0] ss:$16 sps:$4 sm:$0xff]  }
  0x55   :  { %674 = vmatprep.mubr.bf16.mxu1 %v9732_v61  ;;  %v9802_v61 = vld [vmem:[%s13176_s1 + $0x2c4] ss:$16 sps:$4 sm:$0xff]  }
  0x5b   :  { %578 = vmatmul.mubr.bf16.gmra.mrb[28].mxu0 %v9734_v62  ;;  %v9804_v62 = vld [vmem:[%s13176_s1 + $0x2c0] ss:$16 sps:$4 sm:$0xff]  }
  0x5c   :  { %675 = vmatmul.mubr.bf16.gmra.mrb[28].mxu1 %v9735_v63  ;;  %917 = vmatprep.mubr.bf16.mxu0 %v9738_v0  ;;  %v9805_v63 = vld [vmem:[%s13176_s1 + $0x2e4] ss:$16 sps:$4 sm:$0xff]   ;;  %v9807_v0 = vld [vmem:[%s13176_s1 + $0x2e0] ss:$16 sps:$4 sm:$0xff]  }
  0x5d   :  { %1022 = vmatprep.mubr.bf16.mxu1 %v9743_v1  ;;  %v9808_v1 = vld [vmem:[%s13176_s1 + $0x300] ss:$16 sps:$4 sm:$0xff]  }
  0x63   :  { %918 = vmatmul.mubr.bf16.vlgmr.msra.gmra.mrb[32].mxu0 %v9736_v32  ;;  %v9810_v32 = vld [vmem:[%s13176_s1 + $0x304] ss:$16 sps:$4 sm:$0xff]  }
  0x64   :  { %925 = vmatprep.mubr.bf16.mxu0 %v9739_v33  ;;  %1023 = vmatmul.mubr.bf16.vlgmr.msra.gmra.mrb[32].mxu1 %v9741_v34  ;;  %v10878_v33 = vld [vmem:[%s13175_s0 + $0x80] sm:$0xff]   ;;  %v10884_v34 = vld [vmem:[%s13175_s0 + $0xc8] sm:$0xff]  }
  0x65   :  { %1030 = vmatprep.mubr.bf16.mxu1 %v9747_v35  ;;  %7837 = vmatpush3.bf16.msra.mxu0 %v10336_v3  ;;  %v9751_v3 = vld [vmem:[%s13176_s1 + $0x164] ss:$16 sps:$4 sm:$0xff]  }
  0x66   :  { %7838 = vmatprep.subr.bf16.mxu0 %v10348_v5  ;;  %7919 = vmatpush3.bf16.msra.mxu1 %v10330_v2  ;;  %v9749_v2 = vld [vmem:[%s13176_s1 + $0x140] ss:$16 sps:$4 sm:$0xff]   ;;  %v9759_v5 = vld [vmem:[%s13176_s1 + $0x18c] ss:$16 sps:$4 sm:$0xff]   ;;  %v9811_v35 = vld [vmem:[%s13176_s1 + $0x324] ss:$16 sps:$4 sm:$0xff]  }
  0x67   :  { %7920 = vmatprep.subr.bf16.mxu1 %v10342_v4  ;;  %v9756_v4 = vld [vmem:[%s13176_s1 + $0x168] ss:$16 sps:$4 sm:$0xff]  }
  0x69   :  { %7839 = vmatpush3.bf16.msra.mxu0 %v10360_v7  ;;  %v9757_v7 = vld [vmem:[%s13176_s1 + $0x184] ss:$16 sps:$4 sm:$0xff]  }
  0x6a   :  { %7840 = vmatprep.subr.bf16.mxu0 %v10372_v9  ;;  %7921 = vmatpush3.bf16.msra.mxu1 %v10354_v6  ;;  %v9755_v6 = vld [vmem:[%s13176_s1 + $0x160] ss:$16 sps:$4 sm:$0xff]   ;;  %v9765_v9 = vld [vmem:[%s13176_s1 + $0x1ac] ss:$16 sps:$4 sm:$0xff]  }
  0x6b   :  { %926 = vmatmul.mubr.bf16.gmra.mrb[36].mxu0 %v9744_v36  ;;  %7922 = vmatprep.subr.bf16.mxu1 %v10366_v8  ;;  %v9762_v8 = vld [vmem:[%s13176_s1 + $0x188] ss:$16 sps:$4 sm:$0xff]  }
  0x6c   :  { %933 = vmatprep.mubr.bf16.mxu0 %v9745_v37  ;;  %1031 = vmatmul.mubr.bf16.gmra.mrb[36].mxu1 %v9750_v38  ;;  %v10893_v36 = vld [vmem:[%s13175_s0 + $0x88] sm:$0xff]   ;;  %v9813_v37 = vld [vmem:[%s13176_s1 + $0x320] ss:$16 sps:$4 sm:$0xff]  }
  0x6d   :  { %1038 = vmatprep.mubr.bf16.mxu1 %v9753_v39  ;;  %7841 = vmatpush3.bf16.msra.mxu0 %v10384_v11  ;;  %v9763_v11 = vld [vmem:[%s13176_s1 + $0x1a4] ss:$16 sps:$4 sm:$0xff]  }
  0x6e   :  { %7842 = vmatprep.subr.bf16.mxu0 %v10396_v13  ;;  %7923 = vmatpush3.bf16.msra.mxu1 %v10378_v10  ;;  %v9761_v10 = vld [vmem:[%s13176_s1 + $0x180] ss:$16 sps:$4 sm:$0xff]   ;;  %v9771_v13 = vld [vmem:[%s13176_s1 + $0x1cc] ss:$16 sps:$4 sm:$0xff]  }
  0x6f   :  { %7924 = vmatprep.subr.bf16.mxu1 %v10390_v12  ;;  %v9768_v12 = vld [vmem:[%s13176_s1 + $0x1a8] ss:$16 sps:$4 sm:$0xff]   ;;  %v10902_v38 = vld [vmem:[%s13175_s0 + $0xd0] sm:$0xff]  }
  0x70   :  { %v10908_v39 = vld [vmem:[%s13175_s0 + $0x90] sm:$0xff]  }
  0x71   :  { %7843 = vmatpush3.bf16.msra.mxu0 %v10408_v15  ;;  %v9767_v15 = vld [vmem:[%s13176_s1 + $0x1a0] ss:$16 sps:$4 sm:$0xff]  }
  0x72   :  { %7844 = vmatprep.subr.bf16.mxu0 %v10420_v17  ;;  %7925 = vmatpush3.bf16.msra.mxu1 %v10402_v14  ;;  %v10737_v14 = vld [vmem:[%s13175_s0 + $0x40] sm:$0xff]   ;;  %v9774_v17 = vld [vmem:[%s13176_s1 + $0x1c8] ss:$16 sps:$4 sm:$0xff]  }
  0x73   :  { %934 = vmatmul.mubr.bf16.gmra.mrb[40].mxu0 %v9749_v2  ;;  %7926 = vmatprep.subr.bf16.mxu1 %v10414_v16  ;;  %v9769_v16 = vld [vmem:[%s13176_s1 + $0x1c4] ss:$16 sps:$4 sm:$0xff]   ;;  %v10914_v2 = vld [vmem:[%s13175_s0 + $0xd8] sm:$0xff]  }
  0x74   :  { %941 = vmatprep.mubr.bf16.mxu0 %v9751_v3  ;;  %1039 = vmatmul.mubr.bf16.gmra.mrb[40].mxu1 %v9756_v4  ;;  %v9814_v3 = vld [vmem:[%s13176_s1 + $0x344] ss:$16 sps:$4 sm:$0xff]   ;;  %v10923_v4 = vld [vmem:[%s13175_s0 + $0x98] sm:$0xff]  }
  0x75   :  { %1046 = vmatprep.mubr.bf16.mxu1 %v9759_v5  ;;  %7845 = vmatpush3.bf16.msra.mxu0 %v10432_v19  ;;  %v9773_v19 = vld [vmem:[%s13176_s1 + $0x1c0] ss:$16 sps:$4 sm:$0xff]  }
  0x76   :  { %7846 = vmatprep.subr.bf16.mxu0 %v10444_v21  ;;  %7927 = vmatpush3.bf16.msra.mxu1 %v10426_v18  ;;  %v9777_v18 = vld [vmem:[%s13176_s1 + $0x1ec] ss:$16 sps:$4 sm:$0xff]   ;;  %v9780_v21 = vld [vmem:[%s13176_s1 + $0x1e8] ss:$16 sps:$4 sm:$0xff]   ;;  %v9816_v5 = vld [vmem:[%s13176_s1 + $0x340] ss:$16 sps:$4 sm:$0xff]  }
  0x77   :  { %7928 = vmatprep.subr.bf16.mxu1 %v10438_v20  ;;  %v9775_v20 = vld [vmem:[%s13176_s1 + $0x1e4] ss:$16 sps:$4 sm:$0xff]  }
  0x79   :  { %7847 = vmatpush3.bf16.msra.mxu0 %v10456_v23  ;;  %v9783_v23 = vld [vmem:[%s13176_s1 + $0x10c] ss:$16 sps:$4 sm:$0xff]  }
  0x7a   :  { %7848 = vmatprep.subr.bf16.mxu0 %v10468_v25  ;;  %7929 = vmatpush3.bf16.msra.mxu1 %v10450_v22  ;;  %v9779_v22 = vld [vmem:[%s13176_s1 + $0x1e0] ss:$16 sps:$4 sm:$0xff]  }
  0x7b   :  { %942 = vmatmul.mubr.bf16.gmra.mrb[44].mxu0 %v9755_v6  ;;  %7930 = vmatprep.subr.bf16.mxu1 %v10462_v24  ;;  %v9786_v24 = vld [vmem:[%s13176_s1 + $0x204] ss:$16 sps:$4 sm:$0xff]   ;;  %v9784_v25 = vld [vmem:[%s13176_s1 + $0x200] ss:$16 sps:$4 sm:$0xff]  }
  0x7c   :  { %949 = vmatprep.mubr.bf16.mxu0 %v9757_v7  ;;  %1047 = vmatmul.mubr.bf16.gmra.mrb[44].mxu1 %v9762_v8  ;;  %v10932_v6 = vld [vmem:[%s13175_s0 + $0xe0] sm:$0xff]   ;;  %v10944_v8 = vld [vmem:[%s13175_s0 + $0xe8] sm:$0xff]  }
  0x7d   :  { %1054 = vmatprep.mubr.bf16.mxu1 %v9765_v9  ;;  %7849 = vmatpush3.bf16.msra.mxu0 %v10480_v27  ;;  %v10177_v27 = vld [vmem:[%s13175_s0] sm:$0xff]   ;;  %13196 = vst [vmem:[#allocation3_spill] sm:$0xff] %v10944_v8 }
  0x7e   :  { %7850 = vmatprep.subr.bf16.mxu0 %v10492_v29  ;;  %7931 = vmatpush3.bf16.msra.mxu1 %v10474_v26  ;;  %v9781_v26 = vld [vmem:[%s13176_s1 + $0x108] ss:$16 sps:$4 sm:$0xff]   ;;  %v9787_v29 = vld [vmem:[%s13176_s1 + $0x224] ss:$16 sps:$4 sm:$0xff]  }
  0x7f   :  { %7932 = vmatprep.subr.bf16.mxu1 %v10486_v28  ;;  %v10178_v28 = vld [vmem:[%s13175_s0 + $0x48] sm:$0xff]   ;;  %v10938_v7 = vld [vmem:[%s13175_s0 + $0xa0] sm:$0xff]  }
  0x80   :  { %v9817_v9 = vld [vmem:[%s13176_s1 + $0x364] ss:$16 sps:$4 sm:$0xff]  }
  0x81   :  { %7851 = vmatpush3.bf16.msra.mxu0 %v10504_v31  ;;  %v9789_v31 = vld [vmem:[%s13176_s1 + $0x220] ss:$16 sps:$4 sm:$0xff]  }
  0x82   :  { %7933 = vmatpush3.bf16.msra.mxu1 %v10498_v30  ;;  %v10179_v30 = vld [vmem:[%s13175_s0 + $0x8] sm:$0xff]  }
  0x83   :  { %950 = vmatmul.mubr.bf16.gmra.mrb[48].mxu0 %v9761_v10  ;;  %8055 = vmatprep.subr.bf16.mxu1 %v10737_v14  ;;  %v10953_v10 = vld [vmem:[%s13175_s0 + $0xa8] sm:$0xff]  }
  0x84   :  { %957 = vmatprep.mubr.bf16.mxu0 %v9763_v11  ;;  %1055 = vmatmul.mubr.bf16.gmra.mrb[48].mxu1 %v9768_v12  ;;  %13197 = vst [vmem:[#allocation4_spill] sm:$0xff] %v10953_v10  ;;  %v9819_v11 = vld [vmem:[%s13176_s1 + $0x360] ss:$16 sps:$4 sm:$0xff]  }
  0x85   :  { %1062 = vmatprep.mubr.bf16.mxu1 %v9771_v13  ;;  %v10962_v12 = vld [vmem:[%s13175_s0 + $0xf0] sm:$0xff]  }
  0x86   :  { %13198 = vst [vmem:[#allocation5_spill] sm:$0xff] %v10962_v12 }
  0x8b   :  { %958 = vmatmul.mubr.bf16.gmra.mrb[52].mxu0 %v9767_v15 }
  0x8c   :  { %965 = vmatprep.mubr.bf16.mxu0 %v9769_v16  ;;  %1063 = vmatmul.mubr.bf16.gmra.mrb[52].mxu1 %v9774_v17 }
  0x8d   :  { %1070 = vmatprep.mubr.bf16.mxu1 %v9777_v18 }
  0x93   :  { %966 = vmatmul.mubr.bf16.gmra.mrb[56].mxu0 %v9773_v19 }
  0x94   :  { %973 = vmatprep.mubr.bf16.mxu0 %v9775_v20  ;;  %1071 = vmatmul.mubr.bf16.gmra.mrb[56].mxu1 %v9780_v21  ;;  %v10968_v20 = vld [vmem:[%s13175_s0 + $0xb0] sm:$0xff]  }
  0x95   :  { %1564 = vmatprep.mubr.bf16.mxu1 %v9786_v24  ;;  %13199 = vst [vmem:[#allocation6_spill] sm:$0xff] %v10968_v20  ;;  %v10974_v24 = vld [vmem:[%s13175_s0 + $0xf8] sm:$0xff]  }
  0x96   :  { %13200 = vst [vmem:[#allocation7_spill] sm:$0xff] %v10974_v24 }
  0x9b   :  { %974 = vmatmul.mubr.bf16.gmra.mrb[60].mxu0 %v9779_v22 }
  0x9c   :  { %1014 = vmatprep.mubr.bf16.mxu0 %v9783_v23  ;;  %1565 = vmatmul.mubr.bf16.vlgmr.msra.gmra.mrb[60].mxu1 %v9784_v25 }
  0x9d   :  { %8056 = vmatpush3.bf16.msra.mxu1 %v10177_v27  ;;  %1572 = vmatprep.mubr.bf16.mxu1 %v9787_v29  ;;  %v9820_v29 = vld [vmem:[%s13176_s1 + $0x384] ss:$16 sps:$4 sm:$0xff]  }
  0x9e   :  { %8057 = vmatprep.subr.bf16.mxu1 %v10178_v28 }
  0xa1   :  { %8058 = vmatpush3.bf16.msra.mxu1 %v10179_v30  ;;  %v10985_v30 = vld [vmem:[%s13175_s0 + $0xb8] sm:$0xff]  }
  0xa2   :  { %8059 = vmatprep.subr.bf16.mxu1 %v10180_v40  ;;  %13201 = vst [vmem:[#allocation8_spill] sm:$0xff] %v10985_v30  ;;  %v6943_v40 = vld [vmem:[%s13177_s2 + $0x4] sm:$0xf] }
  0xa3   :  { %1015 = vmatmul.mubr.bf16.vlgmr.msra.gmra.mrb[64].mxu0 %v9781_v26  ;;  %9647 = vmatprep.subr.msk.bf16.mxu0 %vm1114_vm0, %v6943_v40 }
  0xa4   :  { %1573 = vmatmul.mubr.bf16.gmra.mrb[64].mxu1 %v9789_v31 }
  0xa5   :  { %8060 = vmatpush3.bf16.msra.mxu1 %v10181_v41  ;;  %1580 = vmatprep.mubr.bf16.mxu1 %v9790_v43  ;;  %v9822_v41 = vld [vmem:[%s13176_s1 + $0x380] ss:$16 sps:$4 sm:$0xff]   ;;  %v1116_v43 = vsel %vm1114_vm0, %v6943_v40, 0 }
  0xa6   :  { %8061 = vmatprep.subr.bf16.mxu1 %v10182_v42  ;;  %9022 = vmatpush3.bf16.msra.mxu0 %v1116_v43 }
  0xa9   :  { %8062 = vmatpush3.bf16.msra.mxu1 %v10183_v44 }
  0xaa   :  { %8063 = vmatprep.subr.bf16.mxu1 %v10184_v46 }
  0xac   :  { %1581 = vmatmul.mubr.bf16.gmra.mrb[68].mxu1 %v9792_v45 }
  0xad   :  { %8064 = vmatpush3.bf16.msra.mxu1 %v10185_v47  ;;  %1588 = vmatprep.mubr.bf16.mxu1 %v9793_v49 }
  0xae   :  { %8065 = vmatprep.subr.bf16.mxu1 %v10186_v48 }
  0xb1   :  { %8066 = vmatpush3.bf16.msra.mxu1 %v10187_v50 }
  0xb2   :  { %8067 = vmatprep.subr.bf16.mxu1 %v10188_v52 }
  0xb4   :  { %1589 = vmatmul.mubr.bf16.gmra.mrb[72].mxu1 %v9795_v51 }
  0xb5   :  { %8068 = vmatpush3.bf16.msra.mxu1 %v10189_v53  ;;  %1596 = vmatprep.mubr.bf16.mxu1 %v9796_v55  ;;  %v9823_v55 = vld [vmem:[%s13176_s1 + $0x3a4] ss:$16 sps:$4 sm:$0xff]  }
  0xb6   :  { %8069 = vmatprep.subr.bf16.mxu1 %v10190_v54 }
  0xb9   :  { %8070 = vmatpush3.bf16.msra.mxu1 %v10191_v56 }
  0xba   :  { %8119 = vmatprep.subr.bf16.mxu1 %v10848_v58 }
  0xbc   :  { %1597 = vmatmul.mubr.bf16.gmra.mrb[76].mxu1 %v9798_v57 }
  0xbd   :  { %1604 = vmatprep.mubr.bf16.mxu1 %v9799_v59  ;;  %v9825_v59 = vld [vmem:[%s13176_s1 + $0x3a0] ss:$16 sps:$4 sm:$0xff]  }
  0xc4   :  { %1605 = vmatmul.mubr.bf16.gmra.mrb[80].mxu1 %v9801_v60 }
  0xc5   :  { %1612 = vmatprep.mubr.bf16.mxu1 %v9802_v61 }
  0xcc   :  { %1613 = vmatmul.mubr.bf16.gmra.mrb[84].mxu1 %v9804_v62 }
  0xcd   :  { %1620 = vmatprep.mubr.bf16.mxu1 %v9805_v63 }
  0xd4   :  { %1621 = vmatmul.mubr.bf16.gmra.mrb[88].mxu1 %v9807_v0 }
  0xd5   :  { %2101 = vmatprep.mubr.bf16.mxu1 %v9810_v32 }
  0xdc   :  { %2102 = vmatmul.mubr.bf16.vlgmr.msra.gmra.mrb[92].mxu1 %v9808_v1 }
  0xdd   :  { %8120 = vmatpush3.bf16.msra.mxu1 %v10878_v33  ;;  %2109 = vmatprep.mubr.bf16.mxu1 %v9811_v35 }
  0xde   :  { %8121 = vmatprep.subr.bf16.mxu1 %v10884_v34 }
  0xe1   :  { %8122 = vmatpush3.bf16.msra.mxu1 %v10893_v36 }
  0xe2   :  { %8123 = vmatprep.subr.bf16.mxu1 %v10902_v38 }
  0xe4   :  { %2110 = vmatmul.mubr.bf16.gmra.mrb[96].mxu1 %v9813_v37 }
  0xe5   :  { %8124 = vmatpush3.bf16.msra.mxu1 %v10908_v39  ;;  %2117 = vmatprep.mubr.bf16.mxu1 %v9814_v3 }
  0xe6   :  { %8125 = vmatprep.subr.bf16.mxu1 %v10914_v2 }
  0xe9   :  { %8126 = vmatpush3.bf16.msra.mxu1 %v10923_v4 }
  0xea   :  { %8127 = vmatprep.subr.bf16.mxu1 %v10932_v6 }
  0xec   :  { %2118 = vmatmul.mubr.bf16.gmra.mrb[100].mxu1 %v9816_v5 }
  0xed   :  { %8128 = vmatpush3.bf16.msra.mxu1 %v10938_v7  ;;  %2125 = vmatprep.mubr.bf16.mxu1 %v9817_v9 }
  0xee   :  { %8129 = vmatprep.subr.bf16.mxu1 %v10944_v8 }
  0xf1   :  { %8130 = vmatpush3.bf16.msra.mxu1 %v10953_v10 }
  0xf2   :  { %8131 = vmatprep.subr.bf16.mxu1 %v10962_v12 }
  0xf4   :  { %2126 = vmatmul.mubr.bf16.gmra.mrb[104].mxu1 %v9819_v11 }
  0xf5   :  { %8132 = vmatpush3.bf16.msra.mxu1 %v10968_v20  ;;  %2133 = vmatprep.mubr.bf16.mxu1 %v9820_v29 }
  0xf6   :  { %v7660_v13 = vpop.f32.mrb[0].mxu0  ;;  %8133 = vmatprep.subr.bf16.mxu1 %v10974_v24 }
  0xf7   :  { %v7724_v15 = vpop.f32.mrb[0].mxu1  ;;  %v7661_v16 = vpop.f32.mrb[1].mxu0 }
  0xf8   :  { %v7662_v17 = vadd.f32 %v7661_v16, %v7660_v13  ;;  %v7725_v18 = vpop.f32.mrb[1].mxu1  ;;  %v7663_v19 = vpop.f32.mrb[2].mxu0  ;;  %v9826_v13 = vld [vmem:[%s13176_s1 + $0x3c4] ss:$16 sps:$4 sm:$0xff]  }
  0xf9   :  { %v7726_v21 = vadd.f32 %v7725_v18, %v7724_v15  ;;  %v7727_v22 = vpop.f32.mrb[2].mxu1  ;;  %v7664_v23 = vpop.f32.mrb[3].mxu0  ;;  %8134 = vmatpush3.bf16.msra.mxu1 %v10985_v30 }
  0xfa   :  { %v7665_v25 = vadd.f32 %v7664_v23, %v7663_v19  ;;  %v7728_v26 = vpop.f32.mrb[3].mxu1  ;;  %8256 = vmatprep.subr.bf16.mxu1 %v10848_v58 }
  0xfb   :  { %v10977_v27 = vadd.f32 %v7726_v21, %v7662_v17  ;;  %v7729_v28 = vadd.f32 %v7728_v26, %v7727_v22  ;;  %v9828_v17 = vld [vmem:[%s13176_s1 + $0x3c0] ss:$16 sps:$4 sm:$0xff]  }
  0xfc   :  { %2134 = vmatmul.mubr.bf16.gmra.mrb[108].mxu1 %v9822_v41 }
  0xfd   :  { %v10988_v31 = vadd.f32 %v7729_v28, %v7665_v25  ;;  %2141 = vmatprep.mubr.bf16.mxu1 %v9823_v55 }
  0xfe   :  { %v7666_v42 = vpop.f32.mrb[4].mxu0 }
  0xff   :  { %v7730_v44 = vpop.f32.mrb[4].mxu1  ;;  %v7667_v45 = vpop.f32.mrb[5].mxu0 }
 0x100   :  { %v7668_v47 = vadd.f32 %v7667_v45, %v7666_v42  ;;  %v7731_v48 = vpop.f32.mrb[5].mxu1  ;;  %v7669_v49 = vpop.f32.mrb[6].mxu0  ;;  %v11028_v42 = vld [vmem:[%s13177_s2] sm:$0xf]  ;;  %v9829_v45 = vld [vmem:[%s13176_s1 + $0x3e4] ss:$16 sps:$4 sm:$0xff]  }
 0x101   :  { %v7732_v50 = vadd.f32 %v7731_v48, %v7730_v44  ;;  %v7733_v51 = vpop.f32.mrb[6].mxu1  ;;  %v7670_v52 = vpop.f32.mrb[7].mxu0  ;;  %9648 = vmatprep.subr.msk.bf16.mxu0 %vm1114_vm0, %v11028_v42 }
 0x102   :  { %v7671_v53 = vadd.f32 %v7670_v52, %v7669_v49  ;;  %v7734_v54 = vpop.f32.mrb[7].mxu1  ;;  %v9831_v49 = vld [vmem:[%s13176_s1 + $0x3e0] ss:$16 sps:$4 sm:$0xff]  }
 0x103   :  { %v11004_v56 = vadd.f32 %v7732_v50, %v7668_v47  ;;  %v7735_v57 = vadd.f32 %v7734_v54, %v7733_v51 }
 0x104   :  { %2142 = vmatmul.mubr.bf16.gmra.mrb[112].mxu1 %v9825_v59 }
 0x105   :  { %v11009_v60 = vadd.f32 %v7735_v57, %v7671_v53  ;;  %2149 = vmatprep.mubr.bf16.mxu1 %v9826_v13 }
 0x106   :  { %v7672_v61 = vpop.f32.mrb[8].mxu0 }
 0x107   :  { %v7736_v63 = vpop.f32.mrb[8].mxu1  ;;  %v7673_v0 = vpop.f32.mrb[9].mxu0 }
 0x108   :  { %v7674_v1 = vadd.f32 %v7673_v0, %v7672_v61  ;;  %v7737_v32 = vpop.f32.mrb[9].mxu1  ;;  %v7675_v35 = vpop.f32.mrb[10].mxu0 }
 0x109   :  { %v7738_v37 = vadd.f32 %v7737_v32, %v7736_v63  ;;  %v7739_v3 = vpop.f32.mrb[10].mxu1  ;;  %v7676_v5 = vpop.f32.mrb[11].mxu0 }
 0x10a   :  { %v7677_v9 = vadd.f32 %v7676_v5, %v7675_v35  ;;  %v7740_v11 = vpop.f32.mrb[11].mxu1  ;;  %v9834_v35 = vld [vmem:[%s13176_s1 + $0x30c] ss:$16 sps:$4 sm:$0xff]   ;;  %v9832_v5 = vld [vmem:[%s13176_s1 + $0x308] ss:$16 sps:$4 sm:$0xff]  }
 0x10b   :  { %v11016_v15 = vadd.f32 %v7738_v37, %v7674_v1  ;;  %v7741_v16 = vadd.f32 %v7740_v11, %v7739_v3 }
 0x10c   :  { %2150 = vmatmul.mubr.bf16.gmra.mrb[116].mxu1 %v9828_v17 }
 0x10d   :  { %v11021_v18 = vadd.f32 %v7741_v16, %v7677_v9  ;;  %2157 = vmatprep.mubr.bf16.mxu1 %v9829_v45 }
 0x10e   :  { %v7678_v19 = vpop.f32.mrb[12].mxu0 }
 0x10f   :  { %v7742_v21 = vpop.f32.mrb[12].mxu1  ;;  %v7679_v22 = vpop.f32.mrb[13].mxu0 }
 0x110   :  { %v7680_v25 = vadd.f32 %v7679_v22, %v7678_v19  ;;  %v7743_v26 = vpop.f32.mrb[13].mxu1  ;;  %v7681_v28 = vpop.f32.mrb[14].mxu0 }
 0x111   :  { %v7744_v29 = vadd.f32 %v7743_v26, %v7742_v21  ;;  %v7745_v40 = vpop.f32.mrb[14].mxu1  ;;  %v7682_v41 = vpop.f32.mrb[15].mxu0 }
 0x112   :  { %v7683_v43 = vadd.f32 %v7682_v41, %v7681_v28  ;;  %v7746_v44 = vpop.f32.mrb[15].mxu1 }
 0x113   :  { %v11035_v47 = vadd.f32 %v7744_v29, %v7680_v25  ;;  %v7747_v48 = vadd.f32 %v7746_v44, %v7745_v40  ;;  %v9835_v44 = vld [vmem:[%s13176_s1 + $0x32c] ss:$16 sps:$4 sm:$0xff]  }
 0x114   :  { %2158 = vmatmul.mubr.bf16.gmra.mrb[120].mxu1 %v9831_v49 }
 0x115   :  { %v11040_v50 = vadd.f32 %v7747_v48, %v7683_v43  ;;  %2198 = vmatprep.mubr.bf16.mxu1 %v9834_v35  ;;  %v9837_v48 = vld [vmem:[%s13176_s1 + $0x328] ss:$16 sps:$4 sm:$0xff]  }
 0x116   :  { %v7684_v51 = vpop.f32.mrb[16].mxu0 }
 0x117   :  { %v7748_v52 = vpop.f32.mrb[16].mxu1  ;;  %v7685_v53 = vpop.f32.mrb[17].mxu0 }
 0x118   :  { %v7686_v55 = vadd.f32 %v7685_v53, %v7684_v51  ;;  %v7749_v57 = vpop.f32.mrb[17].mxu1  ;;  %v7687_v59 = vpop.f32.mrb[18].mxu0 }
 0x119   :  { %v7750_v61 = vadd.f32 %v7749_v57, %v7748_v52  ;;  %v7751_v63 = vpop.f32.mrb[18].mxu1  ;;  %v7688_v0 = vpop.f32.mrb[19].mxu0 }
 0x11a   :  { %v7689_v1 = vadd.f32 %v7688_v0, %v7687_v59  ;;  %v7752_v32 = vpop.f32.mrb[19].mxu1 }
 0x11b   :  { %v11047_v37 = vadd.f32 %v7750_v61, %v7686_v55  ;;  %v7753_v3 = vadd.f32 %v7752_v32, %v7751_v63 }
 0x11c   :  { %2199 = vmatmul.mubr.bf16.vlgmr.msra.gmra.mrb[124].mxu1 %v9832_v5  ;;  %v9838_v5 = vld [vmem:[%s13176_s1 + $0x34c] ss:$16 sps:$4 sm:$0xff]  }
 0x11d   :  { %v11052_v9 = vadd.f32 %v7753_v3, %v7689_v1  ;;  %8257 = vmatpush3.bf16.msra.mxu1 %v10878_v33  ;;  %2206 = vmatprep.mubr.bf16.mxu1 %v9835_v44 }
 0x11e   :  { %v7690_v11 = vpop.f32.mrb[20].mxu0  ;;  %8258 = vmatprep.subr.bf16.mxu1 %v10884_v34 }
 0x11f   :  { %v7754_v13 = vpop.f32.mrb[20].mxu1  ;;  %v7691_v16 = vpop.f32.mrb[21].mxu0 }
 0x120   :  { %v7692_v19 = vadd.f32 %v7691_v16, %v7690_v11  ;;  %v7755_v21 = vpop.f32.mrb[21].mxu1  ;;  %v7693_v22 = vpop.f32.mrb[22].mxu0 }
 0x121   :  { %v7756_v25 = vadd.f32 %v7755_v21, %v7754_v13  ;;  %v7757_v26 = vpop.f32.mrb[22].mxu1  ;;  %v7694_v28 = vpop.f32.mrb[23].mxu0  ;;  %8259 = vmatpush3.bf16.msra.mxu1 %v10893_v36  ;;  %v9840_v13 = vld [vmem:[%s13176_s1 + $0x348] ss:$16 sps:$4 sm:$0xff]  }
 0x122   :  { %v7695_v29 = vadd.f32 %v7694_v28, %v7693_v22  ;;  %v7758_v40 = vpop.f32.mrb[23].mxu1  ;;  %8260 = vmatprep.subr.bf16.mxu1 %v10902_v38 }
 0x123   :  { %v11058_v41 = vadd.f32 %v7756_v25, %v7692_v19  ;;  %v7759_v43 = vadd.f32 %v7758_v40, %v7757_v26 }
 0x124   :  { %2207 = vmatmul.mubr.bf16.gmra.mrb[128].mxu1 %v9837_v48 }
 0x125   :  { %v11064_v45 = vadd.f32 %v7759_v43, %v7695_v29  ;;  %8261 = vmatpush3.bf16.msra.mxu1 %v10908_v39  ;;  %2214 = vmatprep.mubr.bf16.mxu1 %v9838_v5 }
 0x126   :  { %v7696_v49 = vpop.f32.mrb[24].mxu0  ;;  %8262 = vmatprep.subr.bf16.mxu1 %v10914_v2 }
 0x127   :  { %v7760_v51 = vpop.f32.mrb[24].mxu1  ;;  %v7697_v52 = vpop.f32.mrb[25].mxu0 }
 0x128   :  { %v7698_v55 = vadd.f32 %v7697_v52, %v7696_v49  ;;  %v7761_v57 = vpop.f32.mrb[25].mxu1  ;;  %v7699_v59 = vpop.f32.mrb[26].mxu0  ;;  %v9841_v52 = vld [vmem:[%s13176_s1 + $0x36c] ss:$16 sps:$4 sm:$0xff]  }
 0x129   :  { %v7762_v61 = vadd.f32 %v7761_v57, %v7760_v51  ;;  %v7763_v63 = vpop.f32.mrb[26].mxu1  ;;  %v7700_v0 = vpop.f32.mrb[27].mxu0  ;;  %8263 = vmatpush3.bf16.msra.mxu1 %v10923_v4  ;;  %v9843_v57 = vld [vmem:[%s13176_s1 + $0x368] ss:$16 sps:$4 sm:$0xff]  }
 0x12a   :  { %v7701_v1 = vadd.f32 %v7700_v0, %v7699_v59  ;;  %v7764_v32 = vpop.f32.mrb[27].mxu1  ;;  %8264 = vmatprep.subr.bf16.mxu1 %v10932_v6 }
 0x12b   :  { %v11074_v35 = vadd.f32 %v7762_v61, %v7698_v55  ;;  %v7765_v3 = vadd.f32 %v7764_v32, %v7763_v63 }
 0x12c   :  { %2215 = vmatmul.mubr.bf16.gmra.mrb[132].mxu1 %v9840_v13 }
 0x12d   :  { %v11080_v11 = vadd.f32 %v7765_v3, %v7701_v1  ;;  %8265 = vmatpush3.bf16.msra.mxu1 %v10938_v7  ;;  %2222 = vmatprep.mubr.bf16.mxu1 %v9841_v52 }
 0x12e   :  { %v7702_v16 = vpop.f32.mrb[28].mxu0  ;;  %8266 = vmatprep.subr.bf16.mxu1 %v10944_v8 }
 0x12f   :  { %v7766_v19 = vpop.f32.mrb[28].mxu1  ;;  %v7703_v21 = vpop.f32.mrb[29].mxu0 }
 0x130   :  { %v7704_v25 = vadd.f32 %v7703_v21, %v7702_v16  ;;  %v7767_v26 = vpop.f32.mrb[29].mxu1  ;;  %v7705_v28 = vpop.f32.mrb[30].mxu0 }
 0x131   :  { %v7768_v29 = vadd.f32 %v7767_v26, %v7766_v19  ;;  %v7769_v40 = vpop.f32.mrb[30].mxu1  ;;  %v7706_v43 = vpop.f32.mrb[31].mxu0  ;;  %8267 = vmatpush3.bf16.msra.mxu1 %v10953_v10  ;;  %v9844_v26 = vld [vmem:[%s13176_s1 + $0x38c] ss:$16 sps:$4 sm:$0xff]  }
 0x132   :  { %v7707_v44 = vadd.f32 %v7706_v43, %v7705_v28  ;;  %v7770_v48 = vpop.f32.mrb[31].mxu1  ;;  %8268 = vmatprep.subr.bf16.mxu1 %v10962_v12  ;;  %v9846_v28 = vld [vmem:[%s13176_s1 + $0x388] ss:$16 sps:$4 sm:$0xff]  }
 0x133   :  { %v11090_v49 = vadd.f32 %v7768_v29, %v7704_v25  ;;  %v7771_v51 = vadd.f32 %v7770_v48, %v7769_v40 }
 0x134   :  { %2223 = vmatmul.mubr.bf16.gmra.mrb[136].mxu1 %v9843_v57 }
 0x135   :  { %13202 = vst [vmem:[#allocation9_spill] sm:$0xff] %v11090_v49  ;;  %v11096_v55 = vadd.f32 %v7771_v51, %v7707_v44  ;;  %8269 = vmatpush3.bf16.msra.mxu1 %v10968_v20  ;;  %2230 = vmatprep.mubr.bf16.mxu1 %v9844_v26 }
 0x136   :  { %v7788_v59 = vpop.f32.mrb[32].mxu0  ;;  %8270 = vmatprep.subr.bf16.mxu1 %v10974_v24 }
 0x137   :  { %13203 = vst [vmem:[#allocation10_spill] sm:$0xff] %v11096_v55  ;;  %v7789_v61 = vpop.f32.mrb[33].mxu0  ;;  %v7858_v63 = vpop.f32.mrb[32].mxu1 }
 0x138   :  { %v11104_v1 = vadd.f32 %v7789_v61, %v7788_v59  ;;  %v7791_v32 = vpop.f32.mrb[34].mxu0  ;;  %v7859_v3 = vpop.f32.mrb[33].mxu1  ;;  %v9850_v61 = vld [vmem:[%s13176_s1 + $0x3ac] ss:$16 sps:$4 sm:$0xff]  }
 0x139   :  { %v7792_v5 = vpop.f32.mrb[35].mxu0  ;;  %v7860_v13 = vadd.f32 %v7859_v3, %v7858_v63  ;;  %v7861_v16 = vpop.f32.mrb[34].mxu1  ;;  %8271 = vmatpush3.bf16.msra.mxu1 %v10985_v30 }
 0x13a   :  { %v11108_v19 = vadd.f32 %v7792_v5, %v7791_v32  ;;  %v7862_v21 = vpop.f32.mrb[35].mxu1  ;;  %8329 = vmatprep.subr.bf16.mxu1 %v10737_v14  ;;  %v9852_v14 = vld [vmem:[%s13176_s1 + $0x3a8] ss:$16 sps:$4 sm:$0xff]  }
 0x13b   :  { %v7863_v25 = vadd.f32 %v7862_v21, %v7861_v16 }
 0x13c   :  { %2231 = vmatmul.mubr.bf16.gmra.mrb[140].mxu1 %v9846_v28 }
 0x13d   :  { %2238 = vmatprep.mubr.bf16.mxu1 %v9850_v61 }
 0x13e   :  { %v7794_v29 = vpop.f32.mrb[36].mxu0 }
 0x13f   :  { %v7795_v40 = vpop.f32.mrb[37].mxu0  ;;  %v7864_v43 = vpop.f32.mrb[36].mxu1 }
 0x140   :  { %v7796_v44 = vadd.f32 %v7795_v40, %v7794_v29  ;;  %v7797_v48 = vpop.f32.mrb[38].mxu0  ;;  %v7865_v51 = vpop.f32.mrb[37].mxu1 }
 0x141   :  { %v7798_v52 = vpop.f32.mrb[39].mxu0  ;;  %v7866_v57 = vadd.f32 %v7865_v51, %v7864_v43  ;;  %v7867_v59 = vpop.f32.mrb[38].mxu1 }
 0x142   :  { %v11121_v63 = vadd.f32 %v7860_v13, %v7796_v44  ;;  %v7799_v32 = vadd.f32 %v7798_v52, %v7797_v48  ;;  %v7868_v3 = vpop.f32.mrb[39].mxu1  ;;  %v9856_v52 = vld [vmem:[%s13176_s1 + $0x3cc] ss:$16 sps:$4 sm:$0xff]  }
 0x143   :  { %v7869_v5 = vadd.f32 %v7868_v3, %v7867_v59  ;;  %v9858_v3 = vld [vmem:[%s13176_s1 + $0x3c8] ss:$16 sps:$4 sm:$0xff]  }
 0x144   :  { %v11126_v16 = vadd.f32 %v7863_v25, %v7799_v32  ;;  %2239 = vmatmul.mubr.bf16.gmra.mrb[144].mxu1 %v9852_v14 }
 0x145   :  { %2246 = vmatprep.mubr.bf16.mxu1 %v9856_v52  ;;  %v9862_v52 = vld [vmem:[%s13176_s1 + $0x3ec] ss:$16 sps:$4 sm:$0xff]  }
 0x146   :  { %v7800_v26 = vpop.f32.mrb[40].mxu0 }
 0x147   :  { %v7801_v28 = vpop.f32.mrb[41].mxu0  ;;  %v7870_v29 = vpop.f32.mrb[40].mxu1 }
 0x148   :  { %v7802_v40 = vadd.f32 %v7801_v28, %v7800_v26  ;;  %v7803_v13 = vpop.f32.mrb[42].mxu0  ;;  %v7871_v43 = vpop.f32.mrb[41].mxu1 }
 0x149   :  { %v7804_v44 = vpop.f32.mrb[43].mxu0  ;;  %v7872_v48 = vadd.f32 %v7871_v43, %v7870_v29  ;;  %v7873_v51 = vpop.f32.mrb[42].mxu1 }
 0x14a   :  { %v11133_v59 = vadd.f32 %v7866_v57, %v7802_v40  ;;  %v7805_v25 = vadd.f32 %v7804_v44, %v7803_v13  ;;  %v7874_v61 = vpop.f32.mrb[43].mxu1 }
 0x14b   :  { %v7875_v32 = vadd.f32 %v7874_v61, %v7873_v51 }
 0x14c   :  { %v11138_v14 = vadd.f32 %v7869_v5, %v7805_v25  ;;  %2247 = vmatmul.mubr.bf16.gmra.mrb[148].mxu1 %v9858_v3  ;;  %v9864_v3 = vld [vmem:[%s13176_s1 + $0x3e8] ss:$16 sps:$4 sm:$0xff]  }
 0x14d   :  { %2254 = vmatprep.mubr.bf16.mxu1 %v9862_v52 }
 0x14e   :  { %v7806_v26 = vpop.f32.mrb[44].mxu0 }
 0x14f   :  { %v7807_v29 = vpop.f32.mrb[45].mxu0  ;;  %v7876_v43 = vpop.f32.mrb[44].mxu1 }
 0x150   :  { %v7808_v0 = vadd.f32 %v7807_v29, %v7806_v26  ;;  %v7809_v57 = vpop.f32.mrb[46].mxu0  ;;  %v7877_v40 = vpop.f32.mrb[45].mxu1 }
 0x151   :  { %v7810_v13 = vpop.f32.mrb[47].mxu0  ;;  %v7878_v44 = vadd.f32 %v7877_v40, %v7876_v43  ;;  %v7879_v51 = vpop.f32.mrb[46].mxu1 }
 0x152   :  { %v11145_v61 = vadd.f32 %v7872_v48, %v7808_v0  ;;  %v7811_v5 = vadd.f32 %v7810_v13, %v7809_v57  ;;  %v7880_v25 = vpop.f32.mrb[47].mxu1 }
 0x153   :  { %v7881_v22 = vadd.f32 %v7880_v25, %v7879_v51 }
 0x154   :  { %v11150_v26 = vadd.f32 %v7875_v32, %v7811_v5  ;;  %2255 = vmatmul.mubr.bf16.gmra.mrb[152].mxu1 %v9864_v3 }
 0x156   :  { %v7812_v29 = vpop.f32.mrb[48].mxu0 }
 0x157   :  { %v7813_v40 = vpop.f32.mrb[49].mxu0  ;;  %v7882_v53 = vpop.f32.mrb[48].mxu1 }
 0x158   :  { %v7814_v17 = vadd.f32 %v7813_v40, %v7812_v29  ;;  %v7815_v0 = vpop.f32.mrb[50].mxu0  ;;  %v7883_v48 = vpop.f32.mrb[49].mxu1 }
 0x159   :  { %v7816_v57 = vpop.f32.mrb[51].mxu0  ;;  %v7884_v13 = vadd.f32 %v7883_v48, %v7882_v53  ;;  %v7885_v51 = vpop.f32.mrb[50].mxu1 }
 0x15a   :  { %v11154_v52 = vadd.f32 %v7878_v44, %v7814_v17  ;;  %v7817_v25 = vadd.f32 %v7816_v57, %v7815_v0  ;;  %v7886_v54 = vpop.f32.mrb[51].mxu1 }
 0x15b   :  { %v7887_v23 = vadd.f32 %v7886_v54, %v7885_v51 }
 0x15c   :  { %v11156_v32 = vadd.f32 %v7881_v22, %v7817_v25 }
 0x15e   :  { %v7818_v5 = vpop.f32.mrb[52].mxu0 }
 0x15f   :  { %v7819_v46 = vpop.f32.mrb[53].mxu0  ;;  %v7888_v43 = vpop.f32.mrb[52].mxu1 }
 0x160   :  { %v7820_v3 = vadd.f32 %v7819_v46, %v7818_v5  ;;  %v7821_v29 = vpop.f32.mrb[54].mxu0  ;;  %v7889_v40 = vpop.f32.mrb[53].mxu1 }
 0x161   :  { %v7822_v28 = vpop.f32.mrb[55].mxu0  ;;  %v7890_v21 = vadd.f32 %v7889_v40, %v7888_v43  ;;  %v7891_v53 = vpop.f32.mrb[54].mxu1 }
 0x162   :  { %v11160_v48 = vadd.f32 %v7884_v13, %v7820_v3  ;;  %v7823_v17 = vadd.f32 %v7822_v28, %v7821_v29  ;;  %v7892_v44 = vpop.f32.mrb[55].mxu1 }
 0x163   :  { %v7893_v0 = vadd.f32 %v7892_v44, %v7891_v53 }
 0x164   :  { %v11162_v54 = vadd.f32 %v7887_v23, %v7823_v17 }
 0x166   :  { %v7824_v22 = vpop.f32.mrb[56].mxu0 }
 0x167   :  { %v7825_v51 = vpop.f32.mrb[57].mxu0  ;;  %v7894_v25 = vpop.f32.mrb[56].mxu1 }
 0x168   :  { %v7826_v62 = vadd.f32 %v7825_v51, %v7824_v22  ;;  %v7827_v46 = vpop.f32.mrb[58].mxu0  ;;  %v7895_v5 = vpop.f32.mrb[57].mxu1 }
 0x169   :  { %v7828_v30 = vpop.f32.mrb[59].mxu0  ;;  %v7896_v24 = vadd.f32 %v7895_v5, %v7894_v25  ;;  %v7897_v43 = vpop.f32.mrb[58].mxu1 }
 0x16a   :  { %v1065_v40 = vadd.f32 %v7890_v21, %v7826_v62  ;;  %v7829_v13 = vadd.f32 %v7828_v30, %v7827_v46  ;;  %v7898_v3 = vpop.f32.mrb[59].mxu1 }
 0x16b   :  { %v7899_v28 = vadd.f32 %v7898_v3, %v7897_v43  ;;  %v13205_v3 = vpack.c.bf16 %v11138_v14, %v11133_v59 }
 0x16c   :  { %v1068_v29 = vadd.f32 %v7893_v0, %v7829_v13 }
 0x16e   :  { %v7830_v53 = vpop.f32.mrb[60].mxu0  ;;  %v1085_v23 = vpack.c.bf16 %v1068_v29, %v1065_v40 }
 0x16f   :  { %v7831_v17 = vpop.f32.mrb[61].mxu0  ;;  %v7934_v62 = vpop.f32.mrb[60].mxu1 }
 0x170   :  { %v7832_v44 = vadd.f32 %v7831_v17, %v7830_v53  ;;  %v7833_v20 = vpop.f32.mrb[62].mxu0  ;;  %v7935_v0 = vpop.f32.mrb[61].mxu1 }
 0x171   :  { %v7834_v49 = vpop.f32.mrb[63].mxu0  ;;  %v11167_v46 = vadd.f32 %v7935_v0, %v7934_v62  ;;  %v7937_v43 = vpop.f32.mrb[62].mxu1  ;;  %v13208_v62 = vpack.c.bf16 %v11162_v54, %v11160_v48  ;;  %v13209_v0 = vpack.c.bf16 %v10988_v31, %v10977_v27 }
 0x172   :  { %v1073_v57 = vadd.f32 %v7896_v24, %v7832_v44  ;;  %v7835_v55 = vadd.f32 %v7834_v49, %v7833_v20  ;;  %v7938_v13 = vpop.f32.mrb[63].mxu1 }
 0x173   :  { %v11170_v20 = vadd.f32 %v7938_v13, %v7937_v43 }
 0x174   :  { %v1076_v12 = vadd.f32 %v7899_v28, %v7835_v55 }
 0x176   :  { %v7852_v22 = vpop.f32.mrb[64].mxu0  ;;  %v1086_v51 = vpack.c.bf16 %v1076_v12, %v1073_v57  ;;  %v13204_v57 = vpack.c.bf16 %v11126_v16, %v11121_v63  ;;  %v13206_v63 = vpack.c.bf16 %v11150_v26, %v11145_v61  ;;  %v13207_v16 = vpack.c.bf16 %v11156_v32, %v11154_v52 }
 0x177   :  { %v7853_v10 = vpop.f32.mrb[65].mxu0  ;;  %v7940_v24 = vpop.f32.mrb[64].mxu1 }
 0x178   :  { %v7854_v8 = vadd.f32 %v7853_v10, %v7852_v22  ;;  %v7855_v25 = vpop.f32.mrb[66].mxu0  ;;  %v7941_v49 = vpop.f32.mrb[65].mxu1  ;;  %v1240_v10 = vsel %vm1114_vm0, %v11028_v42, 0 }
 0x179   :  { %v7856_v5 = vpop.f32.mrb[67].mxu0  ;;  %v11174_v55 = vadd.f32 %v7941_v49, %v7940_v24  ;;  %v13210_v24 = vpack.c.bf16 %v11009_v60, %v11004_v56  ;;  %v13212_v60 = vpack.c.bf16 %v11040_v50, %v11035_v47  ;;  %v13214_v50 = vpack.c.bf16 %v11064_v45, %v11058_v41  ;;  %v9849_v41 = vld [vmem:[%s13176_s1 + $0x20c] ss:$16 sps:$4 sm:$0xff]  }
 0x17a   :  { %v1017_v30 = vadd.f32 %v7854_v8, %v11104_v1  ;;  %v7857_v21 = vadd.f32 %v7856_v5, %v7855_v25  ;;  %v7943_v8 = vpop.f32.mrb[66].mxu1 }
 0x17b   :  { %v7944_v1 = vpop.f32.mrb[67].mxu1 }
 0x17c   :  { %v1020_v40 = vadd.f32 %v7857_v21, %v11108_v19  ;;  %v11181_v19 = vadd.f32 %v7944_v1, %v7943_v8  ;;  %v13217_v1 = vld [vmem:[#allocation4_spill] sm:$0xff] }
 0x17e   :  { %v1079_v12 = vpack.c.bf16 %v1020_v40, %v1017_v30 }
 0x17f   :  { %v7946_v42 = vpop.f32.mrb[68].mxu1 }
 0x180   :  { %9023 = vmatprep.mubr.msk.bf16.mxu0 %vm1089_vm1, %v1079_v12  ;;  %v7947_v28 = vpop.f32.mrb[69].mxu1 }
 0x181   :  { %9024 = vmatmul.mubr.msk.bf16.vlgmr.msra.gmra.mrb[68].mxu0 %vm1089_vm1, %v13204_v57  ;;  %v11188_v29 = vadd.f32 %v7947_v28, %v7946_v42  ;;  %v7949_v53 = vpop.f32.mrb[70].mxu1  ;;  %v13223_v28 = vld [vmem:[#allocation7_spill] sm:$0xff] }
 0x182   :  { %9027 = vmatprep.mubr.msk.bf16.mxu0 %vm1089_vm1, %v13205_v3  ;;  %9040 = vmatpush3.bf16.msra.mxu0 %v1240_v10  ;;  %v7950_v17 = vpop.f32.mrb[71].mxu1  ;;  %v13222_v3 = vld [vmem:[#allocation6_spill] sm:$0xff] }
 0x183   :  { %7982 = vmatprep.subr.bf16.mxu0 %v10848_v58  ;;  %v11190_v44 = vadd.f32 %v7950_v17, %v7949_v53 }
 0x187   :  { %v7952_v59 = vpop.f32.mrb[72].mxu1 }
 0x188   :  { %v7953_v14 = vpop.f32.mrb[73].mxu1 }
 0x189   :  { %9028 = vmatmul.mubr.msk.bf16.gmra.mrb[72].mxu0 %vm1089_vm1, %v13206_v63  ;;  %v11200_v58 = vadd.f32 %v7953_v14, %v7952_v59  ;;  %v7955_v22 = vpop.f32.mrb[74].mxu1  ;;  %v9847_v59 = vld [vmem:[%s13176_s1 + $0x208] ss:$16 sps:$4 sm:$0xff]  }
 0x18a   :  { %9031 = vmatprep.mubr.msk.bf16.mxu0 %vm1089_vm1, %v13207_v16  ;;  %v7956_v25 = vpop.f32.mrb[75].mxu1  ;;  %v7024_v16 = vld [vmem:[%s13177_s2 + $0x8] sm:$0xf] }
 0x18b   :  { %v11202_v5 = vadd.f32 %v7956_v25, %v7955_v22  ;;  %v13224_v22 = vld [vmem:[#allocation8_spill] sm:$0xff] }
 0x18c   :  { %v9853_v25 = vld [vmem:[%s13176_s1 + $0x22c] ss:$16 sps:$4 sm:$0xff]  }
 0x18f   :  { %v7958_v61 = vpop.f32.mrb[76].mxu1 }
 0x190   :  { %v7959_v26 = vpop.f32.mrb[77].mxu1 }
 0x191   :  { %9032 = vmatmul.mubr.msk.bf16.gmra.mrb[76].mxu0 %vm1089_vm1, %v13208_v62  ;;  %v11209_v52 = vadd.f32 %v7959_v26, %v7958_v61  ;;  %v7961_v32 = vpop.f32.mrb[78].mxu1  ;;  %v1761_v61 = vsel %vm1114_vm0, %v7024_v16, 0 }
 0x192   :  { %9035 = vmatprep.mubr.msk.bf16.mxu0 %vm1089_vm1, %v1085_v23  ;;  %v7962_v30 = vpop.f32.mrb[79].mxu1 }
 0x193   :  { %v11211_v21 = vadd.f32 %v7962_v30, %v7961_v32 }
 0x197   :  { %v7964_v48 = vpop.f32.mrb[80].mxu1 }
 0x198   :  { %v7965_v54 = vpop.f32.mrb[81].mxu1 }
 0x199   :  { %9036 = vmatmul.mubr.msk.bf16.gmra.mrb[80].mxu0 %vm1089_vm1, %v1086_v51  ;;  %v11218_v43 = vadd.f32 %v7965_v54, %v7964_v48  ;;  %v7967_v23 = vpop.f32.mrb[82].mxu1  ;;  %v13211_v51 = vpack.c.bf16 %v11021_v18, %v11016_v15  ;;  %v9855_v48 = vld [vmem:[%s13176_s1 + $0x228] ss:$16 sps:$4 sm:$0xff]  }
 0x19a   :  { %9041 = vmatprep.mubr.msk.bf16.mxu0 %vm1089_vm1, %v13209_v0  ;;  %v7968_v40 = vpop.f32.mrb[83].mxu1 }
 0x19b   :  { %v11220_v13 = vadd.f32 %v7968_v40, %v7967_v23  ;;  %v9859_v23 = vld [vmem:[%s13176_s1 + $0x24c] ss:$16 sps:$4 sm:$0xff]  }
 0x19f   :  { %v7970_v27 = vpop.f32.mrb[84].mxu1 }
 0x1a0   :  { %v7971_v31 = vpop.f32.mrb[85].mxu1 }
 0x1a1   :  { %9042 = vmatmul.mubr.msk.bf16.vlgmr.msra.gmra.mrb[68].mxu0 %vm1089_vm1, %v13210_v24  ;;  %v11232_v12 = vadd.f32 %v7971_v31, %v7970_v27  ;;  %v7973_v49 = vpop.f32.mrb[86].mxu1 }
 0x1a2   :  { %9045 = vmatprep.mubr.msk.bf16.mxu0 %vm1089_vm1, %v13211_v51  ;;  %7983 = vmatpush3.bf16.msra.mxu0 %v10878_v33  ;;  %v7974_v10 = vpop.f32.mrb[87].mxu1  ;;  %v13213_v33 = vpack.c.bf16 %v11052_v9, %v11047_v37  ;;  %v13216_v37 = vld [vmem:[#allocation3_spill] sm:$0xff] }
 0x1a3   :  { %7984 = vmatprep.subr.bf16.mxu0 %v10884_v34  ;;  %v11235_v56 = vadd.f32 %v7974_v10, %v7973_v49  ;;  %v9861_v49 = vld [vmem:[%s13176_s1 + $0x248] ss:$16 sps:$4 sm:$0xff]  }
 0x1a6   :  { %7985 = vmatpush3.bf16.msra.mxu0 %v10893_v36 }
 0x1a7   :  { %7986 = vmatprep.subr.bf16.mxu0 %v10902_v38  ;;  %v7976_v34 = vpop.f32.mrb[88].mxu1 }
 0x1a8   :  { %v7977_v36 = vpop.f32.mrb[89].mxu1 }
 0x1a9   :  { %9046 = vmatmul.mubr.msk.bf16.gmra.mrb[72].mxu0 %vm1089_vm1, %v13212_v60  ;;  %v11248_v15 = vadd.f32 %v7977_v36, %v7976_v34  ;;  %v7979_v18 = vpop.f32.mrb[90].mxu1  ;;  %v9865_v60 = vld [vmem:[%s13176_s1 + $0x26c] ss:$16 sps:$4 sm:$0xff]  }
 0x1aa   :  { %9049 = vmatprep.mubr.msk.bf16.mxu0 %vm1089_vm1, %v13213_v33  ;;  %7987 = vmatpush3.bf16.msra.mxu0 %v10908_v39  ;;  %v7980_v38 = vpop.f32.mrb[91].mxu1  ;;  %v13215_v39 = vpack.c.bf16 %v11080_v11, %v11074_v35  ;;  %v13218_v35 = vld [vmem:[#allocation5_spill] sm:$0xff]  ;;  %v13219_v11 = vld [vmem:[#allocation10_spill] sm:$0xff] }
 0x1ab   :  { %7988 = vmatprep.subr.bf16.mxu0 %v10914_v2  ;;  %v11251_v47 = vadd.f32 %v7980_v38, %v7979_v18 }
 0x1ae   :  { %7989 = vmatpush3.bf16.msra.mxu0 %v10923_v4 }
 0x1af   :  { %7990 = vmatprep.subr.bf16.mxu0 %v10932_v6  ;;  %v8071_v2 = vpop.f32.mrb[92].mxu1 }
 0x1b0   :  { %v8072_v4 = vpop.f32.mrb[93].mxu1 }
 0x1b1   :  { %9050 = vmatmul.mubr.msk.bf16.gmra.mrb[76].mxu0 %vm1089_vm1, %v13214_v50  ;;  %v11264_v9 = vadd.f32 %v8072_v4, %v8071_v2  ;;  %v8074_v8 = vpop.f32.mrb[94].mxu1  ;;  %v9867_v50 = vld [vmem:[%s13176_s1 + $0x268] ss:$16 sps:$4 sm:$0xff]   ;;  %v9868_v2 = vld [vmem:[%s13176_s1 + $0x28c] ss:$16 sps:$4 sm:$0xff]  }
 0x1b2   :  { %9053 = vmatprep.mubr.msk.bf16.mxu0 %vm1089_vm1, %v13215_v39  ;;  %7991 = vmatpush3.bf16.msra.mxu0 %v10938_v7  ;;  %v8075_v6 = vpop.f32.mrb[95].mxu1  ;;  %v13220_v7 = vld [vmem:[#allocation9_spill] sm:$0xff] }
 0x1b3   :  { %7992 = vmatprep.subr.bf16.mxu0 %v13216_v37  ;;  %v11270_v45 = vadd.f32 %v8075_v6, %v8074_v8  ;;  %v13221_v57 = vpack.c.bf16 %v13219_v11, %v13220_v7  ;;  %v9871_v11 = vld [vmem:[%s13176_s1 + $0x2ac] ss:$16 sps:$4 sm:$0xff]  }
 0x1b6   :  { %7993 = vmatpush3.bf16.msra.mxu0 %v13217_v1 }
 0x1b7   :  { %7994 = vmatprep.subr.bf16.mxu0 %v13218_v35  ;;  %v8077_v42 = vpop.f32.mrb[96].mxu1 }
 0x1b8   :  { %v8078_v53 = vpop.f32.mrb[97].mxu1 }
 0x1b9   :  { %9054 = vmatmul.mubr.msk.bf16.gmra.mrb[80].mxu0 %vm1089_vm1, %v13221_v57  ;;  %v8080_v17 = vpop.f32.mrb[98].mxu1  ;;  %v11279_v63 = vadd.f32 %v8078_v53, %v8077_v42  ;;  %v9873_v53 = vld [vmem:[%s13176_s1 + $0x2a8] ss:$16 sps:$4 sm:$0xff]  }
 0x1ba   :  { %7995 = vmatpush3.bf16.msra.mxu0 %v13222_v3  ;;  %1661 = vmatprep.mubr.bf16.mxu0 %v9849_v41  ;;  %v8081_v14 = vpop.f32.mrb[99].mxu1  ;;  %v9870_v41 = vld [vmem:[%s13176_s1 + $0x288] ss:$16 sps:$4 sm:$0xff]  }
 0x1bb   :  { %7996 = vmatprep.subr.bf16.mxu0 %v13223_v28  ;;  %v11291_v62 = vadd.f32 %v8081_v14, %v8080_v17 }
 0x1be   :  { %7997 = vmatpush3.bf16.msra.mxu0 %v13224_v22 }
 0x1bf   :  { %9649 = vmatprep.subr.msk.bf16.mxu0 %vm1114_vm0, %v7024_v16  ;;  %v8083_v26 = vpop.f32.mrb[100].mxu1  ;;  %v9874_v16 = vld [vmem:[%s13176_s1 + $0x2cc] ss:$16 sps:$4 sm:$0xff]  }
 0x1c0   :  { %v8084_v32 = vpop.f32.mrb[101].mxu1 }
 0x1c1   :  { %1662 = vmatmul.mubr.bf16.vlgmr.msra.gmra.mrb[84].mxu0 %v9847_v59  ;;  %v11295_v30 = vadd.f32 %v8084_v32, %v8083_v26  ;;  %v8086_v0 = vpop.f32.mrb[102].mxu1  ;;  %v9876_v26 = vld [vmem:[%s13176_s1 + $0x2c8] ss:$16 sps:$4 sm:$0xff]  }
 0x1c2   :  { %1669 = vmatprep.mubr.bf16.mxu0 %v9853_v25  ;;  %9058 = vmatpush3.bf16.msra.mxu0 %v1761_v61  ;;  %v8087_v54 = vpop.f32.mrb[103].mxu1 }
 0x1c3   :  { %v11303_v40 = vadd.f32 %v8087_v54, %v8086_v0  ;;  %v9877_v0 = vld [vmem:[%s13176_s1 + $0x2ec] ss:$16 sps:$4 sm:$0xff]  }
 0x1c7   :  { %v8089_v24 = vpop.f32.mrb[104].mxu1 }
 0x1c8   :  { %v8090_v51 = vpop.f32.mrb[105].mxu1 }
 0x1c9   :  { %1670 = vmatmul.mubr.bf16.gmra.mrb[88].mxu0 %v9855_v48  ;;  %v11305_v27 = vadd.f32 %v8090_v51, %v8089_v24  ;;  %v8092_v31 = vpop.f32.mrb[106].mxu1 }
 0x1ca   :  { %1677 = vmatprep.mubr.bf16.mxu0 %v9859_v23  ;;  %v8093_v10 = vpop.f32.mrb[107].mxu1 }
 0x1cb   :  { %v11313_v33 = vadd.f32 %v8093_v10, %v8092_v31  ;;  %v9879_v31 = vld [vmem:[%s13176_s1 + $0x2e8] ss:$16 sps:$4 sm:$0xff]  }
 0x1cf   :  { %v8095_v34 = vpop.f32.mrb[108].mxu1 }
 0x1d0   :  { %v8096_v36 = vpop.f32.mrb[109].mxu1 }
 0x1d1   :  { %1678 = vmatmul.mubr.bf16.gmra.mrb[92].mxu0 %v9861_v49  ;;  %v11315_v18 = vadd.f32 %v8096_v36, %v8095_v34  ;;  %v8098_v38 = vpop.f32.mrb[110].mxu1 }
 0x1d2   :  { %1685 = vmatprep.mubr.bf16.mxu0 %v9865_v60  ;;  %v8099_v39 = vpop.f32.mrb[111].mxu1 }
 0x1d3   :  { %v11323_v37 = vadd.f32 %v8099_v39, %v8098_v38 }
 0x1d7   :  { %v8101_v4 = vpop.f32.mrb[112].mxu1 }
 0x1d8   :  { %v8102_v8 = vpop.f32.mrb[113].mxu1 }
 0x1d9   :  { %1686 = vmatmul.mubr.bf16.gmra.mrb[96].mxu0 %v9867_v50  ;;  %v11325_v6 = vadd.f32 %v8102_v8, %v8101_v4  ;;  %v8104_v1 = vpop.f32.mrb[114].mxu1 }
 0x1da   :  { %1693 = vmatprep.mubr.bf16.mxu0 %v9868_v2  ;;  %v8105_v35 = vpop.f32.mrb[115].mxu1 }
 0x1db   :  { %v11333_v7 = vadd.f32 %v8105_v35, %v8104_v1 }
 0x1df   :  { %v8107_v57 = vpop.f32.mrb[116].mxu1 }
 0x1e0   :  { %v8108_v3 = vpop.f32.mrb[117].mxu1 }
 0x1e1   :  { %1694 = vmatmul.mubr.bf16.gmra.mrb[100].mxu0 %v9870_v41  ;;  %v11335_v42 = vadd.f32 %v8108_v3, %v8107_v57  ;;  %v8110_v28 = vpop.f32.mrb[118].mxu1 }
 0x1e2   :  { %1701 = vmatprep.mubr.bf16.mxu0 %v9871_v11  ;;  %v8111_v17 = vpop.f32.mrb[119].mxu1 }
 0x1e3   :  { %v11343_v59 = vadd.f32 %v8111_v17, %v8110_v28 }
 0x1e7   :  { %v8113_v14 = vpop.f32.mrb[120].mxu1 }
 0x1e8   :  { %v8114_v22 = vpop.f32.mrb[121].mxu1 }
 0x1e9   :  { %1702 = vmatmul.mubr.bf16.gmra.mrb[104].mxu0 %v9873_v53  ;;  %v11345_v25 = vadd.f32 %v8114_v22, %v8113_v14  ;;  %v8116_v61 = vpop.f32.mrb[122].mxu1 }
 0x1ea   :  { %1709 = vmatprep.mubr.bf16.mxu0 %v9874_v16  ;;  %v8117_v32 = vpop.f32.mrb[123].mxu1 }
 0x1eb   :  { %v11353_v48 = vadd.f32 %v8117_v32, %v8116_v61 }
 0x1ef   :  { %v8135_v54 = vpop.f32.mrb[124].mxu1 }
 0x1f0   :  { %v8136_v23 = vpop.f32.mrb[125].mxu1 }
 0x1f1   :  { %1710 = vmatmul.mubr.bf16.gmra.mrb[108].mxu0 %v9876_v26  ;;  %v8137_v24 = vadd.f32 %v8136_v23, %v8135_v54  ;;  %v8138_v51 = vpop.f32.mrb[126].mxu1 }
 0x1f2   :  { %1717 = vmatprep.mubr.bf16.mxu0 %v9877_v0  ;;  %v8139_v49 = vpop.f32.mrb[127].mxu1 }
 0x1f3   :  { %v11359_v10 = vadd.f32 %v8137_v24, %v11264_v9  ;;  %v8140_v60 = vadd.f32 %v8139_v49, %v8138_v51 }
 0x1f5   :  { %v11362_v34 = vadd.f32 %v8140_v60, %v11270_v45 }
 0x1f7   :  { %v2263_v36 = vpack.c.bf16 %v11362_v34, %v11359_v10  ;;  %v8141_v38 = vpop.f32.mrb[128].mxu1  ;;  %v9885_v34 = vld [vmem:[%s13176_s1 + $0x404] ss:$16 sps:$4 sm:$0xff]  }
 0x1f8   :  { %v8142_v50 = vpop.f32.mrb[129].mxu1 }
 0x1f9   :  { %1718 = vmatmul.mubr.bf16.gmra.mrb[112].mxu0 %v9879_v31  ;;  %v8143_v39 = vadd.f32 %v8142_v50, %v8141_v38  ;;  %v8144_v2 = vpop.f32.mrb[130].mxu1 }
 0x1fa   :  { %v8145_v4 = vpop.f32.mrb[131].mxu1 }
 0x1fb   :  { %v11367_v8 = vadd.f32 %v8143_v39, %v11279_v63  ;;  %v8146_v1 = vadd.f32 %v8145_v4, %v8144_v2  ;;  %v9916_v63 = vld [vmem:[%s13176_s1 + $0x4cc] ss:$16 sps:$4 sm:$0xff]  }
 0x1fd   :  { %v11370_v9 = vadd.f32 %v8146_v1, %v11291_v62 }
 0x1ff   :  { %v2264_v45 = vpack.c.bf16 %v11370_v9, %v11367_v8  ;;  %v8147_v41 = vpop.f32.mrb[132].mxu1  ;;  %v7170_v8 = vld [vmem:[%s13177_s2 + $0x10] sm:$0xf] }
 0x200   :  { %v8148_v35 = vpop.f32.mrb[133].mxu1  ;;  %v9883_v9 = vld [vmem:[%s13176_s1 + $0x400] ss:$16 sps:$4 sm:$0xff]  }
 0x201   :  { %v8149_v11 = vadd.f32 %v8148_v35, %v8147_v41  ;;  %v8150_v57 = vpop.f32.mrb[134].mxu1 }
 0x202   :  { %v8151_v3 = vpop.f32.mrb[135].mxu1 }
 0x203   :  { %v11375_v28 = vadd.f32 %v8149_v11, %v11295_v30  ;;  %v8152_v53 = vadd.f32 %v8151_v3, %v8150_v57 }
 0x205   :  { %v11378_v17 = vadd.f32 %v8152_v53, %v11303_v40 }
 0x207   :  { %v8153_v62 = vpop.f32.mrb[136].mxu1 }
 0x208   :  { %v8154_v16 = vpop.f32.mrb[137].mxu1 }
 0x209   :  { %v8155_v14 = vadd.f32 %v8154_v16, %v8153_v62  ;;  %v8156_v22 = vpop.f32.mrb[138].mxu1 }
 0x20a   :  { %v8157_v61 = vpop.f32.mrb[139].mxu1 }
 0x20b   :  { %v11383_v26 = vadd.f32 %v8155_v14, %v11305_v27  ;;  %v8158_v32 = vadd.f32 %v8157_v61, %v8156_v22  ;;  %v9912_v27 = vld [vmem:[%s13176_s1 + $0x4a8] ss:$16 sps:$4 sm:$0xff]  }
 0x20d   :  { %v11386_v0 = vadd.f32 %v8158_v32, %v11313_v33 }
 0x20f   :  { %v8159_v40 = vpop.f32.mrb[140].mxu1 }
 0x210   :  { %v8160_v54 = vpop.f32.mrb[141].mxu1 }
 0x211   :  { %v8161_v23 = vadd.f32 %v8160_v54, %v8159_v40  ;;  %v8162_v24 = vpop.f32.mrb[142].mxu1 }
 0x212   :  { %v8163_v51 = vpop.f32.mrb[143].mxu1 }
 0x213   :  { %v11391_v31 = vadd.f32 %v8161_v23, %v11315_v18  ;;  %v8164_v49 = vadd.f32 %v8163_v51, %v8162_v24  ;;  %v11438_v24 = vld [vmem:[%s13175_s0] sm:$0xff]   ;;  %v11444_v51 = vld [vmem:[%s13175_s0 + $0x48] sm:$0xff]  }
 0x215   :  { %v11394_v60 = vadd.f32 %v8164_v49, %v11323_v37  ;;  %v9886_v49 = vld [vmem:[%s13176_s1 + $0x42c] ss:$16 sps:$4 sm:$0xff]  }
 0x217   :  { %v8165_v33 = vpop.f32.mrb[144].mxu1 }
 0x218   :  { %v8166_v38 = vpop.f32.mrb[145].mxu1 }
 0x219   :  { %v8167_v50 = vadd.f32 %v8166_v38, %v8165_v33  ;;  %v8168_v39 = vpop.f32.mrb[146].mxu1  ;;  %v9888_v33 = vld [vmem:[%s13176_s1 + $0x428] ss:$16 sps:$4 sm:$0xff]  }
 0x21a   :  { %v8169_v2 = vpop.f32.mrb[147].mxu1  ;;  %v11456_v38 = vld [vmem:[%s13175_s0 + $0x8] sm:$0xff]  }
 0x21b   :  { %v11399_v4 = vadd.f32 %v8167_v50, %v11325_v6  ;;  %v8170_v1 = vadd.f32 %v8169_v2, %v8168_v39  ;;  %v11462_v50 = vld [vmem:[%s13175_s0 + $0x50] sm:$0xff]   ;;  %v11474_v2 = vld [vmem:[%s13175_s0 + $0x58] sm:$0xff]  }
 0x21c   :  { %v11468_v39 = vld [vmem:[%s13175_s0 + $0x10] sm:$0xff]   ;;  %v9910_v6 = vld [vmem:[%s13176_s1 + $0x4ac] ss:$16 sps:$4 sm:$0xff]  }
 0x21d   :  { %v11402_v41 = vadd.f32 %v8170_v1, %v11333_v7  ;;  %v9892_v1 = vld [vmem:[%s13176_s1 + $0x44c] ss:$16 sps:$4 sm:$0xff]  }
 0x21f   :  { %v8171_v37 = vpop.f32.mrb[148].mxu1 }
 0x220   :  { %v8172_v35 = vpop.f32.mrb[149].mxu1 }
 0x221   :  { %v8173_v11 = vadd.f32 %v8172_v35, %v8171_v37  ;;  %v8174_v57 = vpop.f32.mrb[150].mxu1  ;;  %v9894_v37 = vld [vmem:[%s13176_s1 + $0x448] ss:$16 sps:$4 sm:$0xff]  }
 0x222   :  { %v8175_v3 = vpop.f32.mrb[151].mxu1  ;;  %v11486_v35 = vld [vmem:[%s13175_s0 + $0x18] sm:$0xff]  }
 0x223   :  { %v11407_v53 = vadd.f32 %v8173_v11, %v11335_v42  ;;  %v8176_v62 = vadd.f32 %v8175_v3, %v8174_v57  ;;  %v11492_v11 = vld [vmem:[%s13175_s0 + $0x60] sm:$0xff]   ;;  %v11504_v3 = vld [vmem:[%s13175_s0 + $0x68] sm:$0xff]   ;;  %v11547_v42 = vld [vmem:[%s13175_s0 + $0x38] sm:$0xff]  }
 0x224   :  { %v11498_v57 = vld [vmem:[%s13175_s0 + $0x20] sm:$0xff]  }
 0x225   :  { %v11410_v16 = vadd.f32 %v8176_v62, %v11343_v59  ;;  %v11425_v59 = vld [vmem:[%s13177_s2 + $0xc] sm:$0xf] }
 0x226   :  { %9650 = vmatprep.subr.msk.bf16.mxu0 %vm1114_vm0, %v11425_v59  ;;  %v9898_v62 = vld [vmem:[%s13176_s1 + $0x46c] ss:$16 sps:$4 sm:$0xff]  }
 0x227   :  { %v8177_v7 = vpop.f32.mrb[152].mxu1  ;;  %v13229_v10 = vpack.c.bf16 %v11410_v16, %v11407_v53  ;;  %v9909_v53 = vld [vmem:[%s13176_s1 + $0x480] ss:$16 sps:$4 sm:$0xff]   ;;  %v9913_v16 = vld [vmem:[%s13176_s1 + $0x4a4] ss:$16 sps:$4 sm:$0xff]  }
 0x228   :  { %v8178_v14 = vpop.f32.mrb[153].mxu1 }
 0x229   :  { %v8179_v22 = vadd.f32 %v8178_v14, %v8177_v7  ;;  %v8180_v61 = vpop.f32.mrb[154].mxu1  ;;  %v9900_v7 = vld [vmem:[%s13176_s1 + $0x468] ss:$16 sps:$4 sm:$0xff]  }
 0x22a   :  { %v8181_v32 = vpop.f32.mrb[155].mxu1  ;;  %v11516_v14 = vld [vmem:[%s13175_s0 + $0x28] sm:$0xff]  }
 0x22b   :  { %v11415_v40 = vadd.f32 %v8179_v22, %v11345_v25  ;;  %v8182_v54 = vadd.f32 %v8181_v32, %v8180_v61  ;;  %v9880_v25 = vld [vmem:[%s13176_s1 + $0x408] ss:$16 sps:$4 sm:$0xff]   ;;  %v11522_v22 = vld [vmem:[%s13175_s0 + $0x70] sm:$0xff]  }
 0x22c   :  { %v11528_v32 = vld [vmem:[%s13175_s0 + $0x30] sm:$0xff]  }
 0x22d   :  { %v11418_v23 = vadd.f32 %v8182_v54, %v11353_v48  ;;  %v9882_v48 = vld [vmem:[%s13176_s1 + $0x40c] ss:$16 sps:$4 sm:$0xff]  }
 0x22e   :  { %2735 = vmatprep.mubr.bf16.mxu1 %v9882_v48 }
 0x22f   :  { %2736 = vmatmul.mubr.bf16.vlgmr.msra.gmra.mrb[156].mxu1 %v9880_v25  ;;  %v11534_v25 = vld [vmem:[%s13175_s0 + $0x78] sm:$0xff]  }
 0x230   :  { %8330 = vmatpush3.bf16.msra.mxu1 %v11438_v24  ;;  %2743 = vmatprep.mubr.bf16.mxu1 %v9886_v49 }
 0x231   :  { %8331 = vmatprep.subr.bf16.mxu1 %v11444_v51 }
 0x234   :  { %8332 = vmatpush3.bf16.msra.mxu1 %v11456_v38 }
 0x235   :  { %8333 = vmatprep.subr.bf16.mxu1 %v11462_v50 }
 0x237   :  { %2744 = vmatmul.mubr.bf16.gmra.mrb[160].mxu1 %v9888_v33  ;;  %v9904_v33 = vld [vmem:[%s13176_s1 + $0x48c] ss:$16 sps:$4 sm:$0xff]  }
 0x238   :  { %8334 = vmatpush3.bf16.msra.mxu1 %v11468_v39  ;;  %2751 = vmatprep.mubr.bf16.mxu1 %v9892_v1 }
 0x239   :  { %8335 = vmatprep.subr.bf16.mxu1 %v11474_v2 }
 0x23c   :  { %8336 = vmatpush3.bf16.msra.mxu1 %v11486_v35 }
 0x23d   :  { %8337 = vmatprep.subr.bf16.mxu1 %v11492_v11 }
 0x23f   :  { %2752 = vmatmul.mubr.bf16.gmra.mrb[164].mxu1 %v9894_v37  ;;  %v9906_v37 = vld [vmem:[%s13176_s1 + $0x488] ss:$16 sps:$4 sm:$0xff]  }
 0x240   :  { %8338 = vmatpush3.bf16.msra.mxu1 %v11498_v57  ;;  %2759 = vmatprep.mubr.bf16.mxu1 %v9898_v62 }
 0x241   :  { %8339 = vmatprep.subr.bf16.mxu1 %v11504_v3 }
 0x244   :  { %8340 = vmatpush3.bf16.msra.mxu1 %v11516_v14 }
 0x245   :  { %8341 = vmatprep.subr.bf16.mxu1 %v11522_v22 }
 0x247   :  { %2760 = vmatmul.mubr.bf16.gmra.mrb[168].mxu1 %v9900_v7 }
 0x248   :  { %8342 = vmatpush3.bf16.msra.mxu1 %v11528_v32  ;;  %2767 = vmatprep.mubr.bf16.mxu1 %v9904_v33 }
 0x249   :  { %8343 = vmatprep.subr.bf16.mxu1 %v11534_v25 }
 0x24c   :  { %8344 = vmatpush3.bf16.msra.mxu1 %v11547_v42 }
 0x24f   :  { %2768 = vmatmul.mubr.bf16.gmra.mrb[172].mxu1 %v9906_v37 }
 0x250   :  { %2775 = vmatprep.mubr.bf16.mxu1 %v9910_v6 }
 0x257   :  { %2776 = vmatmul.mubr.bf16.gmra.mrb[176].mxu1 %v9912_v27 }
 0x258   :  { %2783 = vmatprep.mubr.bf16.mxu1 %v9916_v63 }
 0x294   :  { %v7998_v61 = vpop.f32.mrb[84].mxu0 }
 0x295   :  { %v7999_v54 = vpop.f32.mrb[85].mxu0 }
 0x296   :  { %v8000_v48 = vadd.f32 %v7999_v54, %v7998_v61  ;;  %v8001_v49 = vpop.f32.mrb[86].mxu0  ;;  %v11553_v61 = vld [vmem:[%s13175_s0 + $0x40] sm:$0xff]  }
 0x297   :  { %v8002_v1 = vpop.f32.mrb[87].mxu0  ;;  %8466 = vmatprep.subr.bf16.mxu1 %v11553_v61 }
 0x298   :  { %v1664_v62 = vadd.f32 %v8000_v48, %v11167_v46  ;;  %v8003_v7 = vadd.f32 %v8002_v1, %v8001_v49 }
 0x29a   :  { %v1667_v54 = vadd.f32 %v8003_v7, %v11170_v20 }
 0x29c   :  { %v1726_v46 = vpack.c.bf16 %v1667_v54, %v1664_v62  ;;  %v8004_v48 = vpop.f32.mrb[88].mxu0  ;;  %v2298_v54 = vsel %vm1114_vm0, %v11425_v59, 0 }
 0x29d   :  { %v8005_v49 = vpop.f32.mrb[89].mxu0 }
 0x29e   :  { %v8006_v33 = vadd.f32 %v8005_v49, %v8004_v48  ;;  %v8007_v1 = vpop.f32.mrb[90].mxu0  ;;  %9059 = vmatprep.mubr.msk.bf16.mxu0 %vm1089_vm1, %v1726_v46 }
 0x29f   :  { %v8008_v18 = vpop.f32.mrb[91].mxu0 }
 0x2a0   :  { %v1672_v30 = vadd.f32 %v8006_v33, %v11174_v55  ;;  %v8009_v20 = vadd.f32 %v8008_v18, %v8007_v1 }
 0x2a2   :  { %v1675_v37 = vadd.f32 %v8009_v20, %v11181_v19  ;;  %v9918_v19 = vld [vmem:[%s13176_s1 + $0x4c8] ss:$16 sps:$4 sm:$0xff]  }
 0x2a3   :  { %2784 = vmatmul.mubr.bf16.gmra.mrb[180].mxu1 %v9918_v19 }
 0x2a4   :  { %v1727_v62 = vpack.c.bf16 %v1675_v37, %v1672_v30  ;;  %v8010_v7 = vpop.f32.mrb[92].mxu0  ;;  %v9922_v37 = vld [vmem:[%s13176_s1 + $0x4ec] ss:$16 sps:$4 sm:$0xff]  }
 0x2a5   :  { %v8011_v46 = vpop.f32.mrb[93].mxu0  ;;  %2791 = vmatprep.mubr.bf16.mxu1 %v9922_v37 }
 0x2a6   :  { %v8012_v48 = vadd.f32 %v8011_v46, %v8010_v7  ;;  %v8013_v49 = vpop.f32.mrb[94].mxu0  ;;  %9060 = vmatmul.mubr.msk.bf16.vlgmr.msra.gmra.mrb[68].mxu0 %vm1089_vm1, %v1727_v62 }
 0x2a7   :  { %v8014_v55 = vpop.f32.mrb[95].mxu0  ;;  %9076 = vmatpush3.bf16.msra.mxu0 %v2298_v54 }
 0x2a8   :  { %v1680_v30 = vadd.f32 %v8012_v48, %v11188_v29  ;;  %v8015_v27 = vadd.f32 %v8014_v55, %v8013_v49  ;;  %8192 = vmatprep.subr.bf16.mxu0 %v11553_v61  ;;  %v9924_v29 = vld [vmem:[%s13176_s1 + $0x4e8] ss:$16 sps:$4 sm:$0xff]  }
 0x2aa   :  { %v1683_v18 = vadd.f32 %v8015_v27, %v11190_v44 }
 0x2ab   :  { %2792 = vmatmul.mubr.bf16.gmra.mrb[184].mxu1 %v9924_v29 }
 0x2ac   :  { %v1728_v6 = vpack.c.bf16 %v1683_v18, %v1680_v30  ;;  %v8016_v59 = vpop.f32.mrb[96].mxu0 }
 0x2ad   :  { %v8017_v33 = vpop.f32.mrb[97].mxu0 }
 0x2ae   :  { %v8018_v1 = vadd.f32 %v8017_v33, %v8016_v59  ;;  %v8019_v20 = vpop.f32.mrb[98].mxu0  ;;  %9063 = vmatprep.mubr.msk.bf16.mxu0 %vm1089_vm1, %v1728_v6 }
 0x2af   :  { %v8020_v62 = vpop.f32.mrb[99].mxu0 }
 0x2b0   :  { %v1688_v63 = vadd.f32 %v8018_v1, %v11200_v58  ;;  %v8021_v44 = vadd.f32 %v8020_v62, %v8019_v20 }
 0x2b2   :  { %v1691_v7 = vadd.f32 %v8021_v44, %v11202_v5 }
 0x2b4   :  { %v1729_v54 = vpack.c.bf16 %v1691_v7, %v1688_v63  ;;  %v8022_v46 = vpop.f32.mrb[100].mxu0 }
 0x2b5   :  { %v8023_v48 = vpop.f32.mrb[101].mxu0 }
 0x2b6   :  { %v8024_v49 = vadd.f32 %v8023_v48, %v8022_v46  ;;  %v8025_v55 = vpop.f32.mrb[102].mxu0  ;;  %9064 = vmatmul.mubr.msk.bf16.gmra.mrb[72].mxu0 %vm1089_vm1, %v1729_v54 }
 0x2b7   :  { %v8026_v19 = vpop.f32.mrb[103].mxu0 }
 0x2b8   :  { %v1696_v30 = vadd.f32 %v8024_v49, %v11209_v52  ;;  %v8027_v27 = vadd.f32 %v8026_v19, %v8025_v55 }
 0x2ba   :  { %v1699_v18 = vadd.f32 %v8027_v27, %v11211_v21 }
 0x2bc   :  { %v1730_v6 = vpack.c.bf16 %v1699_v18, %v1696_v30  ;;  %v8028_v58 = vpop.f32.mrb[104].mxu0 }
 0x2bd   :  { %v8029_v59 = vpop.f32.mrb[105].mxu0 }
 0x2be   :  { %v8030_v33 = vadd.f32 %v8029_v59, %v8028_v58  ;;  %v8031_v1 = vpop.f32.mrb[106].mxu0  ;;  %9067 = vmatprep.mubr.msk.bf16.mxu0 %vm1089_vm1, %v1730_v6  ;;  %v9921_v59 = vld [vmem:[%s13176_s1 + $0x4c0] ss:$16 sps:$4 sm:$0xff]  }
 0x2bf   :  { %v8032_v5 = vpop.f32.mrb[107].mxu0 }
 0x2c0   :  { %v1704_v20 = vadd.f32 %v8030_v33, %v11218_v43  ;;  %v8033_v37 = vadd.f32 %v8032_v5, %v8031_v1  ;;  %v9925_v33 = vld [vmem:[%s13176_s1 + $0x4e4] ss:$16 sps:$4 sm:$0xff]   ;;  %v9927_v1 = vld [vmem:[%s13176_s1 + $0x4e0] ss:$16 sps:$4 sm:$0xff]  }
 0x2c2   :  { %v1707_v62 = vadd.f32 %v8033_v37, %v11220_v13 }
 0x2c4   :  { %v1731_v29 = vpack.c.bf16 %v1707_v62, %v1704_v20  ;;  %v8034_v63 = vpop.f32.mrb[108].mxu0 }
 0x2c5   :  { %v8035_v44 = vpop.f32.mrb[109].mxu0 }
 0x2c6   :  { %v8036_v52 = vadd.f32 %v8035_v44, %v8034_v63  ;;  %v8037_v7 = vpop.f32.mrb[110].mxu0  ;;  %9068 = vmatmul.mubr.msk.bf16.gmra.mrb[76].mxu0 %vm1089_vm1, %v1731_v29 }
 0x2c7   :  { %v8038_v21 = vpop.f32.mrb[111].mxu0 }
 0x2c8   :  { %v1712_v54 = vadd.f32 %v8036_v52, %v11232_v12  ;;  %v8039_v46 = vadd.f32 %v8038_v21, %v8037_v7  ;;  %v13225_v12 = vpack.c.bf16 %v11378_v17, %v11375_v28  ;;  %v2835_v28 = vsel %vm1114_vm0, %v7170_v8, 0  ;;  %v11664_v17 = vld [vmem:[%s13175_s0 + $0xc0] sm:$0xff]  }
 0x2ca   :  { %v1715_v48 = vadd.f32 %v8039_v46, %v11235_v56  ;;  %v13226_v56 = vpack.c.bf16 %v11386_v0, %v11383_v26  ;;  %v9891_v26 = vld [vmem:[%s13176_s1 + $0x420] ss:$16 sps:$4 sm:$0xff]   ;;  %v9895_v0 = vld [vmem:[%s13176_s1 + $0x444] ss:$16 sps:$4 sm:$0xff]  }
 0x2cc   :  { %v1732_v49 = vpack.c.bf16 %v1715_v48, %v1712_v54  ;;  %v8040_v55 = vpop.f32.mrb[112].mxu0 }
 0x2cd   :  { %v8041_v19 = vpop.f32.mrb[113].mxu0 }
 0x2ce   :  { %v8042_v43 = vadd.f32 %v8041_v19, %v8040_v55  ;;  %v8043_v30 = vpop.f32.mrb[114].mxu0  ;;  %9071 = vmatprep.mubr.msk.bf16.mxu0 %vm1089_vm1, %v1732_v49 }
 0x2cf   :  { %v8044_v13 = vpop.f32.mrb[115].mxu0 }
 0x2d0   :  { %v1720_v27 = vadd.f32 %v8042_v43, %v11248_v15  ;;  %v8045_v18 = vadd.f32 %v8044_v13, %v8043_v30  ;;  %v13227_v15 = vpack.c.bf16 %v11394_v60, %v11391_v31  ;;  %v9897_v31 = vld [vmem:[%s13176_s1 + $0x440] ss:$16 sps:$4 sm:$0xff]   ;;  %v9901_v60 = vld [vmem:[%s13176_s1 + $0x464] ss:$16 sps:$4 sm:$0xff]  }
 0x2d2   :  { %v1723_v6 = vadd.f32 %v8045_v18, %v11251_v47  ;;  %v13228_v47 = vpack.c.bf16 %v11402_v41, %v11399_v4  ;;  %v9903_v4 = vld [vmem:[%s13176_s1 + $0x460] ss:$16 sps:$4 sm:$0xff]   ;;  %v9907_v41 = vld [vmem:[%s13176_s1 + $0x484] ss:$16 sps:$4 sm:$0xff]  }
 0x2d4   :  { %v1733_v58 = vpack.c.bf16 %v1723_v6, %v1720_v27 }
 0x2d6   :  { %9072 = vmatmul.mubr.msk.bf16.gmra.mrb[80].mxu0 %vm1089_vm1, %v1733_v58 }
 0x2d7   :  { %9077 = vmatprep.mubr.msk.bf16.mxu0 %vm1089_vm1, %v2263_v36  ;;  %v13230_v36 = vpack.c.bf16 %v11418_v23, %v11415_v40  ;;  %v9915_v40 = vld [vmem:[%s13176_s1 + $0x4a0] ss:$16 sps:$4 sm:$0xff]   ;;  %v9919_v23 = vld [vmem:[%s13176_s1 + $0x4c4] ss:$16 sps:$4 sm:$0xff]  }
 0x2de   :  { %9078 = vmatmul.mubr.msk.bf16.vlgmr.msra.gmra.mrb[68].mxu0 %vm1089_vm1, %v2264_v45  ;;  %v9889_v45 = vld [vmem:[%s13176_s1 + $0x424] ss:$16 sps:$4 sm:$0xff]  }
 0x2df   :  { %9081 = vmatprep.mubr.msk.bf16.mxu0 %vm1089_vm1, %v13225_v12  ;;  %8193 = vmatpush3.bf16.msra.mxu0 %v11438_v24 }
 0x2e0   :  { %8194 = vmatprep.subr.bf16.mxu0 %v11444_v51 }
 0x2e3   :  { %8195 = vmatpush3.bf16.msra.mxu0 %v11456_v38 }
 0x2e4   :  { %8196 = vmatprep.subr.bf16.mxu0 %v11462_v50 }
 0x2e6   :  { %9082 = vmatmul.mubr.msk.bf16.gmra.mrb[72].mxu0 %vm1089_vm1, %v13226_v56 }
 0x2e7   :  { %9085 = vmatprep.mubr.msk.bf16.mxu0 %vm1089_vm1, %v13227_v15  ;;  %8197 = vmatpush3.bf16.msra.mxu0 %v11468_v39 }
 0x2e8   :  { %8198 = vmatprep.subr.bf16.mxu0 %v11474_v2 }
 0x2eb   :  { %8199 = vmatpush3.bf16.msra.mxu0 %v11486_v35 }
 0x2ec   :  { %8200 = vmatprep.subr.bf16.mxu0 %v11492_v11 }
 0x2ee   :  { %9086 = vmatmul.mubr.msk.bf16.gmra.mrb[76].mxu0 %vm1089_vm1, %v13228_v47 }
 0x2ef   :  { %9089 = vmatprep.mubr.msk.bf16.mxu0 %vm1089_vm1, %v13229_v10  ;;  %8201 = vmatpush3.bf16.msra.mxu0 %v11498_v57 }
 0x2f0   :  { %8202 = vmatprep.subr.bf16.mxu0 %v11504_v3 }
 0x2f3   :  { %8203 = vmatpush3.bf16.msra.mxu0 %v11516_v14 }
 0x2f4   :  { %8204 = vmatprep.subr.bf16.mxu0 %v11522_v22 }
 0x2f6   :  { %9090 = vmatmul.mubr.msk.bf16.gmra.mrb[80].mxu0 %vm1089_vm1, %v13230_v36 }
 0x2f7   :  { %8205 = vmatpush3.bf16.msra.mxu0 %v11528_v32  ;;  %2638 = vmatprep.mubr.bf16.mxu0 %v9885_v34 }
 0x2f8   :  { %8206 = vmatprep.subr.bf16.mxu0 %v11534_v25 }
 0x2fb   :  { %8207 = vmatpush3.bf16.msra.mxu0 %v11547_v42 }
 0x2fc   :  { %9651 = vmatprep.subr.msk.bf16.mxu0 %vm1114_vm0, %v7170_v8 }
 0x2fe   :  { %2639 = vmatmul.mubr.bf16.vlgmr.msra.gmra.mrb[116].mxu0 %v9883_v9 }
 0x2ff   :  { %2646 = vmatprep.mubr.bf16.mxu0 %v9889_v45  ;;  %9094 = vmatpush3.bf16.msra.mxu0 %v2835_v28 }
 0x300   :  { %8393 = vmatprep.subr.bf16.mxu0 %v11664_v17 }
 0x302   :  { %v8272_v5 = vpop.f32.mrb[156].mxu1 }
 0x303   :  { %v8273_v20 = vpop.f32.mrb[157].mxu1 }
 0x304   :  { %v11706_v37 = vadd.f32 %v8273_v20, %v8272_v5  ;;  %v8275_v62 = vpop.f32.mrb[158].mxu1  ;;  %v9928_v20 = vld [vmem:[%s13176_s1 + $0x500] ss:$16 sps:$4 sm:$0xff]  }
 0x305   :  { %v8276_v29 = vpop.f32.mrb[159].mxu1 }
 0x306   :  { %2647 = vmatmul.mubr.bf16.gmra.mrb[120].mxu0 %v9891_v26  ;;  %v11708_v63 = vadd.f32 %v8276_v29, %v8275_v62  ;;  %v9930_v62 = vld [vmem:[%s13176_s1 + $0x504] ss:$16 sps:$4 sm:$0xff]  }
 0x307   :  { %2654 = vmatprep.mubr.bf16.mxu0 %v9895_v0  ;;  %3175 = vmatprep.mubr.bf16.mxu1 %v9930_v62  ;;  %v9934_v29 = vld [vmem:[%s13176_s1 + $0x524] ss:$16 sps:$4 sm:$0xff]  }
 0x308   :  { %3176 = vmatmul.mubr.bf16.vlgmr.msra.gmra.mrb[188].mxu1 %v9928_v20 }
 0x309   :  { %8467 = vmatpush3.bf16.msra.mxu1 %v11438_v24  ;;  %3183 = vmatprep.mubr.bf16.mxu1 %v9934_v29 }
 0x30a   :  { %v8278_v44 = vpop.f32.mrb[160].mxu1  ;;  %8468 = vmatprep.subr.bf16.mxu1 %v11444_v51 }
 0x30b   :  { %v8279_v52 = vpop.f32.mrb[161].mxu1 }
 0x30c   :  { %v11710_v7 = vadd.f32 %v8279_v52, %v8278_v44  ;;  %v8281_v21 = vpop.f32.mrb[162].mxu1  ;;  %v9936_v44 = vld [vmem:[%s13176_s1 + $0x520] ss:$16 sps:$4 sm:$0xff]   ;;  %v9940_v52 = vld [vmem:[%s13176_s1 + $0x544] ss:$16 sps:$4 sm:$0xff]  }
 0x30d   :  { %v8282_v54 = vpop.f32.mrb[163].mxu1  ;;  %8469 = vmatpush3.bf16.msra.mxu1 %v11456_v38 }
 0x30e   :  { %2655 = vmatmul.mubr.bf16.gmra.mrb[124].mxu0 %v9897_v31  ;;  %v11712_v46 = vadd.f32 %v8282_v54, %v8281_v21  ;;  %8470 = vmatprep.subr.bf16.mxu1 %v11462_v50  ;;  %v9942_v21 = vld [vmem:[%s13176_s1 + $0x540] ss:$16 sps:$4 sm:$0xff]   ;;  %v9946_v54 = vld [vmem:[%s13176_s1 + $0x564] ss:$16 sps:$4 sm:$0xff]  }
 0x30f   :  { %2662 = vmatprep.mubr.bf16.mxu0 %v9901_v60 }
 0x310   :  { %3184 = vmatmul.mubr.bf16.gmra.mrb[192].mxu1 %v9936_v44 }
 0x311   :  { %8471 = vmatpush3.bf16.msra.mxu1 %v11468_v39  ;;  %3191 = vmatprep.mubr.bf16.mxu1 %v9940_v52 }
 0x312   :  { %v8284_v48 = vpop.f32.mrb[164].mxu1  ;;  %8472 = vmatprep.subr.bf16.mxu1 %v11474_v2 }
 0x313   :  { %v8285_v49 = vpop.f32.mrb[165].mxu1 }
 0x314   :  { %v11714_v55 = vadd.f32 %v8285_v49, %v8284_v48  ;;  %v8287_v19 = vpop.f32.mrb[166].mxu1  ;;  %v9948_v48 = vld [vmem:[%s13176_s1 + $0x560] ss:$16 sps:$4 sm:$0xff]   ;;  %v9952_v49 = vld [vmem:[%s13176_s1 + $0x584] ss:$16 sps:$4 sm:$0xff]  }
 0x315   :  { %v8288_v43 = vpop.f32.mrb[167].mxu1  ;;  %8473 = vmatpush3.bf16.msra.mxu1 %v11486_v35 }
 0x316   :  { %2663 = vmatmul.mubr.bf16.gmra.mrb[128].mxu0 %v9903_v4  ;;  %v11716_v30 = vadd.f32 %v8288_v43, %v8287_v19  ;;  %8474 = vmatprep.subr.bf16.mxu1 %v11492_v11  ;;  %v9954_v19 = vld [vmem:[%s13176_s1 + $0x580] ss:$16 sps:$4 sm:$0xff]   ;;  %v9958_v43 = vld [vmem:[%s13176_s1 + $0x5a4] ss:$16 sps:$4 sm:$0xff]  }
 0x317   :  { %2670 = vmatprep.mubr.bf16.mxu0 %v9907_v41 }
 0x318   :  { %3192 = vmatmul.mubr.bf16.gmra.mrb[196].mxu1 %v9942_v21 }
 0x319   :  { %8475 = vmatpush3.bf16.msra.mxu1 %v11498_v57  ;;  %3199 = vmatprep.mubr.bf16.mxu1 %v9946_v54 }
 0x31a   :  { %v8290_v13 = vpop.f32.mrb[168].mxu1  ;;  %8476 = vmatprep.subr.bf16.mxu1 %v11504_v3 }
 0x31b   :  { %v8291_v27 = vpop.f32.mrb[169].mxu1 }
 0x31c   :  { %v11718_v18 = vadd.f32 %v8291_v27, %v8290_v13  ;;  %v8293_v6 = vpop.f32.mrb[170].mxu1  ;;  %v9960_v13 = vld [vmem:[%s13176_s1 + $0x5a0] ss:$16 sps:$4 sm:$0xff]   ;;  %v9964_v27 = vld [vmem:[%s13176_s1 + $0x5c4] ss:$16 sps:$4 sm:$0xff]  }
 0x31d   :  { %v8294_v58 = vpop.f32.mrb[171].mxu1  ;;  %8477 = vmatpush3.bf16.msra.mxu1 %v11516_v14 }
 0x31e   :  { %2671 = vmatmul.mubr.bf16.gmra.mrb[132].mxu0 %v9909_v53  ;;  %v11720_v12 = vadd.f32 %v8294_v58, %v8293_v6  ;;  %8478 = vmatprep.subr.bf16.mxu1 %v11522_v22  ;;  %v9970_v6 = vld [vmem:[%s13176_s1 + $0x5e4] ss:$16 sps:$4 sm:$0xff]   ;;  %v9972_v58 = vld [vmem:[%s13176_s1 + $0x5e0] ss:$16 sps:$4 sm:$0xff]  }
 0x31f   :  { %2678 = vmatprep.mubr.bf16.mxu0 %v9913_v16 }
 0x320   :  { %3200 = vmatmul.mubr.bf16.gmra.mrb[200].mxu1 %v9948_v48  ;;  %v11847_v48 = vld [vmem:[%s13175_s0 + $0xc8] sm:$0xff]  }
 0x321   :  { %8479 = vmatpush3.bf16.msra.mxu1 %v11528_v32  ;;  %3207 = vmatprep.mubr.bf16.mxu1 %v9952_v49 }
 0x322   :  { %v8296_v56 = vpop.f32.mrb[172].mxu1  ;;  %8480 = vmatprep.subr.bf16.mxu1 %v11534_v25 }
 0x323   :  { %v8297_v15 = vpop.f32.mrb[173].mxu1 }
 0x324   :  { %v11722_v47 = vadd.f32 %v8297_v15, %v8296_v56  ;;  %v8299_v10 = vpop.f32.mrb[174].mxu1 }
 0x325   :  { %v8300_v34 = vpop.f32.mrb[175].mxu1  ;;  %8481 = vmatpush3.bf16.msra.mxu1 %v11547_v42 }
 0x326   :  { %2679 = vmatmul.mubr.bf16.gmra.mrb[136].mxu0 %v9915_v40  ;;  %v11724_v36 = vadd.f32 %v8300_v34, %v8299_v10  ;;  %8603 = vmatprep.subr.bf16.mxu1 %v11553_v61  ;;  %v9966_v61 = vld [vmem:[%s13176_s1 + $0x5c0] ss:$16 sps:$4 sm:$0xff]  }
 0x327   :  { %2686 = vmatprep.mubr.bf16.mxu0 %v9919_v23 }
 0x328   :  { %3208 = vmatmul.mubr.bf16.gmra.mrb[204].mxu1 %v9954_v19  ;;  %v11862_v19 = vld [vmem:[%s13175_s0 + $0xd0] sm:$0xff]  }
 0x329   :  { %3215 = vmatprep.mubr.bf16.mxu1 %v9958_v43 }
 0x32a   :  { %v8302_v8 = vpop.f32.mrb[176].mxu1 }
 0x32b   :  { %v8303_v9 = vpop.f32.mrb[177].mxu1 }
 0x32c   :  { %v11726_v45 = vadd.f32 %v8303_v9, %v8302_v8  ;;  %v8305_v28 = vpop.f32.mrb[178].mxu1  ;;  %v9976_v8 = vld [vmem:[%s13176_s1 + $0x600] ss:$16 sps:$4 sm:$0xff]   ;;  %v9978_v9 = vld [vmem:[%s13176_s1 + $0x604] ss:$16 sps:$4 sm:$0xff]  }
 0x32d   :  { %v8306_v26 = vpop.f32.mrb[179].mxu1 }
 0x32e   :  { %2687 = vmatmul.mubr.bf16.gmra.mrb[140].mxu0 %v9921_v59  ;;  %v11728_v0 = vadd.f32 %v8306_v26, %v8305_v28  ;;  %v9979_v26 = vld [vmem:[%s13176_s1 + $0x624] ss:$16 sps:$4 sm:$0xff]  }
 0x32f   :  { %2694 = vmatprep.mubr.bf16.mxu0 %v9925_v33 }
 0x330   :  { %3216 = vmatmul.mubr.bf16.gmra.mrb[208].mxu1 %v9960_v13 }
 0x331   :  { %3223 = vmatprep.mubr.bf16.mxu1 %v9964_v27 }
 0x336   :  { %2695 = vmatmul.mubr.bf16.gmra.mrb[144].mxu0 %v9927_v1 }
 0x338   :  { %3224 = vmatmul.mubr.bf16.gmra.mrb[212].mxu1 %v9966_v61  ;;  %v11876_v61 = vld [vmem:[%s13175_s0 + $0x90] sm:$0xff]  }
 0x339   :  { %3231 = vmatprep.mubr.bf16.mxu1 %v9970_v6 }
 0x340   :  { %3232 = vmatmul.mubr.bf16.gmra.mrb[216].mxu1 %v9972_v58 }
 0x341   :  { %3712 = vmatprep.mubr.bf16.mxu1 %v9978_v9 }
 0x348   :  { %3713 = vmatmul.mubr.bf16.vlgmr.msra.gmra.mrb[220].mxu1 %v9976_v8 }
 0x349   :  { %3720 = vmatprep.mubr.bf16.mxu1 %v9979_v26  ;;  %8604 = vmatpush3.bf16.msra.mxu1 %v11438_v24 }
 0x34a   :  { %8605 = vmatprep.subr.bf16.mxu1 %v11444_v51 }
 0x34d   :  { %8606 = vmatpush3.bf16.msra.mxu1 %v11456_v38  ;;  %v9984_v38 = vld [vmem:[%s13176_s1 + $0x640] ss:$16 sps:$4 sm:$0xff]  }
 0x34e   :  { %8607 = vmatprep.subr.bf16.mxu1 %v11462_v50 }
 0x351   :  { %8608 = vmatpush3.bf16.msra.mxu1 %v11468_v39 }
 0x352   :  { %8609 = vmatprep.subr.bf16.mxu1 %v11474_v2  ;;  %v11839_v2 = vld [vmem:[%s13175_s0 + $0x80] sm:$0xff]  }
 0x355   :  { %8610 = vmatpush3.bf16.msra.mxu1 %v11486_v35 }
 0x356   :  { %8611 = vmatprep.subr.bf16.mxu1 %v11492_v11  ;;  %v11855_v11 = vld [vmem:[%s13175_s0 + $0x88] sm:$0xff]  }
 0x359   :  { %8612 = vmatpush3.bf16.msra.mxu1 %v11498_v57  ;;  %v9987_v57 = vld [vmem:[%s13176_s1 + $0x660] ss:$16 sps:$4 sm:$0xff]  }
 0x35a   :  { %8613 = vmatprep.subr.bf16.mxu1 %v11504_v3  ;;  %v9988_v3 = vld [vmem:[%s13176_s1 + $0x684] ss:$16 sps:$4 sm:$0xff]  }
 0x35d   :  { %8614 = vmatpush3.bf16.msra.mxu1 %v11516_v14 }
 0x35e   :  { %8615 = vmatprep.subr.bf16.mxu1 %v11522_v22  ;;  %v11892_v22 = vld [vmem:[%s13175_s0 + $0x98] sm:$0xff]  }
 0x361   :  { %8616 = vmatpush3.bf16.msra.mxu1 %v11528_v32  ;;  %v9990_v32 = vld [vmem:[%s13176_s1 + $0x680] ss:$16 sps:$4 sm:$0xff]  }
 0x362   :  { %8617 = vmatprep.subr.bf16.mxu1 %v11534_v25  ;;  %v9991_v25 = vld [vmem:[%s13176_s1 + $0x6a4] ss:$16 sps:$4 sm:$0xff]  }
 0x365   :  { %8618 = vmatpush3.bf16.msra.mxu1 %v11547_v42 }
 0x366   :  { %8667 = vmatprep.subr.bf16.mxu1 %v11664_v17 }
 0x376   :  { %v8308_v31 = vpop.f32.mrb[180].mxu1 }
 0x377   :  { %v8309_v60 = vpop.f32.mrb[181].mxu1 }
 0x378   :  { %v11730_v4 = vadd.f32 %v8309_v60, %v8308_v31  ;;  %v8311_v41 = vpop.f32.mrb[182].mxu1 }
 0x379   :  { %v8312_v53 = vpop.f32.mrb[183].mxu1 }
 0x37a   :  { %v11732_v16 = vadd.f32 %v8312_v53, %v8311_v41 }
 0x37e   :  { %v8314_v40 = vpop.f32.mrb[184].mxu1 }
 0x37f   :  { %v8315_v23 = vpop.f32.mrb[185].mxu1 }
 0x380   :  { %v11734_v59 = vadd.f32 %v8315_v23, %v8314_v40  ;;  %v8317_v33 = vpop.f32.mrb[186].mxu1 }
 0x381   :  { %v8318_v1 = vpop.f32.mrb[187].mxu1 }
 0x382   :  { %v11736_v5 = vadd.f32 %v8318_v1, %v8317_v33  ;;  %v9981_v33 = vld [vmem:[%s13176_s1 + $0x620] ss:$16 sps:$4 sm:$0xff]  }
 0x383   :  { %3721 = vmatmul.mubr.bf16.gmra.mrb[224].mxu1 %v9981_v33 }
 0x3d1   :  { %v8208_v56 = vpop.f32.mrb[116].mxu0 }
 0x3d2   :  { %v8209_v15 = vpop.f32.mrb[117].mxu0 }
 0x3d3   :  { %v8210_v10 = vadd.f32 %v8209_v15, %v8208_v56  ;;  %v8211_v34 = vpop.f32.mrb[118].mxu0  ;;  %v11884_v56 = vld [vmem:[%s13175_s0 + $0xd8] sm:$0xff]  }
 0x3d4   :  { %v8212_v28 = vpop.f32.mrb[119].mxu0 }
 0x3d5   :  { %v2738_v31 = vadd.f32 %v11706_v37, %v8210_v10  ;;  %v8213_v60 = vadd.f32 %v8212_v28, %v8211_v34  ;;  %v9982_v37 = vld [vmem:[%s13176_s1 + $0x644] ss:$16 sps:$4 sm:$0xff]  }
 0x3d6   :  { %3728 = vmatprep.mubr.bf16.mxu1 %v9982_v37  ;;  %v11899_v10 = vld [vmem:[%s13175_s0 + $0xe0] sm:$0xff]  }
 0x3d7   :  { %v2741_v41 = vadd.f32 %v11708_v63, %v8213_v60  ;;  %3729 = vmatmul.mubr.bf16.gmra.mrb[228].mxu1 %v9984_v38  ;;  %v11913_v28 = vld [vmem:[%s13175_s0 + $0xa0] sm:$0xff]   ;;  %v11921_v60 = vld [vmem:[%s13175_s0 + $0xe8] sm:$0xff]  }
 0x3d9   :  { %v2800_v53 = vpack.c.bf16 %v2741_v41, %v2738_v31  ;;  %v8214_v40 = vpop.f32.mrb[120].mxu0  ;;  %v11928_v41 = vld [vmem:[%s13175_s0 + $0xa8] sm:$0xff]  }
 0x3da   :  { %v8215_v23 = vpop.f32.mrb[121].mxu0 }
 0x3db   :  { %v8216_v1 = vadd.f32 %v8215_v23, %v8214_v40  ;;  %v8217_v20 = vpop.f32.mrb[122].mxu0  ;;  %9095 = vmatprep.mubr.msk.bf16.mxu0 %vm1089_vm1, %v2800_v53  ;;  %v11934_v40 = vld [vmem:[%s13175_s0 + $0xf0] sm:$0xff]  }
 0x3dc   :  { %v8218_v24 = vpop.f32.mrb[123].mxu0 }
 0x3dd   :  { %v2746_v51 = vadd.f32 %v11710_v7, %v8216_v1  ;;  %v8219_v63 = vadd.f32 %v8218_v24, %v8217_v20  ;;  %v9985_v7 = vld [vmem:[%s13176_s1 + $0x664] ss:$16 sps:$4 sm:$0xff]  }
 0x3de   :  { %3736 = vmatprep.mubr.bf16.mxu1 %v9985_v7  ;;  %v9994_v20 = vld [vmem:[%s13176_s1 + $0x6c4] ss:$16 sps:$4 sm:$0xff]  }
 0x3df   :  { %v2749_v62 = vadd.f32 %v11712_v46, %v8219_v63  ;;  %3737 = vmatmul.mubr.bf16.gmra.mrb[232].mxu1 %v9987_v57  ;;  %v11947_v24 = vld [vmem:[%s13175_s0 + $0xb0] sm:$0xff]  }
 0x3e0   :  { %3744 = vmatprep.mubr.bf16.mxu1 %v9988_v3 }
 0x3e1   :  { %v2801_v29 = vpack.c.bf16 %v2749_v62, %v2746_v51  ;;  %v8220_v44 = vpop.f32.mrb[124].mxu0  ;;  %v11954_v62 = vld [vmem:[%s13175_s0 + $0xf8] sm:$0xff]  }
 0x3e2   :  { %v8221_v52 = vpop.f32.mrb[125].mxu0 }
 0x3e3   :  { %v8222_v21 = vadd.f32 %v8221_v52, %v8220_v44  ;;  %v8223_v50 = vpop.f32.mrb[126].mxu0  ;;  %9096 = vmatmul.mubr.msk.bf16.vlgmr.msra.gmra.mrb[68].mxu0 %vm1089_vm1, %v2801_v29  ;;  %v7243_v29 = vld [vmem:[%s13177_s2 + $0x14] sm:$0xf] }
 0x3e4   :  { %v8224_v39 = vpop.f32.mrb[127].mxu0  ;;  %8394 = vmatpush3.bf16.msra.mxu0 %v11839_v2 }
 0x3e5   :  { %v2754_v46 = vadd.f32 %v11714_v55, %v8222_v21  ;;  %v8225_v54 = vadd.f32 %v8224_v39, %v8223_v50  ;;  %8395 = vmatprep.subr.bf16.mxu0 %v11847_v48  ;;  %v9996_v50 = vld [vmem:[%s13176_s1 + $0x6c0] ss:$16 sps:$4 sm:$0xff]  }
 0x3e7   :  { %v2757_v35 = vadd.f32 %v11716_v30, %v8225_v54  ;;  %3745 = vmatmul.mubr.bf16.gmra.mrb[236].mxu1 %v9990_v32  ;;  %v3372_v32 = vsel %vm1114_vm0, %v7243_v29, 0 }
 0x3e8   :  { %8396 = vmatpush3.bf16.msra.mxu0 %v11855_v11  ;;  %3752 = vmatprep.mubr.bf16.mxu1 %v9991_v25  ;;  %v9939_v25 = vld [vmem:[%s13176_s1 + $0x528] ss:$16 sps:$4 sm:$0xff]  }
 0x3e9   :  { %v2802_v55 = vpack.c.bf16 %v2757_v35, %v2754_v46  ;;  %v8226_v49 = vpop.f32.mrb[128].mxu0  ;;  %8397 = vmatprep.subr.bf16.mxu0 %v11862_v19 }
 0x3ea   :  { %v8227_v30 = vpop.f32.mrb[129].mxu0 }
 0x3eb   :  { %v8228_v43 = vadd.f32 %v8227_v30, %v8226_v49  ;;  %v8229_v13 = vpop.f32.mrb[130].mxu0  ;;  %9099 = vmatprep.mubr.msk.bf16.mxu0 %vm1089_vm1, %v2802_v55 }
 0x3ec   :  { %v8230_v27 = vpop.f32.mrb[131].mxu0  ;;  %8398 = vmatpush3.bf16.msra.mxu0 %v11876_v61 }
 0x3ed   :  { %v2762_v6 = vadd.f32 %v11718_v18, %v8228_v43  ;;  %v8231_v58 = vadd.f32 %v8230_v27, %v8229_v13  ;;  %8399 = vmatprep.subr.bf16.mxu0 %v11884_v56  ;;  %v9999_v43 = vld [vmem:[%s13176_s1 + $0x6e0] ss:$16 sps:$4 sm:$0xff]  }
 0x3ef   :  { %v2765_v14 = vadd.f32 %v11720_v12, %v8231_v58 }
 0x3f0   :  { %8400 = vmatpush3.bf16.msra.mxu0 %v11892_v22 }
 0x3f1   :  { %v2803_v18 = vpack.c.bf16 %v2765_v14, %v2762_v6  ;;  %v8232_v15 = vpop.f32.mrb[132].mxu0  ;;  %8401 = vmatprep.subr.bf16.mxu0 %v11899_v10  ;;  %v9933_v14 = vld [vmem:[%s13176_s1 + $0x50c] ss:$16 sps:$4 sm:$0xff]  }
 0x3f2   :  { %v8233_v12 = vpop.f32.mrb[133].mxu0 }
 0x3f3   :  { %v8234_v34 = vadd.f32 %v8233_v12, %v8232_v15  ;;  %v8235_v8 = vpop.f32.mrb[134].mxu0  ;;  %9100 = vmatmul.mubr.msk.bf16.gmra.mrb[72].mxu0 %vm1089_vm1, %v2803_v18  ;;  %v10000_v15 = vld [vmem:[%s13176_s1 + $0x700] ss:$16 sps:$4 sm:$0xff]   ;;  %v9937_v12 = vld [vmem:[%s13176_s1 + $0x52c] ss:$16 sps:$4 sm:$0xff]  }
 0x3f4   :  { %v8236_v9 = vpop.f32.mrb[135].mxu0  ;;  %8402 = vmatpush3.bf16.msra.mxu0 %v11913_v28 }
 0x3f5   :  { %v2770_v26 = vadd.f32 %v11722_v47, %v8234_v34  ;;  %v8237_v31 = vadd.f32 %v8236_v9, %v8235_v8  ;;  %8403 = vmatprep.subr.bf16.mxu0 %v11921_v60  ;;  %v10003_v34 = vld [vmem:[%s13176_s1 + $0x720] ss:$16 sps:$4 sm:$0xff]   ;;  %v10008_v8 = vld [vmem:[%s13176_s1 + $0x744] ss:$16 sps:$4 sm:$0xff]   ;;  %v9943_v9 = vld [vmem:[%s13176_s1 + $0x54c] ss:$16 sps:$4 sm:$0xff]  }
 0x3f7   :  { %v2773_v42 = vadd.f32 %v11724_v36, %v8237_v31  ;;  %v9993_v36 = vld [vmem:[%s13176_s1 + $0x6a0] ss:$16 sps:$4 sm:$0xff]   ;;  %v10011_v31 = vld [vmem:[%s13176_s1 + $0x764] ss:$16 sps:$4 sm:$0xff]  }
 0x3f8   :  { %8404 = vmatpush3.bf16.msra.mxu0 %v11928_v41  ;;  %3753 = vmatmul.mubr.bf16.gmra.mrb[240].mxu1 %v9993_v36  ;;  %v9955_v36 = vld [vmem:[%s13176_s1 + $0x58c] ss:$16 sps:$4 sm:$0xff]  }
 0x3f9   :  { %v2804_v47 = vpack.c.bf16 %v2773_v42, %v2770_v26  ;;  %v8238_v53 = vpop.f32.mrb[136].mxu0  ;;  %8405 = vmatprep.subr.bf16.mxu0 %v11934_v40  ;;  %3760 = vmatprep.mubr.bf16.mxu1 %v9994_v20  ;;  %v10006_v26 = vld [vmem:[%s13176_s1 + $0x740] ss:$16 sps:$4 sm:$0xff]   ;;  %v9945_v42 = vld [vmem:[%s13176_s1 + $0x548] ss:$16 sps:$4 sm:$0xff]  }
 0x3fa   :  { %v8239_v23 = vpop.f32.mrb[137].mxu0  ;;  %v9963_v20 = vld [vmem:[%s13176_s1 + $0x5a8] ss:$16 sps:$4 sm:$0xff]  }
 0x3fb   :  { %v8240_v33 = vadd.f32 %v8239_v23, %v8238_v53  ;;  %v8241_v1 = vpop.f32.mrb[138].mxu0  ;;  %9103 = vmatprep.mubr.msk.bf16.mxu0 %vm1089_vm1, %v2804_v47  ;;  %v9949_v47 = vld [vmem:[%s13176_s1 + $0x56c] ss:$16 sps:$4 sm:$0xff]   ;;  %v10009_v53 = vld [vmem:[%s13176_s1 + $0x760] ss:$16 sps:$4 sm:$0xff]  }
 0x3fc   :  { %v8242_v37 = vpop.f32.mrb[139].mxu0  ;;  %8406 = vmatpush3.bf16.msra.mxu0 %v11947_v24  ;;  %v9951_v23 = vld [vmem:[%s13176_s1 + $0x568] ss:$16 sps:$4 sm:$0xff]  }
 0x3fd   :  { %v2778_v51 = vadd.f32 %v11726_v45, %v8240_v33  ;;  %v8243_v63 = vadd.f32 %v8242_v37, %v8241_v1  ;;  %8407 = vmatprep.subr.bf16.mxu0 %v11954_v62  ;;  %v11964_v45 = vld [vmem:[%s13175_s0 + $0xb8] sm:$0xff]  }
 0x3fe   :  { %v9957_v33 = vld [vmem:[%s13176_s1 + $0x588] ss:$16 sps:$4 sm:$0xff]   ;;  %v9961_v1 = vld [vmem:[%s13176_s1 + $0x5ac] ss:$16 sps:$4 sm:$0xff]  }
 0x3ff   :  { %v2781_v44 = vadd.f32 %v11728_v0, %v8243_v63  ;;  %v9997_v0 = vld [vmem:[%s13176_s1 + $0x6e4] ss:$16 sps:$4 sm:$0xff]   ;;  %v9967_v37 = vld [vmem:[%s13176_s1 + $0x5cc] ss:$16 sps:$4 sm:$0xff]   ;;  %v9975_v63 = vld [vmem:[%s13176_s1 + $0x5e8] ss:$16 sps:$4 sm:$0xff]  }
 0x400   :  { %8408 = vmatpush3.bf16.msra.mxu0 %v11964_v45  ;;  %3761 = vmatmul.mubr.bf16.gmra.mrb[244].mxu1 %v9996_v50 }
 0x401   :  { %v2805_v52 = vpack.c.bf16 %v2781_v44, %v2778_v51  ;;  %v8244_v38 = vpop.f32.mrb[140].mxu0  ;;  %9652 = vmatprep.subr.msk.bf16.mxu0 %vm1114_vm0, %v7243_v29  ;;  %3768 = vmatprep.mubr.bf16.mxu1 %v9997_v0  ;;  %v9973_v51 = vld [vmem:[%s13176_s1 + $0x5ec] ss:$16 sps:$4 sm:$0xff]   ;;  %v8345_v29 = vpop.f32.mrb[188].mxu1  ;;  %v10012_v0 = vld [vmem:[%s13176_s1 + $0x780] ss:$16 sps:$4 sm:$0xff]  }
 0x402   :  { %v8245_v21 = vpop.f32.mrb[141].mxu0  ;;  %v8346_v44 = vpop.f32.mrb[189].mxu1 }
 0x403   :  { %v8246_v7 = vadd.f32 %v8245_v21, %v8244_v38  ;;  %v8247_v39 = vpop.f32.mrb[142].mxu0  ;;  %9104 = vmatmul.mubr.msk.bf16.gmra.mrb[76].mxu0 %vm1089_vm1, %v2805_v52  ;;  %v12074_v52 = vadd.f32 %v8346_v44, %v8345_v29  ;;  %v8348_v38 = vpop.f32.mrb[190].mxu1 }
 0x404   :  { %v8248_v46 = vpop.f32.mrb[143].mxu0  ;;  %v8349_v21 = vpop.f32.mrb[191].mxu1 }
 0x405   :  { %v2786_v54 = vadd.f32 %v11730_v4, %v8246_v7  ;;  %v8249_v35 = vadd.f32 %v8248_v46, %v8247_v39  ;;  %v10002_v4 = vld [vmem:[%s13176_s1 + $0x704] ss:$16 sps:$4 sm:$0xff]   ;;  %v12076_v50 = vadd.f32 %v8349_v21, %v8348_v38  ;;  %v8351_v39 = vpop.f32.mrb[192].mxu1 }
 0x406   :  { %v10014_v7 = vld [vmem:[%s13176_s1 + $0x784] ss:$16 sps:$4 sm:$0xff]   ;;  %v8352_v46 = vpop.f32.mrb[193].mxu1 }
 0x407   :  { %v2789_v55 = vadd.f32 %v11732_v16, %v8249_v35  ;;  %v8354_v35 = vpop.f32.mrb[194].mxu1 }
 0x408   :  { %3769 = vmatmul.mubr.bf16.gmra.mrb[248].mxu1 %v9999_v43  ;;  %v10015_v43 = vld [vmem:[%s13176_s1 + $0x7a0] ss:$16 sps:$4 sm:$0xff]  }
 0x409   :  { %v2806_v49 = vpack.c.bf16 %v2789_v55, %v2786_v54  ;;  %v8250_v30 = vpop.f32.mrb[144].mxu0  ;;  %4249 = vmatprep.mubr.bf16.mxu1 %v10002_v4  ;;  %v12084_v54 = vadd.f32 %v8352_v46, %v8351_v39  ;;  %v8355_v55 = vpop.f32.mrb[195].mxu1  ;;  %v10032_v39 = vld [vmem:[%s13176_s1 + $0x74c] ss:$16 sps:$4 sm:$0xff]   ;;  %v10030_v46 = vld [vmem:[%s13176_s1 + $0x748] ss:$16 sps:$4 sm:$0xff]  }
 0x40a   :  { %v8251_v57 = vpop.f32.mrb[145].mxu0 }
 0x40b   :  { %v8252_v13 = vadd.f32 %v8251_v57, %v8250_v30  ;;  %v8253_v3 = vpop.f32.mrb[146].mxu0  ;;  %9107 = vmatprep.mubr.msk.bf16.mxu0 %vm1089_vm1, %v2806_v49  ;;  %v12086_v49 = vadd.f32 %v8355_v55, %v8354_v35  ;;  %v10017_v30 = vld [vmem:[%s13176_s1 + $0x7a4] ss:$16 sps:$4 sm:$0xff]   ;;  %v8357_v57 = vpop.f32.mrb[196].mxu1 }
 0x40c   :  { %v8254_v27 = vpop.f32.mrb[147].mxu0 }
 0x40d   :  { %v2794_v6 = vadd.f32 %v11734_v59, %v8252_v13  ;;  %v8255_v16 = vadd.f32 %v8254_v27, %v8253_v3  ;;  %v10005_v59 = vld [vmem:[%s13176_s1 + $0x724] ss:$16 sps:$4 sm:$0xff]   ;;  %v8358_v13 = vpop.f32.mrb[197].mxu1 }
 0x40e   :  { %v12094_v3 = vadd.f32 %v8358_v13, %v8357_v57  ;;  %v8360_v4 = vpop.f32.mrb[198].mxu1  ;;  %v10035_v13 = vld [vmem:[%s13176_s1 + $0x76c] ss:$16 sps:$4 sm:$0xff]  }
 0x40f   :  { %v2797_v58 = vadd.f32 %v11736_v5, %v8255_v16  ;;  %v9931_v5 = vld [vmem:[%s13176_s1 + $0x508] ss:$16 sps:$4 sm:$0xff]   ;;  %v8361_v27 = vpop.f32.mrb[199].mxu1  ;;  %v10020_v16 = vld [vmem:[%s13176_s1 + $0x7c4] ss:$16 sps:$4 sm:$0xff]  }
 0x410   :  { %4250 = vmatmul.mubr.bf16.vlgmr.msra.gmra.mrb[252].mxu1 %v10000_v15 }
 0x411   :  { %v2807_v18 = vpack.c.bf16 %v2797_v58, %v2794_v6  ;;  %4257 = vmatprep.mubr.bf16.mxu1 %v10005_v59  ;;  %8668 = vmatpush3.bf16.msra.mxu1 %v11839_v2  ;;  %v12096_v6 = vadd.f32 %v8361_v27, %v8360_v4  ;;  %v8363_v58 = vpop.f32.mrb[200].mxu1  ;;  %v10033_v4 = vld [vmem:[%s13176_s1 + $0x768] ss:$16 sps:$4 sm:$0xff]   ;;  %v10038_v27 = vld [vmem:[%s13176_s1 + $0x78c] ss:$16 sps:$4 sm:$0xff]  }
 0x412   :  { %8669 = vmatprep.subr.bf16.mxu1 %v11847_v48 }
 0x413   :  { %9108 = vmatmul.mubr.msk.bf16.gmra.mrb[80].mxu0 %vm1089_vm1, %v2807_v18  ;;  %v8364_v18 = vpop.f32.mrb[201].mxu1 }
 0x414   :  { %3272 = vmatprep.mubr.bf16.mxu0 %v9933_v14  ;;  %v10018_v14 = vld [vmem:[%s13176_s1 + $0x7c0] ss:$16 sps:$4 sm:$0xff]   ;;  %v12104_v15 = vadd.f32 %v8364_v18, %v8363_v58  ;;  %v8366_v59 = vpop.f32.mrb[202].mxu1  ;;  %v10044_v58 = vld [vmem:[%s13176_s1 + $0x7ac] ss:$16 sps:$4 sm:$0xff]  }
 0x415   :  { %8670 = vmatpush3.bf16.msra.mxu1 %v11855_v11  ;;  %v10050_v18 = vld [vmem:[%s13176_s1 + $0x7cc] ss:$16 sps:$4 sm:$0xff]  }
 0x416   :  { %8671 = vmatprep.subr.bf16.mxu1 %v11862_v19 }
 0x418   :  { %4258 = vmatmul.mubr.bf16.gmra.mrb[0].mxu1 %v10003_v34 }
 0x419   :  { %4265 = vmatprep.mubr.bf16.mxu1 %v10008_v8  ;;  %8672 = vmatpush3.bf16.msra.mxu1 %v11876_v61  ;;  %v10021_v8 = vld [vmem:[%s13176_s1 + $0x7e0] ss:$16 sps:$4 sm:$0xff]  }
 0x41a   :  { %8673 = vmatprep.subr.bf16.mxu1 %v11884_v56 }
 0x41b   :  { %3273 = vmatmul.mubr.bf16.vlgmr.msra.gmra.mrb[148].mxu0 %v9931_v5  ;;  %v8367_v5 = vpop.f32.mrb[203].mxu1 }
 0x41c   :  { %3280 = vmatprep.mubr.bf16.mxu0 %v9937_v12  ;;  %9112 = vmatpush3.bf16.msra.mxu0 %v3372_v32  ;;  %v12106_v12 = vadd.f32 %v8367_v5, %v8366_v59  ;;  %v10023_v32 = vld [vmem:[%s13176_s1 + $0x7e4] ss:$16 sps:$4 sm:$0xff]   ;;  %v8369_v34 = vpop.f32.mrb[204].mxu1  ;;  %v10048_v59 = vld [vmem:[%s13176_s1 + $0x7c8] ss:$16 sps:$4 sm:$0xff]  }
 0x41d   :  { %8530 = vmatprep.subr.bf16.mxu0 %v11664_v17  ;;  %8674 = vmatpush3.bf16.msra.mxu1 %v11892_v22  ;;  %v10056_v5 = vld [vmem:[%s13176_s1 + $0x7ec] ss:$16 sps:$4 sm:$0xff]  }
 0x41e   :  { %8675 = vmatprep.subr.bf16.mxu1 %v11899_v10 }
 0x420   :  { %4266 = vmatmul.mubr.bf16.gmra.mrb[4].mxu1 %v10006_v26 }
 0x421   :  { %4273 = vmatprep.mubr.bf16.mxu1 %v10011_v31  ;;  %8676 = vmatpush3.bf16.msra.mxu1 %v11913_v28 }
 0x422   :  { %8677 = vmatprep.subr.bf16.mxu1 %v11921_v60 }
 0x423   :  { %3281 = vmatmul.mubr.bf16.gmra.mrb[152].mxu0 %v9939_v25  ;;  %v8370_v25 = vpop.f32.mrb[205].mxu1 }
 0x424   :  { %3288 = vmatprep.mubr.bf16.mxu0 %v9943_v9  ;;  %v12114_v9 = vadd.f32 %v8370_v25, %v8369_v34  ;;  %v8372_v26 = vpop.f32.mrb[206].mxu1 }
 0x425   :  { %8678 = vmatpush3.bf16.msra.mxu1 %v11928_v41  ;;  %v8373_v31 = vpop.f32.mrb[207].mxu1 }
 0x426   :  { %8679 = vmatprep.subr.bf16.mxu1 %v11934_v40 }
 0x428   :  { %4274 = vmatmul.mubr.bf16.gmra.mrb[8].mxu1 %v10009_v53  ;;  %v8375_v53 = vpop.f32.mrb[208].mxu1 }
 0x429   :  { %8680 = vmatpush3.bf16.msra.mxu1 %v11947_v24  ;;  %4281 = vmatprep.mubr.bf16.mxu1 %v10014_v7 }
 0x42a   :  { %8681 = vmatprep.subr.bf16.mxu1 %v11954_v62 }
 0x42b   :  { %3289 = vmatmul.mubr.bf16.gmra.mrb[156].mxu0 %v9945_v42  ;;  %v12116_v42 = vadd.f32 %v8373_v31, %v8372_v26 }
 0x42c   :  { %3296 = vmatprep.mubr.bf16.mxu0 %v9949_v47  ;;  %v10026_v47 = vld [vmem:[%s13176_s1 + $0x70c] ss:$16 sps:$4 sm:$0xff]  }
 0x42d   :  { %8682 = vmatpush3.bf16.msra.mxu1 %v11964_v45 }
 0x42e   :  { %8804 = vmatprep.subr.bf16.mxu1 %v11664_v17  ;;  %v9969_v17 = vld [vmem:[%s13176_s1 + $0x5c8] ss:$16 sps:$4 sm:$0xff]  }
 0x430   :  { %4282 = vmatmul.mubr.bf16.gmra.mrb[12].mxu1 %v10012_v0 }
 0x431   :  { %4289 = vmatprep.mubr.bf16.mxu1 %v10017_v30 }
 0x433   :  { %3297 = vmatmul.mubr.bf16.gmra.mrb[160].mxu0 %v9951_v23  ;;  %v10024_v23 = vld [vmem:[%s13176_s1 + $0x708] ss:$16 sps:$4 sm:$0xff]  }
 0x434   :  { %3304 = vmatprep.mubr.bf16.mxu0 %v9955_v36  ;;  %v8376_v36 = vpop.f32.mrb[209].mxu1 }
 0x438   :  { %4290 = vmatmul.mubr.bf16.gmra.mrb[16].mxu1 %v10015_v43 }
 0x439   :  { %4297 = vmatprep.mubr.bf16.mxu1 %v10020_v16  ;;  %v10036_v16 = vld [vmem:[%s13176_s1 + $0x788] ss:$16 sps:$4 sm:$0xff]  }
 0x43b   :  { %3305 = vmatmul.mubr.bf16.gmra.mrb[164].mxu0 %v9957_v33  ;;  %v12124_v33 = vadd.f32 %v8376_v36, %v8375_v53 }
 0x43c   :  { %3312 = vmatprep.mubr.bf16.mxu0 %v9961_v1  ;;  %v8378_v1 = vpop.f32.mrb[210].mxu1 }
 0x440   :  { %4298 = vmatmul.mubr.bf16.gmra.mrb[20].mxu1 %v10018_v14  ;;  %v10042_v14 = vld [vmem:[%s13176_s1 + $0x7a8] ss:$16 sps:$4 sm:$0xff]  }
 0x441   :  { %4305 = vmatprep.mubr.bf16.mxu1 %v10023_v32  ;;  %v10054_v32 = vld [vmem:[%s13176_s1 + $0x7e8] ss:$16 sps:$4 sm:$0xff]  }
 0x443   :  { %3313 = vmatmul.mubr.bf16.gmra.mrb[168].mxu0 %v9963_v20  ;;  %v8379_v20 = vpop.f32.mrb[211].mxu1 }
 0x444   :  { %3320 = vmatprep.mubr.bf16.mxu0 %v9967_v37  ;;  %v12127_v37 = vadd.f32 %v8379_v20, %v8378_v1 }
 0x448   :  { %4306 = vmatmul.mubr.bf16.gmra.mrb[24].mxu1 %v10021_v8 }
 0x449   :  { %4346 = vmatprep.mubr.bf16.mxu1 %v10026_v47 }
 0x44b   :  { %3321 = vmatmul.mubr.bf16.gmra.mrb[172].mxu0 %v9969_v17  ;;  %v10029_v17 = vld [vmem:[%s13176_s1 + $0x72c] ss:$16 sps:$4 sm:$0xff]  }
 0x44c   :  { %3328 = vmatprep.mubr.bf16.mxu0 %v9973_v51  ;;  %v8381_v51 = vpop.f32.mrb[212].mxu1 }
 0x44d   :  { %v8382_v29 = vpop.f32.mrb[213].mxu1 }
 0x44e   :  { %v12138_v44 = vadd.f32 %v8382_v29, %v8381_v51  ;;  %v8384_v38 = vpop.f32.mrb[214].mxu1 }
 0x44f   :  { %v8385_v21 = vpop.f32.mrb[215].mxu1 }
 0x450   :  { %4347 = vmatmul.mubr.bf16.vlgmr.msra.gmra.mrb[28].mxu1 %v10024_v23  ;;  %v12141_v7 = vadd.f32 %v8385_v21, %v8384_v38  ;;  %v8387_v0 = vpop.f32.mrb[216].mxu1 }
 0x451   :  { %8805 = vmatpush3.bf16.msra.mxu1 %v11839_v2  ;;  %4354 = vmatprep.mubr.bf16.mxu1 %v10029_v17  ;;  %v8388_v35 = vpop.f32.mrb[217].mxu1 }
 0x452   :  { %8806 = vmatprep.subr.bf16.mxu1 %v11847_v48  ;;  %v12152_v55 = vadd.f32 %v8388_v35, %v8387_v0  ;;  %v8390_v30 = vpop.f32.mrb[218].mxu1 }
 0x453   :  { %3329 = vmatmul.mubr.bf16.gmra.mrb[176].mxu0 %v9975_v63  ;;  %v10027_v63 = vld [vmem:[%s13176_s1 + $0x728] ss:$16 sps:$4 sm:$0xff]   ;;  %v8391_v57 = vpop.f32.mrb[219].mxu1 }
 0x454   :  { %v12155_v43 = vadd.f32 %v8391_v57, %v8390_v30  ;;  %v8482_v31 = vpop.f32.mrb[220].mxu1 }
 0x455   :  { %8807 = vmatpush3.bf16.msra.mxu1 %v11855_v11  ;;  %v8483_v53 = vpop.f32.mrb[221].mxu1 }
 0x456   :  { %8808 = vmatprep.subr.bf16.mxu1 %v11862_v19  ;;  %v12194_v1 = vadd.f32 %v8483_v53, %v8482_v31  ;;  %v8485_v20 = vpop.f32.mrb[222].mxu1 }
 0x457   :  { %v8486_v17 = vpop.f32.mrb[223].mxu1 }
 0x458   :  { %4355 = vmatmul.mubr.bf16.gmra.mrb[32].mxu1 %v10027_v63  ;;  %v12197_v63 = vadd.f32 %v8486_v17, %v8485_v20  ;;  %v8488_v29 = vpop.f32.mrb[224].mxu1 }
 0x459   :  { %8809 = vmatpush3.bf16.msra.mxu1 %v11876_v61  ;;  %4362 = vmatprep.mubr.bf16.mxu1 %v10032_v39  ;;  %v8489_v38 = vpop.f32.mrb[225].mxu1 }
 0x45a   :  { %8810 = vmatprep.subr.bf16.mxu1 %v11884_v56  ;;  %v12199_v0 = vadd.f32 %v8489_v38, %v8488_v29 }
 0x45d   :  { %8811 = vmatpush3.bf16.msra.mxu1 %v11892_v22 }
 0x45e   :  { %8812 = vmatprep.subr.bf16.mxu1 %v11899_v10 }
 0x460   :  { %4363 = vmatmul.mubr.bf16.gmra.mrb[36].mxu1 %v10030_v46  ;;  %v8491_v46 = vpop.f32.mrb[226].mxu1 }
 0x461   :  { %8813 = vmatpush3.bf16.msra.mxu1 %v11913_v28  ;;  %4370 = vmatprep.mubr.bf16.mxu1 %v10035_v13  ;;  %v8492_v30 = vpop.f32.mrb[227].mxu1 }
 0x462   :  { %8814 = vmatprep.subr.bf16.mxu1 %v11921_v60  ;;  %v12202_v13 = vadd.f32 %v8492_v30, %v8491_v46 }
 0x465   :  { %8815 = vmatpush3.bf16.msra.mxu1 %v11928_v41 }
 0x466   :  { %8816 = vmatprep.subr.bf16.mxu1 %v11934_v40 }
 0x468   :  { %4371 = vmatmul.mubr.bf16.gmra.mrb[40].mxu1 %v10033_v4 }
 0x469   :  { %8817 = vmatpush3.bf16.msra.mxu1 %v11947_v24  ;;  %4378 = vmatprep.mubr.bf16.mxu1 %v10038_v27 }
 0x46a   :  { %8818 = vmatprep.subr.bf16.mxu1 %v11954_v62 }
 0x46d   :  { %8819 = vmatpush3.bf16.msra.mxu1 %v11964_v45 }
 0x470   :  { %4379 = vmatmul.mubr.bf16.gmra.mrb[44].mxu1 %v10036_v16 }
 0x471   :  { %4386 = vmatprep.mubr.bf16.mxu1 %v10044_v58 }
 0x478   :  { %4387 = vmatmul.mubr.bf16.gmra.mrb[48].mxu1 %v10042_v14 }
 0x479   :  { %4394 = vmatprep.mubr.bf16.mxu1 %v10050_v18 }
 0x480   :  { %4395 = vmatmul.mubr.bf16.gmra.mrb[52].mxu1 %v10048_v59 }
 0x481   :  { %4402 = vmatprep.mubr.bf16.mxu1 %v10056_v5 }
 0x488   :  { %4403 = vmatmul.mubr.bf16.gmra.mrb[56].mxu1 %v10054_v32 }
 0x4aa   :  { %v8494_v4 = vpop.f32.mrb[228].mxu1 }
 0x4ee   :  { %v8409_v34 = vpop.f32.mrb[148].mxu0 }
 0x4ef   :  { %v8410_v8 = vpop.f32.mrb[149].mxu0 }
 0x4f0   :  { %v8411_v25 = vadd.f32 %v8410_v8, %v8409_v34  ;;  %v8412_v26 = vpop.f32.mrb[150].mxu0 }
 0x4f1   :  { %v8413_v47 = vpop.f32.mrb[151].mxu0 }
 0x4f2   :  { %v3275_v23 = vadd.f32 %v8411_v25, %v12074_v52  ;;  %v8414_v36 = vadd.f32 %v8413_v47, %v8412_v26 }
 0x4f4   :  { %v3278_v51 = vadd.f32 %v8414_v36, %v12076_v50  ;;  %v8495_v50 = vpop.f32.mrb[229].mxu1 }
 0x4f5   :  { %v12205_v14 = vadd.f32 %v8495_v50, %v8494_v4  ;;  %v8497_v18 = vpop.f32.mrb[230].mxu1 }
 0x4f6   :  { %v3337_v21 = vpack.c.bf16 %v3278_v51, %v3275_v23  ;;  %v8415_v39 = vpop.f32.mrb[152].mxu0  ;;  %v8498_v59 = vpop.f32.mrb[231].mxu1 }
 0x4f7   :  { %v8416_v35 = vpop.f32.mrb[153].mxu0  ;;  %v12208_v32 = vadd.f32 %v8498_v59, %v8497_v18  ;;  %v8500_v34 = vpop.f32.mrb[232].mxu1 }
 0x4f8   :  { %v8417_v57 = vadd.f32 %v8416_v35, %v8415_v39  ;;  %v8418_v52 = vpop.f32.mrb[154].mxu0  ;;  %9113 = vmatprep.mubr.msk.bf16.mxu0 %vm1089_vm1, %v3337_v21  ;;  %v8501_v8 = vpop.f32.mrb[233].mxu1 }
 0x4f9   :  { %v8419_v27 = vpop.f32.mrb[155].mxu0  ;;  %v12210_v31 = vadd.f32 %v8501_v8, %v8500_v34  ;;  %v8503_v47 = vpop.f32.mrb[234].mxu1 }
 0x4fa   :  { %v3283_v16 = vadd.f32 %v8417_v57, %v12084_v54  ;;  %v8420_v58 = vadd.f32 %v8419_v27, %v8418_v52  ;;  %v8504_v23 = vpop.f32.mrb[235].mxu1 }
 0x4fb   :  { %v12213_v20 = vadd.f32 %v8504_v23, %v8503_v47  ;;  %v8506_v17 = vpop.f32.mrb[236].mxu1 }
 0x4fc   :  { %v3286_v5 = vadd.f32 %v8420_v58, %v12086_v49  ;;  %v8507_v49 = vpop.f32.mrb[237].mxu1 }
 0x4fd   :  { %v12218_v21 = vadd.f32 %v8507_v49, %v8506_v17  ;;  %v8509_v39 = vpop.f32.mrb[238].mxu1 }
 0x4fe   :  { %v3338_v25 = vpack.c.bf16 %v3286_v5, %v3283_v16  ;;  %v8421_v26 = vpop.f32.mrb[156].mxu0  ;;  %v8510_v46 = vpop.f32.mrb[239].mxu1 }
 0x4ff   :  { %v8422_v53 = vpop.f32.mrb[157].mxu0  ;;  %v12221_v30 = vadd.f32 %v8510_v46, %v8509_v39  ;;  %v8512_v57 = vpop.f32.mrb[240].mxu1 }
 0x500   :  { %v8423_v36 = vadd.f32 %v8422_v53, %v8421_v26  ;;  %v8424_v54 = vpop.f32.mrb[158].mxu0  ;;  %9114 = vmatmul.mubr.msk.bf16.vlgmr.msra.gmra.mrb[68].mxu0 %vm1089_vm1, %v3338_v25  ;;  %v8513_v52 = vpop.f32.mrb[241].mxu1 }
 0x501   :  { %v8425_v51 = vpop.f32.mrb[159].mxu0  ;;  %8531 = vmatpush3.bf16.msra.mxu0 %v11839_v2  ;;  %v8515_v27 = vpop.f32.mrb[242].mxu1 }
 0x502   :  { %v3291_v29 = vadd.f32 %v8423_v36, %v12094_v3  ;;  %v8426_v38 = vadd.f32 %v8425_v51, %v8424_v54  ;;  %8532 = vmatprep.subr.bf16.mxu0 %v11847_v48  ;;  %v12225_v3 = vadd.f32 %v8513_v52, %v8512_v57  ;;  %v8516_v50 = vpop.f32.mrb[243].mxu1 }
 0x503   :  { %v8518_v18 = vpop.f32.mrb[244].mxu1 }
 0x504   :  { %v3294_v35 = vadd.f32 %v8426_v38, %v12096_v6  ;;  %v12228_v6 = vadd.f32 %v8516_v50, %v8515_v27 }
 0x505   :  { %8533 = vmatpush3.bf16.msra.mxu0 %v11855_v11  ;;  %v8519_v11 = vpop.f32.mrb[245].mxu1 }
 0x506   :  { %v3339_v4 = vpack.c.bf16 %v3294_v35, %v3291_v29  ;;  %v8427_v2 = vpop.f32.mrb[160].mxu0  ;;  %8534 = vmatprep.subr.bf16.mxu0 %v11862_v19  ;;  %v12233_v19 = vadd.f32 %v8519_v11, %v8518_v18  ;;  %v8521_v8 = vpop.f32.mrb[246].mxu1 }
 0x507   :  { %v8428_v48 = vpop.f32.mrb[161].mxu0  ;;  %v8522_v25 = vpop.f32.mrb[247].mxu1 }
 0x508   :  { %v8429_v16 = vadd.f32 %v8428_v48, %v8427_v2  ;;  %v8430_v58 = vpop.f32.mrb[162].mxu0  ;;  %9117 = vmatprep.mubr.msk.bf16.mxu0 %vm1089_vm1, %v3339_v4  ;;  %v12236_v47 = vadd.f32 %v8522_v25, %v8521_v8  ;;  %v8524_v53 = vpop.f32.mrb[248].mxu1 }
 0x509   :  { %v8431_v59 = vpop.f32.mrb[163].mxu0  ;;  %8535 = vmatpush3.bf16.msra.mxu0 %v11876_v61  ;;  %v8525_v23 = vpop.f32.mrb[249].mxu1 }
 0x50a   :  { %v3299_v5 = vadd.f32 %v8429_v16, %v12104_v15  ;;  %v8432_v34 = vadd.f32 %v8431_v59, %v8430_v58  ;;  %8536 = vmatprep.subr.bf16.mxu0 %v11884_v56  ;;  %v12240_v15 = vadd.f32 %v8525_v23, %v8524_v53  ;;  %v8527_v54 = vpop.f32.mrb[250].mxu1 }
 0x50b   :  { %v8528_v17 = vpop.f32.mrb[251].mxu1 }
 0x50c   :  { %v3302_v26 = vadd.f32 %v8432_v34, %v12106_v12  ;;  %v12243_v12 = vadd.f32 %v8528_v17, %v8527_v54  ;;  %v8619_v29 = vpop.f32.mrb[252].mxu1 }
 0x50d   :  { %8537 = vmatpush3.bf16.msra.mxu0 %v11892_v22  ;;  %v8620_v22 = vpop.f32.mrb[253].mxu1 }
 0x50e   :  { %v3340_v36 = vpack.c.bf16 %v3302_v26, %v3299_v5  ;;  %v8433_v61 = vpop.f32.mrb[164].mxu0  ;;  %8538 = vmatprep.subr.bf16.mxu0 %v11899_v10  ;;  %v12248_v10 = vadd.f32 %v8620_v22, %v8619_v29  ;;  %v8622_v35 = vpop.f32.mrb[254].mxu1  ;;  %v7316_v26 = vld [vmem:[%s13177_s2 + $0x18] sm:$0xf] }
 0x50f   :  { %v8434_v56 = vpop.f32.mrb[165].mxu0  ;;  %v8623_v57 = vpop.f32.mrb[255].mxu1 }
 0x510   :  { %v8435_v51 = vadd.f32 %v8434_v56, %v8433_v61  ;;  %v8436_v49 = vpop.f32.mrb[166].mxu0  ;;  %9118 = vmatmul.mubr.msk.bf16.gmra.mrb[72].mxu0 %vm1089_vm1, %v3340_v36  ;;  %v12251_v4 = vadd.f32 %v8623_v57, %v8622_v35  ;;  %v8625_v2 = vpop.f32.mrb[0].mxu1 }
 0x511   :  { %v8437_v38 = vpop.f32.mrb[167].mxu0  ;;  %8539 = vmatpush3.bf16.msra.mxu0 %v11913_v28  ;;  %v8626_v27 = vpop.f32.mrb[1].mxu1 }
 0x512   :  { %v3307_v39 = vadd.f32 %v8435_v51, %v12114_v9  ;;  %v8438_v46 = vadd.f32 %v8437_v38, %v8436_v49  ;;  %8540 = vmatprep.subr.bf16.mxu0 %v11921_v60  ;;  %v12255_v9 = vadd.f32 %v8626_v27, %v8625_v2  ;;  %v8628_v50 = vpop.f32.mrb[2].mxu1 }
 0x513   :  { %v8629_v16 = vpop.f32.mrb[3].mxu1 }
 0x514   :  { %v3310_v52 = vadd.f32 %v8438_v46, %v12116_v42  ;;  %v12258_v42 = vadd.f32 %v8629_v16, %v8628_v50  ;;  %v8631_v59 = vpop.f32.mrb[4].mxu1  ;;  %v10051_v16 = vld [vmem:[%s13176_s1 + $0x64c] ss:$16 sps:$4 sm:$0xff]  }
 0x515   :  { %8541 = vmatpush3.bf16.msra.mxu0 %v11928_v41  ;;  %v8632_v41 = vpop.f32.mrb[5].mxu1 }
 0x516   :  { %v3341_v48 = vpack.c.bf16 %v3310_v52, %v3307_v39  ;;  %v8439_v28 = vpop.f32.mrb[168].mxu0  ;;  %8542 = vmatprep.subr.bf16.mxu0 %v11934_v40  ;;  %v12263_v40 = vadd.f32 %v8632_v41, %v8631_v59  ;;  %v8634_v8 = vpop.f32.mrb[6].mxu1 }
 0x517   :  { %v8440_v60 = vpop.f32.mrb[169].mxu0  ;;  %v8635_v25 = vpop.f32.mrb[7].mxu1 }
 0x518   :  { %v8441_v58 = vadd.f32 %v8440_v60, %v8439_v28  ;;  %v8442_v18 = vpop.f32.mrb[170].mxu0  ;;  %9121 = vmatprep.mubr.msk.bf16.mxu0 %vm1089_vm1, %v3341_v48  ;;  %v12269_v23 = vadd.f32 %v8635_v25, %v8634_v8  ;;  %v8637_v36 = vpop.f32.mrb[8].mxu1  ;;  %v10045_v60 = vld [vmem:[%s13176_s1 + $0x62c] ss:$16 sps:$4 sm:$0xff]  }
 0x519   :  { %v8443_v11 = vpop.f32.mrb[171].mxu0  ;;  %8543 = vmatpush3.bf16.msra.mxu0 %v11947_v24  ;;  %v8638_v24 = vpop.f32.mrb[9].mxu1  ;;  %v10060_v25 = vld [vmem:[%s13176_s1 + $0x68c] ss:$16 sps:$4 sm:$0xff]  }
 0x51a   :  { %v3315_v5 = vadd.f32 %v8441_v58, %v12124_v33  ;;  %v8444_v34 = vadd.f32 %v8443_v11, %v8442_v18  ;;  %8544 = vmatprep.subr.bf16.mxu0 %v11954_v62  ;;  %v12272_v54 = vadd.f32 %v8638_v24, %v8637_v36  ;;  %v8640_v62 = vpop.f32.mrb[10].mxu1  ;;  %v10053_v58 = vld [vmem:[%s13176_s1 + $0x648] ss:$16 sps:$4 sm:$0xff]   ;;  %v10057_v18 = vld [vmem:[%s13176_s1 + $0x66c] ss:$16 sps:$4 sm:$0xff]  }
 0x51b   :  { %v8641_v17 = vpop.f32.mrb[11].mxu1 }
 0x51c   :  { %v3318_v53 = vadd.f32 %v8444_v34, %v12127_v37  ;;  %v12276_v37 = vadd.f32 %v8641_v17, %v8640_v62  ;;  %v8643_v59 = vpop.f32.mrb[12].mxu1  ;;  %v10059_v34 = vld [vmem:[%s13176_s1 + $0x668] ss:$16 sps:$4 sm:$0xff]  }
 0x51d   :  { %8545 = vmatpush3.bf16.msra.mxu0 %v11964_v45  ;;  %v8644_v11 = vpop.f32.mrb[13].mxu1 }
 0x51e   :  { %v3342_v33 = vpack.c.bf16 %v3318_v53, %v3315_v5  ;;  %v8445_v61 = vpop.f32.mrb[172].mxu0  ;;  %9653 = vmatprep.subr.msk.bf16.mxu0 %vm1114_vm0, %v7316_v26  ;;  %v12306_v41 = vadd.f32 %v8644_v11, %v8643_v59  ;;  %v8646_v5 = vpop.f32.mrb[14].mxu1 }
 0x51f   :  { %v8446_v56 = vpop.f32.mrb[173].mxu0  ;;  %v8647_v8 = vpop.f32.mrb[15].mxu1 }
 0x520   :  { %v8447_v51 = vadd.f32 %v8446_v56, %v8445_v61  ;;  %v8448_v49 = vpop.f32.mrb[174].mxu0  ;;  %9122 = vmatmul.mubr.msk.bf16.gmra.mrb[76].mxu0 %vm1089_vm1, %v3342_v33  ;;  %v8649_v53 = vpop.f32.mrb[16].mxu1  ;;  %v10062_v61 = vld [vmem:[%s13176_s1 + $0x688] ss:$16 sps:$4 sm:$0xff]   ;;  %v10063_v56 = vld [vmem:[%s13176_s1 + $0x6ac] ss:$16 sps:$4 sm:$0xff]  }
 0x521   :  { %v8449_v29 = vpop.f32.mrb[175].mxu0  ;;  %v8650_v36 = vpop.f32.mrb[17].mxu1 }
 0x522   :  { %v3323_v38 = vadd.f32 %v8447_v51, %v12138_v44  ;;  %v8450_v45 = vadd.f32 %v8449_v29, %v8448_v49  ;;  %v10041_v44 = vld [vmem:[%s13176_s1 + $0x60c] ss:$16 sps:$4 sm:$0xff]   ;;  %v12316_v24 = vadd.f32 %v8650_v36, %v8649_v53  ;;  %v8652_v33 = vpop.f32.mrb[18].mxu1 }
 0x523   :  { %v8653_v62 = vpop.f32.mrb[19].mxu1 }
 0x524   :  { %v3326_v22 = vadd.f32 %v8450_v45, %v12141_v7  ;;  %v10039_v7 = vld [vmem:[%s13176_s1 + $0x608] ss:$16 sps:$4 sm:$0xff]   ;;  %v12324_v17 = vadd.f32 %v8653_v62, %v8652_v33  ;;  %v8655_v51 = vpop.f32.mrb[20].mxu1 }
 0x525   :  { %v8656_v49 = vpop.f32.mrb[21].mxu1  ;;  %v10065_v45 = vld [vmem:[%s13176_s1 + $0x6a8] ss:$16 sps:$4 sm:$0xff]  }
 0x526   :  { %v3343_v39 = vpack.c.bf16 %v3326_v22, %v3323_v38  ;;  %v8451_v46 = vpop.f32.mrb[176].mxu0  ;;  %v12326_v29 = vadd.f32 %v8656_v49, %v8655_v51  ;;  %v8658_v38 = vpop.f32.mrb[22].mxu1 }
 0x527   :  { %v8452_v35 = vpop.f32.mrb[177].mxu0  ;;  %v8659_v22 = vpop.f32.mrb[23].mxu1 }
 0x528   :  { %v8453_v57 = vadd.f32 %v8452_v35, %v8451_v46  ;;  %v8454_v52 = vpop.f32.mrb[178].mxu0  ;;  %9125 = vmatprep.mubr.msk.bf16.mxu0 %vm1089_vm1, %v3343_v39  ;;  %v10066_v39 = vld [vmem:[%s13176_s1 + $0x6cc] ss:$16 sps:$4 sm:$0xff]   ;;  %v12334_v46 = vadd.f32 %v8659_v22, %v8658_v38  ;;  %v8661_v35 = vpop.f32.mrb[24].mxu1 }
 0x529   :  { %v8455_v2 = vpop.f32.mrb[179].mxu0 }
 0x52a   :  { %v3331_v27 = vadd.f32 %v8453_v57, %v12152_v55  ;;  %v8456_v48 = vadd.f32 %v8455_v2, %v8454_v52  ;;  %v3909_v55 = vsel %vm1114_vm0, %v7316_v26, 0  ;;  %v12314_v26 = vadd.f32 %v8647_v8, %v8646_v5  ;;  %v8662_v57 = vpop.f32.mrb[25].mxu1 }
 0x52b   :  { %v12336_v52 = vadd.f32 %v8662_v57, %v8661_v35  ;;  %v8664_v2 = vpop.f32.mrb[26].mxu1 }
 0x52c   :  { %v3334_v28 = vadd.f32 %v8456_v48, %v12155_v43  ;;  %v10047_v43 = vld [vmem:[%s13176_s1 + $0x628] ss:$16 sps:$4 sm:$0xff]   ;;  %v8665_v48 = vpop.f32.mrb[27].mxu1 }
 0x52e   :  { %v3344_v50 = vpack.c.bf16 %v3334_v28, %v3331_v27  ;;  %v10068_v27 = vld [vmem:[%s13176_s1 + $0x6c8] ss:$16 sps:$4 sm:$0xff]   ;;  %v10069_v28 = vld [vmem:[%s13176_s1 + $0x6ec] ss:$16 sps:$4 sm:$0xff]  }
 0x530   :  { %9126 = vmatmul.mubr.msk.bf16.gmra.mrb[80].mxu0 %vm1089_vm1, %v3344_v50  ;;  %v8683_v50 = vpop.f32.mrb[28].mxu1 }
 0x531   :  { %3809 = vmatprep.mubr.bf16.mxu0 %v10041_v44  ;;  %v12344_v44 = vadd.f32 %v8665_v48, %v8664_v2 }
 0x538   :  { %3810 = vmatmul.mubr.bf16.vlgmr.msra.gmra.mrb[180].mxu0 %v10039_v7  ;;  %v8684_v7 = vpop.f32.mrb[29].mxu1 }
 0x539   :  { %3817 = vmatprep.mubr.bf16.mxu0 %v10045_v60  ;;  %9130 = vmatpush3.bf16.msra.mxu0 %v3909_v55  ;;  %v8685_v60 = vadd.f32 %v8684_v7, %v8683_v50  ;;  %v8686_v55 = vpop.f32.mrb[30].mxu1 }
 0x540   :  { %3818 = vmatmul.mubr.bf16.gmra.mrb[184].mxu0 %v10047_v43  ;;  %v10071_v43 = vld [vmem:[%s13176_s1 + $0x6e8] ss:$16 sps:$4 sm:$0xff]  }
 0x541   :  { %3825 = vmatprep.mubr.bf16.mxu0 %v10051_v16  ;;  %v8687_v16 = vpop.f32.mrb[31].mxu1 }
 0x542   :  { %v8689_v5 = vpop.f32.mrb[32].mxu1 }
 0x548   :  { %3826 = vmatmul.mubr.bf16.gmra.mrb[188].mxu0 %v10053_v58  ;;  %v12350_v58 = vadd.f32 %v8685_v60, %v12248_v10 }
 0x549   :  { %3833 = vmatprep.mubr.bf16.mxu0 %v10057_v18  ;;  %v8688_v18 = vadd.f32 %v8687_v16, %v8686_v55 }
 0x54b   :  { %v12353_v59 = vadd.f32 %v8688_v18, %v12251_v4 }
 0x54d   :  { %v4411_v11 = vpack.c.bf16 %v12353_v59, %v12350_v58  ;;  %v10245_v58 = vld [vmem:[%s13175_s0 + $0x10] sm:$0xff]   ;;  %v10246_v59 = vld [vmem:[%s13175_s0 + $0x58] sm:$0xff]  }
 0x550   :  { %3834 = vmatmul.mubr.bf16.gmra.mrb[192].mxu0 %v10059_v34  ;;  %v8690_v34 = vpop.f32.mrb[33].mxu1 }
 0x551   :  { %3841 = vmatprep.mubr.bf16.mxu0 %v10060_v25  ;;  %v8691_v8 = vadd.f32 %v8690_v34, %v8689_v5  ;;  %v8692_v25 = vpop.f32.mrb[34].mxu1 }
 0x552   :  { %v8693_v53 = vpop.f32.mrb[35].mxu1 }
 0x553   :  { %v12358_v36 = vadd.f32 %v8691_v8, %v12255_v9  ;;  %v8694_v33 = vadd.f32 %v8693_v53, %v8692_v25 }
 0x555   :  { %v12361_v10 = vadd.f32 %v8694_v33, %v12258_v42 }
 0x557   :  { %v4412_v4 = vpack.c.bf16 %v12361_v10, %v12358_v36  ;;  %v10248_v36 = vld [vmem:[%s13175_s0 + $0x60] sm:$0xff]  }
 0x558   :  { %3842 = vmatmul.mubr.bf16.gmra.mrb[196].mxu0 %v10062_v61  ;;  %v8695_v61 = vpop.f32.mrb[36].mxu1  ;;  %v10249_v10 = vld [vmem:[%s13175_s0 + $0x20] sm:$0xff]  }
 0x559   :  { %3849 = vmatprep.mubr.bf16.mxu0 %v10063_v56  ;;  %v8696_v62 = vpop.f32.mrb[37].mxu1 }
 0x55a   :  { %v8697_v56 = vadd.f32 %v8696_v62, %v8695_v61  ;;  %v8698_v51 = vpop.f32.mrb[38].mxu1 }
 0x55b   :  { %v8699_v49 = vpop.f32.mrb[39].mxu1 }
 0x55c   :  { %v12366_v38 = vadd.f32 %v8697_v56, %v12263_v40  ;;  %v8701_v42 = vpop.f32.mrb[40].mxu1 }
 0x560   :  { %3850 = vmatmul.mubr.bf16.gmra.mrb[200].mxu0 %v10065_v45  ;;  %v8700_v45 = vadd.f32 %v8699_v49, %v8698_v51 }
 0x561   :  { %3857 = vmatprep.mubr.bf16.mxu0 %v10066_v39  ;;  %v8702_v39 = vpop.f32.mrb[41].mxu1 }
 0x562   :  { %v12369_v22 = vadd.f32 %v8700_v45, %v12269_v23  ;;  %v8703_v35 = vadd.f32 %v8702_v39, %v8701_v42  ;;  %v8704_v57 = vpop.f32.mrb[42].mxu1 }
 0x563   :  { %v8705_v2 = vpop.f32.mrb[43].mxu1 }
 0x564   :  { %v4413_v9 = vpack.c.bf16 %v12369_v22, %v12366_v38  ;;  %v8706_v48 = vadd.f32 %v8705_v2, %v8704_v57  ;;  %v8707_v23 = vpop.f32.mrb[44].mxu1  ;;  %v10251_v38 = vld [vmem:[%s13175_s0 + $0x28] sm:$0xff]   ;;  %v10077_v22 = vld [vmem:[%s13176_s1 + $0x804] ss:$16 sps:$4 sm:$0xff]  }
 0x565   :  { %v8708_v50 = vpop.f32.mrb[45].mxu1 }
 0x566   :  { %v8709_v7 = vadd.f32 %v8708_v50, %v8707_v23  ;;  %v8710_v60 = vpop.f32.mrb[46].mxu1 }
 0x567   :  { %v8711_v55 = vpop.f32.mrb[47].mxu1 }
 0x568   :  { %3858 = vmatmul.mubr.bf16.gmra.mrb[204].mxu0 %v10068_v27  ;;  %v12374_v27 = vadd.f32 %v8703_v35, %v12272_v54  ;;  %v8712_v16 = vadd.f32 %v8711_v55, %v8710_v60  ;;  %v10072_v60 = vld [vmem:[%s13176_s1 + $0x808] ss:$16 sps:$4 sm:$0xff]  }
 0x569   :  { %3865 = vmatprep.mubr.bf16.mxu0 %v10069_v28  ;;  %v12377_v28 = vadd.f32 %v8706_v48, %v12276_v37  ;;  %v8713_v37 = vpop.f32.mrb[48].mxu1  ;;  %v10078_v55 = vld [vmem:[%s13176_s1 + $0x828] ss:$16 sps:$4 sm:$0xff]  }
 0x56a   :  { %v12385_v18 = vadd.f32 %v8712_v16, %v12314_v26  ;;  %v8714_v5 = vpop.f32.mrb[49].mxu1  ;;  %v10086_v16 = vld [vmem:[%s13176_s1 + $0x84c] ss:$16 sps:$4 sm:$0xff]  }
 0x56b   :  { %v4414_v40 = vpack.c.bf16 %v12377_v28, %v12374_v27  ;;  %v8715_v34 = vadd.f32 %v8714_v5, %v8713_v37  ;;  %v8716_v8 = vpop.f32.mrb[50].mxu1  ;;  %v10084_v37 = vld [vmem:[%s13176_s1 + $0x848] ss:$16 sps:$4 sm:$0xff]   ;;  %v10092_v5 = vld [vmem:[%s13176_s1 + $0x86c] ss:$16 sps:$4 sm:$0xff]   ;;  %v10253_v27 = vld [vmem:[%s13175_s0 + $0x30] sm:$0xff]  }
 0x56c   :  { %v8717_v25 = vpop.f32.mrb[51].mxu1  ;;  %v10254_v28 = vld [vmem:[%s13175_s0 + $0x78] sm:$0xff]  }
 0x56d   :  { %v12390_v53 = vadd.f32 %v8715_v34, %v12316_v24  ;;  %v8718_v33 = vadd.f32 %v8717_v25, %v8716_v8  ;;  %v8719_v26 = vpop.f32.mrb[52].mxu1  ;;  %v10090_v34 = vld [vmem:[%s13176_s1 + $0x868] ss:$16 sps:$4 sm:$0xff]  }
 0x56e   :  { %v8720_v62 = vpop.f32.mrb[53].mxu1 }
 0x56f   :  { %v12393_v61 = vadd.f32 %v8718_v33, %v12324_v17  ;;  %v8721_v56 = vadd.f32 %v8720_v62, %v8719_v26  ;;  %v8722_v51 = vpop.f32.mrb[54].mxu1  ;;  %v10098_v62 = vld [vmem:[%s13176_s1 + $0x88c] ss:$16 sps:$4 sm:$0xff]  }
 0x570   :  { %3866 = vmatmul.mubr.bf16.gmra.mrb[208].mxu0 %v10071_v43  ;;  %v12382_v43 = vadd.f32 %v8709_v7, %v12306_v41  ;;  %v8723_v49 = vpop.f32.mrb[55].mxu1 }
 0x571   :  { %v4416_v41 = vpack.c.bf16 %v12393_v61, %v12390_v53  ;;  %v12398_v45 = vadd.f32 %v8721_v56, %v12326_v29  ;;  %v8724_v42 = vadd.f32 %v8723_v49, %v8722_v51  ;;  %v8725_v17 = vpop.f32.mrb[56].mxu1  ;;  %v10096_v51 = vld [vmem:[%s13176_s1 + $0x888] ss:$16 sps:$4 sm:$0xff]   ;;  %v10083_v61 = vld [vmem:[%s13176_s1 + $0x820] ss:$16 sps:$4 sm:$0xff]  }
 0x572   :  { %v4415_v54 = vpack.c.bf16 %v12385_v18, %v12382_v43  ;;  %v8726_v35 = vpop.f32.mrb[57].mxu1  ;;  %v10075_v43 = vld [vmem:[%s13176_s1 + $0x800] ss:$16 sps:$4 sm:$0xff]   ;;  %v10255_v18 = vld [vmem:[%s13175_s0 + $0x38] sm:$0xff]  }
 0x573   :  { %v12401_v39 = vadd.f32 %v8724_v42, %v12334_v46  ;;  %v8727_v57 = vadd.f32 %v8726_v35, %v8725_v17  ;;  %v8728_v2 = vpop.f32.mrb[58].mxu1  ;;  %v7389_v46 = vld [vmem:[%s13177_s2 + $0x1c] sm:$0xf] }
 0x574   :  { %v8729_v48 = vpop.f32.mrb[59].mxu1  ;;  %9654 = vmatprep.subr.msk.bf16.mxu0 %vm1114_vm0, %v7389_v46 }
 0x575   :  { %v4417_v24 = vpack.c.bf16 %v12401_v39, %v12398_v45  ;;  %v12406_v23 = vadd.f32 %v8727_v57, %v12336_v52  ;;  %v8730_v50 = vadd.f32 %v8729_v48, %v8728_v2  ;;  %v10074_v52 = vld [vmem:[%s13176_s1 + $0x80c] ss:$16 sps:$4 sm:$0xff]   ;;  %v10089_v45 = vld [vmem:[%s13176_s1 + $0x840] ss:$16 sps:$4 sm:$0xff]   ;;  %v10093_v39 = vld [vmem:[%s13176_s1 + $0x864] ss:$16 sps:$4 sm:$0xff]  }
 0x576   :  { %4883 = vmatprep.mubr.bf16.mxu1 %v10074_v52 }
 0x577   :  { %v12409_v7 = vadd.f32 %v8730_v50, %v12344_v44  ;;  %4884 = vmatmul.mubr.bf16.vlgmr.msra.gmra.mrb[60].mxu1 %v10072_v60  ;;  %v10080_v44 = vld [vmem:[%s13176_s1 + $0x82c] ss:$16 sps:$4 sm:$0xff]  }
 0x578   :  { %4891 = vmatprep.mubr.bf16.mxu1 %v10080_v44  ;;  %v10104_v60 = vld [vmem:[%s13176_s1 + $0x8ac] ss:$16 sps:$4 sm:$0xff]  }
 0x579   :  { %v4418_v29 = vpack.c.bf16 %v12409_v7, %v12406_v23  ;;  %v10099_v23 = vld [vmem:[%s13176_s1 + $0x884] ss:$16 sps:$4 sm:$0xff]   ;;  %v10101_v7 = vld [vmem:[%s13176_s1 + $0x880] ss:$16 sps:$4 sm:$0xff]  }
 0x57f   :  { %4892 = vmatmul.mubr.bf16.gmra.mrb[64].mxu1 %v10078_v55 }
 0x580   :  { %4899 = vmatprep.mubr.bf16.mxu1 %v10086_v16 }
 0x587   :  { %4900 = vmatmul.mubr.bf16.gmra.mrb[68].mxu1 %v10084_v37 }
 0x588   :  { %4907 = vmatprep.mubr.bf16.mxu1 %v10092_v5  ;;  %v4446_v5 = vsel %vm1114_vm0, %v7389_v46, 0  ;;  %v10240_v46 = vld [vmem:[%s13175_s0 + $0x40] sm:$0xff]  }
 0x58f   :  { %4908 = vmatmul.mubr.bf16.gmra.mrb[72].mxu1 %v10090_v34 }
 0x590   :  { %4915 = vmatprep.mubr.bf16.mxu1 %v10098_v62 }
 0x597   :  { %4916 = vmatmul.mubr.bf16.gmra.mrb[76].mxu1 %v10096_v51 }
 0x598   :  { %4923 = vmatprep.mubr.bf16.mxu1 %v10104_v60 }
 0x60b   :  { %v8546_v8 = vpop.f32.mrb[180].mxu0 }
 0x60c   :  { %v8547_v25 = vpop.f32.mrb[181].mxu0 }
 0x60d   :  { %v8548_v33 = vadd.f32 %v8547_v25, %v8546_v8  ;;  %v8549_v26 = vpop.f32.mrb[182].mxu0 }
 0x60e   :  { %v8550_v56 = vpop.f32.mrb[183].mxu0 }
 0x60f   :  { %v3812_v49 = vadd.f32 %v8548_v33, %v12194_v1  ;;  %v8551_v42 = vadd.f32 %v8550_v56, %v8549_v26  ;;  %v10102_v1 = vld [vmem:[%s13176_s1 + $0x8a8] ss:$16 sps:$4 sm:$0xff]   ;;  %v10110_v33 = vld [vmem:[%s13176_s1 + $0x8cc] ss:$16 sps:$4 sm:$0xff]  }
 0x610   :  { %4924 = vmatmul.mubr.bf16.gmra.mrb[80].mxu1 %v10102_v1 }
 0x611   :  { %v3815_v17 = vadd.f32 %v8551_v42, %v12197_v63  ;;  %4931 = vmatprep.mubr.bf16.mxu1 %v10110_v33 }
 0x613   :  { %v3874_v35 = vpack.c.bf16 %v3815_v17, %v3812_v49  ;;  %v8552_v57 = vpop.f32.mrb[184].mxu0 }
 0x614   :  { %v8553_v2 = vpop.f32.mrb[185].mxu0 }
 0x615   :  { %v8554_v48 = vadd.f32 %v8553_v2, %v8552_v57  ;;  %v8555_v50 = vpop.f32.mrb[186].mxu0  ;;  %9131 = vmatprep.mubr.msk.bf16.mxu0 %vm1089_vm1, %v3874_v35  ;;  %v10114_v2 = vld [vmem:[%s13176_s1 + $0x8e8] ss:$16 sps:$4 sm:$0xff]  }
 0x616   :  { %v8556_v52 = vpop.f32.mrb[187].mxu0 }
 0x617   :  { %v3820_v44 = vadd.f32 %v8554_v48, %v12199_v0  ;;  %v8557_v63 = vadd.f32 %v8556_v52, %v8555_v50  ;;  %v10108_v0 = vld [vmem:[%s13176_s1 + $0x8c8] ss:$16 sps:$4 sm:$0xff]  }
 0x618   :  { %4932 = vmatmul.mubr.bf16.gmra.mrb[84].mxu1 %v10108_v0 }
 0x619   :  { %v3823_v55 = vadd.f32 %v8557_v63, %v12202_v13 }
 0x61b   :  { %v3875_v16 = vpack.c.bf16 %v3823_v55, %v3820_v44  ;;  %v8558_v37 = vpop.f32.mrb[188].mxu0 }
 0x61c   :  { %v8559_v34 = vpop.f32.mrb[189].mxu0 }
 0x61d   :  { %v8560_v8 = vadd.f32 %v8559_v34, %v8558_v37  ;;  %v8561_v25 = vpop.f32.mrb[190].mxu0  ;;  %9132 = vmatmul.mubr.msk.bf16.vlgmr.msra.gmra.mrb[68].mxu0 %vm1089_vm1, %v3875_v16 }
 0x61e   :  { %v8562_v26 = vpop.f32.mrb[191].mxu0  ;;  %9148 = vmatpush3.bf16.msra.mxu0 %v4446_v5 }
 0x61f   :  { %v3828_v13 = vadd.f32 %v8560_v8, %v12205_v14  ;;  %v8563_v62 = vadd.f32 %v8562_v26, %v8561_v25  ;;  %8740 = vmatprep.subr.bf16.mxu0 %v10240_v46  ;;  %v10116_v14 = vld [vmem:[%s13176_s1 + $0x8ec] ss:$16 sps:$4 sm:$0xff]  }
 0x620   :  { %4939 = vmatprep.mubr.bf16.mxu1 %v10116_v14 }
 0x621   :  { %v3831_v56 = vadd.f32 %v8563_v62, %v12208_v32  ;;  %4940 = vmatmul.mubr.bf16.gmra.mrb[88].mxu1 %v10114_v2 }
 0x623   :  { %v3876_v51 = vpack.c.bf16 %v3831_v56, %v3828_v13  ;;  %v8564_v49 = vpop.f32.mrb[192].mxu0 }
 0x624   :  { %v8565_v42 = vpop.f32.mrb[193].mxu0 }
 0x625   :  { %v8566_v17 = vadd.f32 %v8565_v42, %v8564_v49  ;;  %v8567_v35 = vpop.f32.mrb[194].mxu0  ;;  %9135 = vmatprep.mubr.msk.bf16.mxu0 %vm1089_vm1, %v3876_v51 }
 0x626   :  { %v8568_v57 = vpop.f32.mrb[195].mxu0 }
 0x627   :  { %v3836_v48 = vadd.f32 %v8566_v17, %v12210_v31  ;;  %v8569_v32 = vadd.f32 %v8568_v57, %v8567_v35 }
 0x629   :  { %v3839_v50 = vadd.f32 %v8569_v32, %v12213_v20 }
 0x62b   :  { %v3877_v60 = vpack.c.bf16 %v3839_v50, %v3836_v48  ;;  %v8570_v52 = vpop.f32.mrb[196].mxu0 }
 0x62c   :  { %v8571_v1 = vpop.f32.mrb[197].mxu0 }
 0x62d   :  { %v8572_v44 = vadd.f32 %v8571_v1, %v8570_v52  ;;  %v8573_v63 = vpop.f32.mrb[198].mxu0  ;;  %9136 = vmatmul.mubr.msk.bf16.gmra.mrb[72].mxu0 %vm1089_vm1, %v3877_v60  ;;  %v10107_v52 = vld [vmem:[%s13176_s1 + $0x8a0] ss:$16 sps:$4 sm:$0xff]   ;;  %v10111_v1 = vld [vmem:[%s13176_s1 + $0x8c4] ss:$16 sps:$4 sm:$0xff]  }
 0x62e   :  { %v8574_v55 = vpop.f32.mrb[199].mxu0 }
 0x62f   :  { %v3844_v16 = vadd.f32 %v8572_v44, %v12218_v21  ;;  %v8575_v37 = vadd.f32 %v8574_v55, %v8573_v63  ;;  %v10113_v44 = vld [vmem:[%s13176_s1 + $0x8c0] ss:$16 sps:$4 sm:$0xff]   ;;  %v10117_v63 = vld [vmem:[%s13176_s1 + $0x8e4] ss:$16 sps:$4 sm:$0xff]  }
 0x630   :  { %v10119_v55 = vld [vmem:[%s13176_s1 + $0x8e0] ss:$16 sps:$4 sm:$0xff]  }
 0x631   :  { %v3847_v5 = vadd.f32 %v8575_v37, %v12221_v30 }
 0x633   :  { %v3878_v34 = vpack.c.bf16 %v3847_v5, %v3844_v16  ;;  %v8576_v31 = vpop.f32.mrb[200].mxu0 }
 0x634   :  { %v8577_v8 = vpop.f32.mrb[201].mxu0 }
 0x635   :  { %v8578_v25 = vadd.f32 %v8577_v8, %v8576_v31  ;;  %v8579_v33 = vpop.f32.mrb[202].mxu0  ;;  %9139 = vmatprep.mubr.msk.bf16.mxu0 %vm1089_vm1, %v3878_v34 }
 0x636   :  { %v8580_v20 = vpop.f32.mrb[203].mxu0 }
 0x637   :  { %v3852_v26 = vadd.f32 %v8578_v25, %v12225_v3  ;;  %v8581_v0 = vadd.f32 %v8580_v20, %v8579_v33 }
 0x639   :  { %v3855_v13 = vadd.f32 %v8581_v0, %v12228_v6 }
 0x63b   :  { %v3879_v62 = vpack.c.bf16 %v3855_v13, %v3852_v26  ;;  %v8582_v46 = vpop.f32.mrb[204].mxu0 }
 0x63c   :  { %v8583_v56 = vpop.f32.mrb[205].mxu0 }
 0x63d   :  { %v8584_v21 = vadd.f32 %v8583_v56, %v8582_v46  ;;  %v8585_v51 = vpop.f32.mrb[206].mxu0  ;;  %9140 = vmatmul.mubr.msk.bf16.gmra.mrb[76].mxu0 %vm1089_vm1, %v3879_v62 }
 0x63e   :  { %v8586_v30 = vpop.f32.mrb[207].mxu0 }
 0x63f   :  { %v3860_v49 = vadd.f32 %v8584_v21, %v12233_v19  ;;  %v8587_v42 = vadd.f32 %v8586_v30, %v8585_v51  ;;  %v10241_v19 = vld [vmem:[%s13175_s0] sm:$0xff]  }
 0x641   :  { %v3863_v17 = vadd.f32 %v8587_v42, %v12236_v47  ;;  %v10242_v47 = vld [vmem:[%s13175_s0 + $0x48] sm:$0xff]  }
 0x643   :  { %v3880_v35 = vpack.c.bf16 %v3863_v17, %v3860_v49  ;;  %v8588_v14 = vpop.f32.mrb[208].mxu0 }
 0x644   :  { %v8589_v57 = vpop.f32.mrb[209].mxu0 }
 0x645   :  { %v8590_v3 = vadd.f32 %v8589_v57, %v8588_v14  ;;  %v8591_v2 = vpop.f32.mrb[210].mxu0  ;;  %9143 = vmatprep.mubr.msk.bf16.mxu0 %vm1089_vm1, %v3880_v35 }
 0x646   :  { %v8592_v6 = vpop.f32.mrb[211].mxu0 }
 0x647   :  { %v3868_v48 = vadd.f32 %v8590_v3, %v12240_v15  ;;  %v8593_v32 = vadd.f32 %v8592_v6, %v8591_v2  ;;  %v10243_v15 = vld [vmem:[%s13175_s0 + $0x8] sm:$0xff]  }
 0x649   :  { %v3871_v50 = vadd.f32 %v8593_v32, %v12243_v12  ;;  %v10244_v12 = vld [vmem:[%s13175_s0 + $0x50] sm:$0xff]  }
 0x64a   :  { %v8820_v16 = vpop.f32.mrb[60].mxu1 }
 0x64b   :  { %v3881_v60 = vpack.c.bf16 %v3871_v50, %v3868_v48  ;;  %v8821_v37 = vpop.f32.mrb[61].mxu1 }
 0x64c   :  { %v8822_v5 = vadd.f32 %v8821_v37, %v8820_v16  ;;  %v8823_v34 = vpop.f32.mrb[62].mxu1 }
 0x64d   :  { %9144 = vmatmul.mubr.msk.bf16.gmra.mrb[80].mxu0 %vm1089_vm1, %v3881_v60  ;;  %v8824_v31 = vpop.f32.mrb[63].mxu1 }
 0x64e   :  { %9149 = vmatprep.mubr.msk.bf16.mxu0 %vm1089_vm1, %v4411_v11  ;;  %v10247_v11 = vld [vmem:[%s13175_s0 + $0x18] sm:$0xff]   ;;  %v8825_v8 = vadd.f32 %v8824_v31, %v8823_v34 }
 0x652   :  { %v8826_v25 = vpop.f32.mrb[64].mxu1 }
 0x653   :  { %v8827_v33 = vpop.f32.mrb[65].mxu1 }
 0x654   :  { %v8828_v20 = vadd.f32 %v8827_v33, %v8826_v25  ;;  %v8829_v26 = vpop.f32.mrb[66].mxu1 }
 0x655   :  { %9150 = vmatmul.mubr.msk.bf16.vlgmr.msra.gmra.mrb[68].mxu0 %vm1089_vm1, %v4412_v4  ;;  %v10250_v4 = vld [vmem:[%s13175_s0 + $0x68] sm:$0xff]   ;;  %v8830_v0 = vpop.f32.mrb[67].mxu1 }
 0x656   :  { %9153 = vmatprep.mubr.msk.bf16.mxu0 %vm1089_vm1, %v4413_v9  ;;  %8741 = vmatpush3.bf16.msra.mxu0 %v10241_v19  ;;  %v10252_v9 = vld [vmem:[%s13175_s0 + $0x70] sm:$0xff]   ;;  %v8831_v13 = vadd.f32 %v8830_v0, %v8829_v26 }
 0x657   :  { %8742 = vmatprep.subr.bf16.mxu0 %v10242_v47 }
 0x65a   :  { %8743 = vmatpush3.bf16.msra.mxu0 %v10243_v15  ;;  %v8832_v62 = vpop.f32.mrb[68].mxu1 }
 0x65b   :  { %8744 = vmatprep.subr.bf16.mxu0 %v10244_v12  ;;  %v8833_v46 = vpop.f32.mrb[69].mxu1 }
 0x65c   :  { %v8834_v56 = vadd.f32 %v8833_v46, %v8832_v62  ;;  %v8835_v21 = vpop.f32.mrb[70].mxu1 }
 0x65d   :  { %9154 = vmatmul.mubr.msk.bf16.gmra.mrb[72].mxu0 %vm1089_vm1, %v4414_v40  ;;  %v7462_v40 = vld [vmem:[%s13177_s2 + $0x20] sm:$0xf]  ;;  %v8836_v51 = vpop.f32.mrb[71].mxu1 }
 0x65e   :  { %9157 = vmatprep.mubr.msk.bf16.mxu0 %vm1089_vm1, %v4415_v54  ;;  %8745 = vmatpush3.bf16.msra.mxu0 %v10245_v58  ;;  %v10081_v54 = vld [vmem:[%s13176_s1 + $0x824] ss:$16 sps:$4 sm:$0xff]   ;;  %v4983_v53 = vsel %vm1114_vm0, %v7462_v40, 0  ;;  %v8837_v30 = vadd.f32 %v8836_v51, %v8835_v21 }
 0x65f   :  { %8746 = vmatprep.subr.bf16.mxu0 %v10246_v59 }
 0x662   :  { %8747 = vmatpush3.bf16.msra.mxu0 %v10247_v11  ;;  %v8838_v49 = vpop.f32.mrb[72].mxu1 }
 0x663   :  { %8748 = vmatprep.subr.bf16.mxu0 %v10248_v36  ;;  %v8839_v42 = vpop.f32.mrb[73].mxu1 }
 0x664   :  { %v12623_v17 = vadd.f32 %v8839_v42, %v8838_v49  ;;  %v8841_v35 = vpop.f32.mrb[74].mxu1 }
 0x665   :  { %9158 = vmatmul.mubr.msk.bf16.gmra.mrb[76].mxu0 %vm1089_vm1, %v4416_v41  ;;  %v10087_v41 = vld [vmem:[%s13176_s1 + $0x844] ss:$16 sps:$4 sm:$0xff]   ;;  %v8842_v14 = vpop.f32.mrb[75].mxu1 }
 0x666   :  { %9161 = vmatprep.mubr.msk.bf16.mxu0 %vm1089_vm1, %v4417_v24  ;;  %8749 = vmatpush3.bf16.msra.mxu0 %v10249_v10  ;;  %v10095_v24 = vld [vmem:[%s13176_s1 + $0x860] ss:$16 sps:$4 sm:$0xff]   ;;  %v8843_v57 = vadd.f32 %v8842_v14, %v8841_v35 }
 0x667   :  { %8750 = vmatprep.subr.bf16.mxu0 %v10250_v4 }
 0x66a   :  { %8751 = vmatpush3.bf16.msra.mxu0 %v10251_v38  ;;  %v8844_v3 = vpop.f32.mrb[76].mxu1 }
 0x66b   :  { %8752 = vmatprep.subr.bf16.mxu0 %v10252_v9  ;;  %v8845_v2 = vpop.f32.mrb[77].mxu1 }
 0x66c   :  { %v12625_v6 = vadd.f32 %v8845_v2, %v8844_v3  ;;  %v8847_v48 = vpop.f32.mrb[78].mxu1 }
 0x66d   :  { %9162 = vmatmul.mubr.msk.bf16.gmra.mrb[80].mxu0 %vm1089_vm1, %v4418_v29  ;;  %v10105_v29 = vld [vmem:[%s13176_s1 + $0x8a4] ss:$16 sps:$4 sm:$0xff]   ;;  %v8848_v32 = vpop.f32.mrb[79].mxu1 }
 0x66e   :  { %8753 = vmatpush3.bf16.msra.mxu0 %v10253_v27  ;;  %4786 = vmatprep.mubr.bf16.mxu0 %v10077_v22  ;;  %v12627_v50 = vadd.f32 %v8848_v32, %v8847_v48 }
 0x66f   :  { %8754 = vmatprep.subr.bf16.mxu0 %v10254_v28 }
 0x672   :  { %8755 = vmatpush3.bf16.msra.mxu0 %v10255_v18 }
 0x673   :  { %9655 = vmatprep.subr.msk.bf16.mxu0 %vm1114_vm0, %v7462_v40 }
 0x675   :  { %4787 = vmatmul.mubr.bf16.vlgmr.msra.gmra.mrb[212].mxu0 %v10075_v43 }
 0x676   :  { %4794 = vmatprep.mubr.bf16.mxu0 %v10081_v54  ;;  %9166 = vmatpush3.bf16.msra.mxu0 %v4983_v53 }
 0x67d   :  { %4795 = vmatmul.mubr.bf16.gmra.mrb[216].mxu0 %v10083_v61 }
 0x67e   :  { %4802 = vmatprep.mubr.bf16.mxu0 %v10087_v41 }
 0x685   :  { %4803 = vmatmul.mubr.bf16.gmra.mrb[220].mxu0 %v10089_v45 }
 0x686   :  { %4810 = vmatprep.mubr.bf16.mxu0 %v10093_v39 }
 0x68d   :  { %4811 = vmatmul.mubr.bf16.gmra.mrb[224].mxu0 %v10095_v24 }
 0x68e   :  { %4818 = vmatprep.mubr.bf16.mxu0 %v10099_v23 }
 0x695   :  { %4819 = vmatmul.mubr.bf16.gmra.mrb[228].mxu0 %v10101_v7 }
 0x696   :  { %4826 = vmatprep.mubr.bf16.mxu0 %v10105_v29 }
 0x69d   :  { %4827 = vmatmul.mubr.bf16.gmra.mrb[232].mxu0 %v10107_v52 }
 0x69e   :  { %4834 = vmatprep.mubr.bf16.mxu0 %v10111_v1 }
 0x6a5   :  { %4835 = vmatmul.mubr.bf16.gmra.mrb[236].mxu0 %v10113_v44 }
 0x6a6   :  { %4842 = vmatprep.mubr.bf16.mxu0 %v10117_v63 }
 0x6ad   :  { %4843 = vmatmul.mubr.bf16.gmra.mrb[240].mxu0 %v10119_v55 }
 0x6e3   :  { %v8850_v60 = vpop.f32.mrb[80].mxu1 }
 0x6e4   :  { %v8851_v19 = vpop.f32.mrb[81].mxu1 }
 0x6e5   :  { %v12629_v47 = vadd.f32 %v8851_v19, %v8850_v60  ;;  %v8853_v15 = vpop.f32.mrb[82].mxu1 }
 0x6e6   :  { %v8854_v12 = vpop.f32.mrb[83].mxu1 }
 0x6e7   :  { %v12631_v58 = vadd.f32 %v8854_v12, %v8853_v15 }
 0x6eb   :  { %v8856_v59 = vpop.f32.mrb[84].mxu1 }
 0x6ec   :  { %v8857_v11 = vpop.f32.mrb[85].mxu1 }
 0x6ed   :  { %v12633_v36 = vadd.f32 %v8857_v11, %v8856_v59  ;;  %v8859_v10 = vpop.f32.mrb[86].mxu1 }
 0x6ee   :  { %v8860_v4 = vpop.f32.mrb[87].mxu1 }
 0x6ef   :  { %v12635_v38 = vadd.f32 %v8860_v4, %v8859_v10 }
 0x6f4   :  { %v8862_v22 = vpop.f32.mrb[88].mxu1 }
 0x6f5   :  { %v8863_v9 = vpop.f32.mrb[89].mxu1 }
 0x6f6   :  { %v12637_v27 = vadd.f32 %v8863_v9, %v8862_v22  ;;  %v8865_v28 = vpop.f32.mrb[90].mxu1 }
 0x6f7   :  { %v8866_v40 = vpop.f32.mrb[91].mxu1 }
 0x6f8   :  { %v12639_v43 = vadd.f32 %v8866_v40, %v8865_v28 }
 0x748   :  { %v8756_v18 = vpop.f32.mrb[212].mxu0 }
 0x749   :  { %v8757_v54 = vpop.f32.mrb[213].mxu0 }
 0x74a   :  { %v8758_v53 = vadd.f32 %v8757_v54, %v8756_v18  ;;  %v8759_v61 = vpop.f32.mrb[214].mxu0 }
 0x74b   :  { %v8760_v41 = vpop.f32.mrb[215].mxu0 }
 0x74c   :  { %v4886_v45 = vadd.f32 %v8822_v5, %v8758_v53  ;;  %v8761_v39 = vadd.f32 %v8760_v41, %v8759_v61 }
 0x74e   :  { %v4889_v24 = vadd.f32 %v8825_v8, %v8761_v39 }
 0x750   :  { %v4948_v23 = vpack.c.bf16 %v4889_v24, %v4886_v45  ;;  %v8762_v7 = vpop.f32.mrb[216].mxu0 }
 0x751   :  { %v8763_v29 = vpop.f32.mrb[217].mxu0 }
 0x752   :  { %v8764_v52 = vadd.f32 %v8763_v29, %v8762_v7  ;;  %v8765_v1 = vpop.f32.mrb[218].mxu0  ;;  %9167 = vmatprep.mubr.msk.bf16.mxu0 %vm1089_vm1, %v4948_v23 }
 0x753   :  { %v8766_v44 = vpop.f32.mrb[219].mxu0 }
 0x754   :  { %v4894_v63 = vadd.f32 %v8828_v20, %v8764_v52  ;;  %v8767_v55 = vadd.f32 %v8766_v44, %v8765_v1 }
 0x756   :  { %v4897_v16 = vadd.f32 %v8831_v13, %v8767_v55 }
 0x758   :  { %v4949_v37 = vpack.c.bf16 %v4897_v16, %v4894_v63  ;;  %v8768_v34 = vpop.f32.mrb[220].mxu0 }
 0x759   :  { %v8769_v31 = vpop.f32.mrb[221].mxu0 }
 0x75a   :  { %v8770_v25 = vadd.f32 %v8769_v31, %v8768_v34  ;;  %v8771_v33 = vpop.f32.mrb[222].mxu0  ;;  %9168 = vmatmul.mubr.msk.bf16.vlgmr.msra.gmra.mrb[68].mxu0 %vm1089_vm1, %v4949_v37 }
 0x75b   :  { %v8772_v5 = vpop.f32.mrb[223].mxu0 }
 0x75c   :  { %v4902_v8 = vadd.f32 %v8834_v56, %v8770_v25  ;;  %v8773_v26 = vadd.f32 %v8772_v5, %v8771_v33 }
 0x75e   :  { %v4905_v0 = vadd.f32 %v8837_v30, %v8773_v26 }
 0x760   :  { %v4950_v62 = vpack.c.bf16 %v4905_v0, %v4902_v8  ;;  %v8774_v46 = vpop.f32.mrb[224].mxu0 }
 0x761   :  { %v8775_v21 = vpop.f32.mrb[225].mxu0 }
 0x762   :  { %v8776_v51 = vadd.f32 %v8775_v21, %v8774_v46  ;;  %v8777_v49 = vpop.f32.mrb[226].mxu0  ;;  %9171 = vmatprep.mubr.msk.bf16.mxu0 %vm1089_vm1, %v4950_v62 }
 0x763   :  { %v8778_v20 = vpop.f32.mrb[227].mxu0 }
 0x764   :  { %v4910_v13 = vadd.f32 %v12623_v17, %v8776_v51  ;;  %v8779_v42 = vadd.f32 %v8778_v20, %v8777_v49 }
 0x766   :  { %v4913_v35 = vadd.f32 %v8843_v57, %v8779_v42 }
 0x768   :  { %v4951_v14 = vpack.c.bf16 %v4913_v35, %v4910_v13  ;;  %v8780_v3 = vpop.f32.mrb[228].mxu0 }
 0x769   :  { %v8781_v2 = vpop.f32.mrb[229].mxu0 }
 0x76a   :  { %v8782_v48 = vadd.f32 %v8781_v2, %v8780_v3  ;;  %v8783_v32 = vpop.f32.mrb[230].mxu0  ;;  %9172 = vmatmul.mubr.msk.bf16.gmra.mrb[72].mxu0 %vm1089_vm1, %v4951_v14 }
 0x76b   :  { %v8784_v56 = vpop.f32.mrb[231].mxu0 }
 0x76c   :  { %v4918_v30 = vadd.f32 %v12625_v6, %v8782_v48  ;;  %v8785_v60 = vadd.f32 %v8784_v56, %v8783_v32 }
 0x76e   :  { %v4921_v19 = vadd.f32 %v12627_v50, %v8785_v60 }
 0x770   :  { %v4952_v15 = vpack.c.bf16 %v4921_v19, %v4918_v30  ;;  %v8786_v12 = vpop.f32.mrb[232].mxu0 }
 0x771   :  { %v8787_v59 = vpop.f32.mrb[233].mxu0 }
 0x772   :  { %v8788_v11 = vadd.f32 %v8787_v59, %v8786_v12  ;;  %v8789_v17 = vpop.f32.mrb[234].mxu0  ;;  %9175 = vmatprep.mubr.msk.bf16.mxu0 %vm1089_vm1, %v4952_v15 }
 0x773   :  { %v8790_v57 = vpop.f32.mrb[235].mxu0 }
 0x774   :  { %v4926_v10 = vadd.f32 %v12629_v47, %v8788_v11  ;;  %v8791_v4 = vadd.f32 %v8790_v57, %v8789_v17 }
 0x776   :  { %v4929_v22 = vadd.f32 %v12631_v58, %v8791_v4 }
 0x778   :  { %v4953_v9 = vpack.c.bf16 %v4929_v22, %v4926_v10  ;;  %v8792_v28 = vpop.f32.mrb[236].mxu0 }
 0x779   :  { %v8793_v40 = vpop.f32.mrb[237].mxu0 }
 0x77a   :  { %v8794_v6 = vadd.f32 %v8793_v40, %v8792_v28  ;;  %v8795_v18 = vpop.f32.mrb[238].mxu0  ;;  %9176 = vmatmul.mubr.msk.bf16.gmra.mrb[76].mxu0 %vm1089_vm1, %v4953_v9 }
 0x77b   :  { %v8796_v50 = vpop.f32.mrb[239].mxu0 }
 0x77c   :  { %v4934_v54 = vadd.f32 %v12633_v36, %v8794_v6  ;;  %v8797_v53 = vadd.f32 %v8796_v50, %v8795_v18  ;;  %v7471_v36 = vld [vmem:[%s13178_s3] ss:$0 sm:$0xff] }
 0x77e   :  { %v4937_v61 = vadd.f32 %v12635_v38, %v8797_v53 }
 0x780   :  { %v4954_v41 = vpack.c.bf16 %v4937_v61, %v4934_v54  ;;  %v8798_v45 = vpop.f32.mrb[240].mxu0 }
 0x781   :  { %v8799_v39 = vpop.f32.mrb[241].mxu0 }
 0x782   :  { %v8800_v47 = vadd.f32 %v8799_v39, %v8798_v45  ;;  %v8801_v24 = vpop.f32.mrb[242].mxu0  ;;  %9179 = vmatprep.mubr.msk.bf16.mxu0 %vm1089_vm1, %v4954_v41 }
 0x783   :  { %v8802_v58 = vpop.f32.mrb[243].mxu0 }
 0x784   :  { %v4942_v23 = vadd.f32 %v12637_v27, %v8800_v47  ;;  %v8803_v7 = vadd.f32 %v8802_v58, %v8801_v24 }
 0x786   :  { %v4945_v29 = vadd.f32 %v12639_v43, %v8803_v7 }
 0x788   :  { %v4955_v52 = vpack.c.bf16 %v4945_v29, %v4942_v23 }
 0x78a   :  { %9180 = vmatmul.mubr.msk.bf16.gmra.mrb[80].mxu0 %vm1089_vm1, %v4955_v52 }
 0x82d   :  { %v9169_v38 = vpop.f32.mrb[68].mxu0 }
 0x82e   :  { %v5019_v1 = vpop.f32.mrb[69].mxu0  ;;  %v12663_v16 = vadd.f32 %v9169_v38, %v7471_v36 }
 0x82f   :  { %v12661_v44 = vadd.f32 %v7471_v36, %v5019_v1  ;;  %v9170_v63 = vpop.f32.mrb[70].mxu0 }
 0x830   :  { %v5022_v55 = vpop.f32.mrb[71].mxu0  ;;  %v12669_v37 = vadd.f32 %v9170_v63, %v7471_v36  ;;  %v5125_v25 = vsel %vm13195_vm2, %v12663_v16, 0.0 }
 0x831   :  { %v12665_v27 = vadd.f32 %v7471_v36, %v5022_v55  ;;  %v5122_v43 = vsel %vm13195_vm2, %v12661_v44, 0.0 }
 0x832   :  { %v5127_v5 = vsel %vm13195_vm2, %v12669_v37, 0.0 }
 0x833   :  { %v5123_v34 = vsel %vm13195_vm2, %v12665_v27, 0.0 }
 0x834   :  { %v5124_v31 = vadd.f32 %v5123_v34, %v5122_v43  ;;  %v10120_v34 = vld [vmem:[%s13179_s6 + $0x10] sm:$0xff]  }
 0x835   :  { %9219 = vmatprep.mubr.bf16.mxu0 %v10120_v34 }
 0x836   :  { %v5126_v33 = vadd.f32 %v5125_v25, %v5124_v31 }
 0x838   :  { %v5128_v8 = vadd.f32 %v5127_v5, %v5126_v33 }
 0x83d   :  { %v9173_v26 = vpop.f32.mrb[72].mxu0 }
 0x83e   :  { %v5035_v0 = vpop.f32.mrb[73].mxu0  ;;  %v5111_v51 = vadd.f32 %v9173_v26, %v7471_v36 }
 0x83f   :  { %v5109_v62 = vadd.f32 %v7471_v36, %v5035_v0  ;;  %v9174_v46 = vpop.f32.mrb[74].mxu0 }
 0x840   :  { %v5038_v21 = vpop.f32.mrb[75].mxu0  ;;  %v5112_v42 = vadd.f32 %v9174_v46, %v7471_v36  ;;  %v5133_v3 = vsel %vm13195_vm2, %v5111_v51, 0.0 }
 0x841   :  { %v5129_v49 = vsel %vm13195_vm2, %v5109_v62, 0.0  ;;  %v5110_v20 = vadd.f32 %v7471_v36, %v5038_v21 }
 0x842   :  { %v5130_v13 = vadd.f32 %v5129_v49, %v5128_v8  ;;  %v5135_v48 = vsel %vm13195_vm2, %v5112_v42, 0.0 }
 0x843   :  { %v5131_v35 = vsel %vm13195_vm2, %v5110_v20, 0.0 }
 0x844   :  { %v5132_v14 = vadd.f32 %v5131_v35, %v5130_v13 }
 0x846   :  { %v5134_v2 = vadd.f32 %v5133_v3, %v5132_v14 }
 0x848   :  { %v5136_v32 = vadd.f32 %v5135_v48, %v5134_v2  ;;  %v10122_v48 = vld [vmem:[%s13179_s6] sm:$0xff]  }
 0x849   :  { %9199 = vmatprep.mubr.bf16.mxu1 %v10122_v48 }
 0x84d   :  { %v9177_v56 = vpop.f32.mrb[76].mxu0 }
 0x84e   :  { %v5051_v30 = vpop.f32.mrb[77].mxu0  ;;  %v5115_v12 = vadd.f32 %v9177_v56, %v7471_v36 }
 0x84f   :  { %v5113_v60 = vadd.f32 %v7471_v36, %v5051_v30  ;;  %v9178_v19 = vpop.f32.mrb[78].mxu0 }
 0x850   :  { %v5054_v15 = vpop.f32.mrb[79].mxu0  ;;  %v5116_v57 = vadd.f32 %v9178_v19, %v7471_v36  ;;  %v5141_v22 = vsel %vm13195_vm2, %v5115_v12, 0.0 }
 0x851   :  { %v5137_v59 = vsel %vm13195_vm2, %v5113_v60, 0.0  ;;  %v5114_v11 = vadd.f32 %v7471_v36, %v5054_v15 }
 0x852   :  { %v5138_v17 = vadd.f32 %v5137_v59, %v5136_v32  ;;  %v5143_v28 = vsel %vm13195_vm2, %v5116_v57, 0.0 }
 0x853   :  { %v5139_v10 = vsel %vm13195_vm2, %v5114_v11, 0.0 }
 0x854   :  { %v5140_v4 = vadd.f32 %v5139_v10, %v5138_v17 }
 0x856   :  { %v5142_v9 = vadd.f32 %v5141_v22, %v5140_v4 }
 0x858   :  { %v5144_v40 = vadd.f32 %v5143_v28, %v5142_v9 }
 0x85d   :  { %v9181_v6 = vpop.f32.mrb[80].mxu0 }
 0x85e   :  { %v5067_v18 = vpop.f32.mrb[81].mxu0  ;;  %v5119_v61 = vadd.f32 %v9181_v6, %v7471_v36 }
 0x85f   :  { %v5117_v50 = vadd.f32 %v7471_v36, %v5067_v18  ;;  %v9182_v54 = vpop.f32.mrb[82].mxu0 }
 0x860   :  { %v5070_v53 = vpop.f32.mrb[83].mxu0  ;;  %v5120_v47 = vadd.f32 %v9182_v54, %v7471_v36  ;;  %v5149_v23 = vsel %vm13195_vm2, %v5119_v61, 0.0 }
 0x861   :  { %v5145_v41 = vsel %vm13195_vm2, %v5117_v50, 0.0  ;;  %v5118_v45 = vadd.f32 %v7471_v36, %v5070_v53 }
 0x862   :  { %v5146_v39 = vadd.f32 %v5145_v41, %v5144_v40  ;;  %v5151_v29 = vsel %vm13195_vm2, %v5120_v47, 0.0 }
 0x863   :  { %v5147_v24 = vsel %vm13195_vm2, %v5118_v45, 0.0 }
 0x864   :  { %v5148_v58 = vadd.f32 %v5147_v24, %v5146_v39 }
 0x866   :  { %v5150_v7 = vadd.f32 %v5149_v23, %v5148_v58 }
 0x868   :  { %v5152_v52 = vadd.f32 %v5151_v29, %v5150_v7 }
 0x86a   :  { %v5153_v38 = vrot.slane %v5152_v52, 4 }
 0x86c   :  { %v5154_v1 = vadd.f32 %v5153_v38, %v5152_v52 }
 0x86e   :  { %v5155_v63 = vrot.slane %v5154_v1, 2 }
 0x870   :  { %v5156_v55 = vadd.f32 %v5155_v63, %v5154_v1 }
 0x872   :  { %v5157_v43 = vrot.slane %v5156_v55, 1 }
 0x874   :  { %v5158_v31 = vadd.f32 %v5157_v43, %v5156_v55 }
 0x876   :  { %v5159_v36 = vmul.f32 0.0078125, %v5158_v31 }
 0x878   :  { %v12693_v25 = vsub.f32 %v12661_v44, %v5159_v36  ;;  %v12696_v33 = vsub.f32 %v12665_v27, %v5159_v36  ;;  %v12699_v5 = vsub.f32 %v12663_v16, %v5159_v36  ;;  %v12702_v8 = vsub.f32 %v12669_v37, %v5159_v36 }
 0x879   :  { %v12704_v26 = vsub.f32 %v5109_v62, %v5159_v36  ;;  %v12706_v0 = vsub.f32 %v5110_v20, %v5159_v36  ;;  %v12708_v46 = vsub.f32 %v5111_v51, %v5159_v36  ;;  %v12710_v21 = vsub.f32 %v5112_v42, %v5159_v36 }
 0x87a   :  { %v12712_v49 = vsub.f32 %v5113_v60, %v5159_v36  ;;  %v12714_v44 = vsub.f32 %v5114_v11, %v5159_v36  ;;  %v12716_v27 = vsub.f32 %v5115_v12, %v5159_v36  ;;  %v12718_v13 = vsub.f32 %v5116_v57, %v5159_v36 }
 0x87b   :  { %v12720_v16 = vsub.f32 %v5117_v50, %v5159_v36  ;;  %v12722_v37 = vsub.f32 %v5118_v45, %v5159_v36  ;;  %v12724_v62 = vsub.f32 %v5119_v61, %v5159_v36  ;;  %v12726_v20 = vsub.f32 %v5120_v47, %v5159_v36 }
 0x87c   :  { %v5176_v51 = vmul.f32 %v12693_v25, %v12693_v25  ;;  %v5177_v42 = vmul.f32 %v12696_v33, %v12696_v33  ;;  %v5178_v35 = vmul.f32 %v12699_v5, %v12699_v5  ;;  %v5179_v14 = vmul.f32 %v12702_v8, %v12702_v8 }
 0x87d   :  { %v5180_v56 = vmul.f32 %v12704_v26, %v12704_v26  ;;  %v5181_v19 = vmul.f32 %v12706_v0, %v12706_v0  ;;  %v5182_v59 = vmul.f32 %v12708_v46, %v12708_v46  ;;  %v5183_v57 = vmul.f32 %v12710_v21, %v12710_v21 }
 0x87e   :  { %v5192_v3 = vsel %vm13195_vm2, %v5176_v51, 0.0  ;;  %v5193_v2 = vsel %vm13195_vm2, %v5177_v42, 0.0  ;;  %v5195_v30 = vsel %vm13195_vm2, %v5178_v35, 0.0  ;;  %v5197_v15 = vsel %vm13195_vm2, %v5179_v14, 0.0 }
 0x87f   :  { %v5194_v32 = vadd.f32 %v5193_v2, %v5192_v3  ;;  %v5199_v11 = vsel %vm13195_vm2, %v5180_v56, 0.0  ;;  %v5201_v10 = vsel %vm13195_vm2, %v5181_v19, 0.0  ;;  %v5184_v22 = vmul.f32 %v12712_v49, %v12712_v49 }
 0x880   :  { %v5203_v9 = vsel %vm13195_vm2, %v5182_v59, 0.0  ;;  %v5185_v40 = vmul.f32 %v12714_v44, %v12714_v44  ;;  %v5205_v6 = vsel %vm13195_vm2, %v5183_v57, 0.0  ;;  %v5186_v50 = vmul.f32 %v12716_v27, %v12716_v27 }
 0x881   :  { %v5196_v60 = vadd.f32 %v5195_v30, %v5194_v32  ;;  %v5207_v54 = vsel %vm13195_vm2, %v5184_v22, 0.0  ;;  %v5187_v61 = vmul.f32 %v12718_v13, %v12718_v13  ;;  %v5188_v39 = vmul.f32 %v12720_v16, %v12720_v16 }
 0x882   :  { %v5209_v41 = vsel %vm13195_vm2, %v5185_v40, 0.0  ;;  %v5211_v47 = vsel %vm13195_vm2, %v5186_v50, 0.0  ;;  %v5189_v58 = vmul.f32 %v12722_v37, %v12722_v37  ;;  %v5190_v29 = vmul.f32 %v12724_v62, %v12724_v62  ;;  %v7472_v40 = vld [vmem:[%s13181_s5] ss:$0 sm:$0xff] }
 0x883   :  { %v5198_v12 = vadd.f32 %v5197_v15, %v5196_v60  ;;  %v5213_v23 = vsel %vm13195_vm2, %v5187_v61, 0.0  ;;  %v5215_v52 = vsel %vm13195_vm2, %v5188_v39, 0.0  ;;  %v5191_v1 = vmul.f32 %v12726_v20, %v12726_v20  ;;  %v5232_v60 = vld [vmem:[%s13180_s4] sm:$0x1] }
 0x884   :  { %v5217_v63 = vsel %vm13195_vm2, %v5189_v58, 0.0  ;;  %v5219_v43 = vsel %vm13195_vm2, %v5190_v29, 0.0  ;;  %v5235_v56 = vlaneseq }
 0x885   :  { %v5200_v17 = vadd.f32 %v5199_v11, %v5198_v12  ;;  %v5221_v31 = vsel %vm13195_vm2, %v5191_v1, 0.0 }
 0x886   :  { %v5236_v30 = vshrl.u32 %v5235_v56, 7 }
 0x887   :  { %v5202_v4 = vadd.f32 %v5201_v10, %v5200_v17 }
 0x888   :  { %v5237_v19 = vsub.s32 0, %v5236_v30 }
 0x889   :  { %v5204_v28 = vadd.f32 %v5203_v9, %v5202_v4 }
 0x88b   :  { %v5206_v18 = vadd.f32 %v5205_v6, %v5204_v28 }
 0x88d   :  { %v5208_v53 = vadd.f32 %v5207_v54, %v5206_v18 }
 0x88f   :  { %v5210_v45 = vadd.f32 %v5209_v41, %v5208_v53 }
 0x891   :  { %v5212_v24 = vadd.f32 %v5211_v47, %v5210_v45 }
 0x893   :  { %v5214_v7 = vadd.f32 %v5213_v23, %v5212_v24 }
 0x895   :  { %v5216_v38 = vadd.f32 %v5215_v52, %v5214_v7 }
 0x897   :  { %v5218_v55 = vadd.f32 %v5217_v63, %v5216_v38 }
 0x899   :  { %v5220_v34 = vadd.f32 %v5219_v43, %v5218_v55 }
 0x89b   :  { %v5222_v36 = vadd.f32 %v5221_v31, %v5220_v34 }
 0x89d   :  { %v5223_v51 = vrot.slane %v5222_v36, 4 }
 0x89f   :  { %v5224_v42 = vadd.f32 %v5223_v51, %v5222_v36 }
 0x8a1   :  { %v5225_v35 = vrot.slane %v5224_v42, 2 }
 0x8a3   :  { %v5226_v14 = vadd.f32 %v5225_v35, %v5224_v42 }
 0x8a5   :  { %v5227_v3 = vrot.slane %v5226_v14, 1 }
 0x8a7   :  { %v5228_v2 = vadd.f32 %v5227_v3, %v5226_v14 }
 0x8a9   :  { %v5229_v48 = vmul.f32 0.0078125, %v5228_v2 }
 0x8ab   :  { %v5230_v32 = vadd.f32 1e-05, %v5229_v48 }
 0x8ad   :  { %10174 = vrsqrt.f32 %v5230_v32 }
 0x8b7   :  { %v10175_v15 = vpop.eup %10174 }
 0x8b8   :  { %v5233_v12 = vmul.f32 %v10175_v15, %v5232_v60 }
 0x8ba   :  { %v5238_v59 = vrot.slane %v5233_v12, %v5237_v19 }
 0x8bc   :  { %v5240_v11 = vmul.f32 %v5238_v59, %v12693_v25  ;;  %v5241_v17 = vmul.f32 %v5238_v59, %v12696_v33  ;;  %v5242_v57 = vmul.f32 %v5238_v59, %v12699_v5  ;;  %v5243_v10 = vmul.f32 %v5238_v59, %v12702_v8 }
 0x8bd   :  { %v5244_v4 = vmul.f32 %v5238_v59, %v12704_v26  ;;  %v5245_v22 = vmul.f32 %v5238_v59, %v12706_v0  ;;  %v5246_v9 = vmul.f32 %v5238_v59, %v12708_v46  ;;  %v5247_v28 = vmul.f32 %v5238_v59, %v12710_v21 }
 0x8be   :  { %v5248_v25 = vmul.f32 %v5238_v59, %v12712_v49  ;;  %v5249_v33 = vmul.f32 %v5238_v59, %v12714_v44  ;;  %v5250_v5 = vmul.f32 %v5238_v59, %v12716_v27  ;;  %v5251_v8 = vmul.f32 %v5238_v59, %v12718_v13 }
 0x8bf   :  { %v5252_v26 = vmul.f32 %v5238_v59, %v12720_v16  ;;  %v5253_v0 = vmul.f32 %v5238_v59, %v12722_v37  ;;  %v5254_v46 = vmul.f32 %v5238_v59, %v12724_v62  ;;  %v5255_v21 = vmul.f32 %v5238_v59, %v12726_v20 }
 0x8c0   :  { %v5263_v6 = vadd.f32 %v7472_v40, %v5240_v11  ;;  %v5264_v18 = vadd.f32 %v7472_v40, %v5241_v17  ;;  %v5265_v50 = vadd.f32 %v7472_v40, %v5242_v57  ;;  %v5266_v54 = vadd.f32 %v7472_v40, %v5243_v10 }
 0x8c1   :  { %v5267_v53 = vadd.f32 %v7472_v40, %v5244_v4  ;;  %v5268_v49 = vadd.f32 %v7472_v40, %v5245_v22  ;;  %v5269_v61 = vadd.f32 %v7472_v40, %v5246_v9  ;;  %v5270_v44 = vadd.f32 %v7472_v40, %v5247_v28 }
 0x8c2   :  { %v5271_v41 = vadd.f32 %v7472_v40, %v5248_v25  ;;  %v5272_v27 = vadd.f32 %v7472_v40, %v5249_v33  ;;  %v5273_v45 = vadd.f32 %v7472_v40, %v5250_v5  ;;  %v5274_v13 = vadd.f32 %v7472_v40, %v5251_v8  ;;  %v10121_v25 = vld [vmem:[%s13179_s6 + $0x18] sm:$0xff]   ;;  %v10123_v33 = vld [vmem:[%s13179_s6 + $0x8] sm:$0xff]   ;;  %v10124_v5 = vld [vmem:[%s13179_s6 + $0x20] sm:$0xff]  }
 0x8c3   :  { %v5275_v39 = vadd.f32 %v7472_v40, %v5252_v26  ;;  %v5276_v16 = vadd.f32 %v7472_v40, %v5253_v0  ;;  %v5277_v47 = vadd.f32 %v7472_v40, %v5254_v46  ;;  %v5278_v37 = vadd.f32 %v7472_v40, %v5255_v21  ;;  %v10125_v8 = vld [vmem:[%s13179_s6 + $0x28] sm:$0xff]   ;;  %v10126_v26 = vld [vmem:[%s13179_s6 + $0x40] sm:$0xff]   ;;  %v10134_v21 = vld [vmem:[%s13182_s7 + $0x30] sm:$0xff]  }
 0x8c4   :  { %vm5279_vm3 = vcmp.ge.f32.partialorder %v5263_v6, 0.0  ;;  %vm5280_vm4 = vcmp.ge.f32.partialorder %v5264_v18, 0.0  ;;  %vm5281_vm5 = vcmp.ge.f32.partialorder %v5265_v50, 0.0  ;;  %vm5282_vm6 = vcmp.ge.f32.partialorder %v5266_v54, 0.0  ;;  %v10132_v0 = vld [vmem:[%s13182_s7 + $0x20] sm:$0xff]   ;;  %v10133_v46 = vld [vmem:[%s13182_s7 + $0x28] sm:$0xff]  }
 0x8c5   :  { %vm5283_vm7 = vcmp.ge.f32.partialorder %v5267_v53, 0.0  ;;  %vm5284_vm8 = vcmp.ge.f32.partialorder %v5268_v49, 0.0  ;;  %vm5285_vm9 = vcmp.ge.f32.partialorder %v5269_v61, 0.0  ;;  %vm5286_vm10 = vcmp.ge.f32.partialorder %v5270_v44, 0.0 }
 0x8c6   :  { %vm5287_vm11 = vcmp.ge.f32.partialorder %v5271_v41, 0.0  ;;  %vm5288_vm12 = vcmp.ge.f32.partialorder %v5272_v27, 0.0  ;;  %vm5289_vm13 = vcmp.ge.f32.partialorder %v5273_v45, 0.0  ;;  %vm5290_vm14 = vcmp.ge.f32.partialorder %v5274_v13, 0.0 }
 0x8c7   :  { %vm5291_vm15 = vcmp.ge.f32.partialorder %v5275_v39, 0.0  ;;  %vm5292_vm0 = vcmp.ge.f32.partialorder %v5276_v16, 0.0  ;;  %vm5293_vm1 = vcmp.ge.f32.partialorder %v5277_v47, 0.0  ;;  %vm5294_vm2 = vcmp.ge.f32.partialorder %v5278_v37, 0.0 }
 0x8c8   :  { %v5295_v62 = vmul.f32 0.2, %v5263_v6  ;;  %v5296_v20 = vmul.f32 0.2, %v5264_v18  ;;  %v5297_v24 = vmul.f32 0.2, %v5265_v50 }
 0x8c9   :  { %v5298_v58 = vmul.f32 0.2, %v5266_v54  ;;  %v5299_v23 = vmul.f32 0.2, %v5267_v53  ;;  %v5300_v7 = vmul.f32 0.2, %v5268_v49 }
 0x8ca   :  { %v5301_v29 = vmul.f32 0.2, %v5269_v61  ;;  %v5302_v52 = vmul.f32 0.2, %v5270_v44  ;;  %v5303_v38 = vmul.f32 0.2, %v5271_v41  ;;  %v5311_v1 = vsel %vm5279_vm3, %v5263_v6, %v5295_v62 }
 0x8cb   :  { %v5304_v63 = vmul.f32 0.2, %v5272_v27  ;;  %v5305_v55 = vmul.f32 0.2, %v5273_v45  ;;  %v5306_v43 = vmul.f32 0.2, %v5274_v13  ;;  %v5312_v34 = vsel %vm5280_vm4, %v5264_v18, %v5296_v20 }
 0x8cc   :  { %v5307_v31 = vmul.f32 0.2, %v5275_v39  ;;  %v5308_v36 = vmul.f32 0.2, %v5276_v16  ;;  %v5309_v51 = vmul.f32 0.2, %v5277_v47  ;;  %v5313_v42 = vsel %vm5281_vm5, %v5265_v50, %v5297_v24 }
 0x8cd   :  { %v5310_v35 = vmul.f32 0.2, %v5278_v37  ;;  %v5314_v14 = vsel %vm5282_vm6, %v5266_v54, %v5298_v58  ;;  %v5315_v3 = vsel %vm5283_vm7, %v5267_v53, %v5299_v23  ;;  %v5316_v2 = vsel %vm5284_vm8, %v5268_v49, %v5300_v7  ;;  %v10127_v6 = vld [vmem:[%s13179_s6 + $0x48] sm:$0xff]   ;;  %v10128_v18 = vld [vmem:[%s13179_s6 + $0x50] sm:$0xff]   ;;  %v10135_v50 = vld [vmem:[%s13182_s7 + $0x38] sm:$0xff]  }
 0x8ce   :  { %v5317_v48 = vsel %vm5285_vm9, %v5269_v61, %v5301_v29  ;;  %v5318_v32 = vsel %vm5286_vm10, %v5270_v44, %v5302_v52  ;;  %v5319_v56 = vsel %vm5287_vm11, %v5271_v41, %v5303_v38  ;;  %v5320_v30 = vsel %vm5288_vm12, %v5272_v27, %v5304_v63  ;;  %v10136_v54 = vld [vmem:[%s13182_s7] sm:$0xff]   ;;  %v10129_v53 = vld [vmem:[%s13179_s6 + $0x58] sm:$0xff]   ;;  %v10131_v61 = vld [vmem:[%s13179_s6 + $0x68] sm:$0xff]  }
 0x8cf   :  { %v5321_v60 = vsel %vm5289_vm13, %v5273_v45, %v5305_v55  ;;  %v5322_v19 = vsel %vm5290_vm14, %v5274_v13, %v5306_v43  ;;  %v5323_v15 = vsel %vm5291_vm15, %v5275_v39, %v5307_v31  ;;  %v5324_v12 = vsel %vm5292_vm0, %v5276_v16, %v5308_v36  ;;  %v10130_v49 = vld [vmem:[%s13179_s6 + $0x60] sm:$0xff]   ;;  %v10137_v58 = vld [vmem:[%s13182_s7 + $0x8] sm:$0xff]   ;;  %v10138_v23 = vld [vmem:[%s13182_s7 + $0x10] sm:$0xff]  }
 0x8d0   :  { %v5325_v59 = vsel %vm5293_vm1, %v5277_v47, %v5309_v51  ;;  %v5326_v11 = vsel %vm5294_vm2, %v5278_v37, %v5310_v35  ;;  %v12817_v17 = vpack.c.bf16 %v5312_v34, %v5311_v1  ;;  %v12819_v57 = vpack.c.bf16 %v5314_v14, %v5313_v42  ;;  %v10139_v7 = vld [vmem:[%s13182_s7 + $0x18] sm:$0xff]   ;;  %v10140_v29 = vld [vmem:[%s13182_s7 + $0x40] sm:$0xff]   ;;  %v10141_v52 = vld [vmem:[%s13182_s7 + $0x48] sm:$0xff]  }
 0x8d1   :  { %v12821_v10 = vpack.c.bf16 %v5316_v2, %v5315_v3  ;;  %v12823_v4 = vpack.c.bf16 %v5318_v32, %v5317_v48  ;;  %v12825_v22 = vpack.c.bf16 %v5320_v30, %v5319_v56  ;;  %v12827_v9 = vpack.c.bf16 %v5322_v19, %v5321_v60  ;;  %v10142_v38 = vld [vmem:[%s13182_s7 + $0x50] sm:$0xff]   ;;  %v10143_v1 = vld [vmem:[%s13182_s7 + $0x58] sm:$0xff]   ;;  %v10146_v35 = vld [vmem:[%s13182_s7 + $0x60] sm:$0xff]  }
 0x8d2   :  { %v12829_v28 = vpack.c.bf16 %v5324_v12, %v5323_v15  ;;  %v12831_v40 = vpack.c.bf16 %v5326_v11, %v5325_v59  ;;  %9183 = vmatprep.subr.bf16.mxu1 %v12817_v17  ;;  %9203 = vmatprep.subr.bf16.mxu0 %v12817_v17  ;;  %vm13231_vm2 = vcmask 523264   ;;  %v10144_v51 = vld [vmem:[%s13179_s6 + $0x30] sm:$0xff]   ;;  %v10145_v14 = vld [vmem:[%s13179_s6 + $0x38] sm:$0xff]   ;;  %v10147_v3 = vld [vmem:[%s13182_s7 + $0x68] sm:$0xff]  }
 0x8d3   :  { %9184 = vmatpush3.bf16.msra.mxu1 %v12817_v17  ;;  %9204 = vmatpush3.bf16.msra.mxu0 %v12817_v17  ;;  %vm13232_vm3 = vmmov %vm13231_vm2  ;;  %v10148_v2 = vld [vmem:[%s13182_s7 + $0x70] sm:$0xff]   ;;  %v10149_v19 = vld [vmem:[%s13182_s7 + $0x78] sm:$0xff]  }
 0x8d4   :  { %9185 = vmatprep.subr.bf16.mxu1 %v12819_v57  ;;  %9205 = vmatprep.subr.bf16.mxu0 %v12819_v57  ;;  %vm13233_vm4 = vmmov %vm13231_vm2  ;;  %v10150_v15 = vld [vmem:[%s13182_s7 + $0x80] sm:$0xff]  }
 0x8d5   :  { %vm13234_vm5 = vmmov %vm13231_vm2 }
 0x8d6   :  { %vm13235_vm6 = vmmov %vm13231_vm2 }
 0x8d7   :  { %9186 = vmatpush3.bf16.msra.mxu1 %v12819_v57  ;;  %9206 = vmatpush3.bf16.msra.mxu0 %v12819_v57  ;;  %vm13236_vm7 = vmmov %vm13231_vm2 }
 0x8d8   :  { %9187 = vmatprep.subr.bf16.mxu1 %v12821_v10  ;;  %9207 = vmatprep.subr.bf16.mxu0 %v12821_v10  ;;  %vm13237_vm8 = vmmov %vm13231_vm2 }
 0x8d9   :  { %vm13238_vm9 = vmmov %vm13231_vm2 }
 0x8da   :  { %vm13239_vm10 = vmmov %vm13231_vm2 }
 0x8db   :  { %9188 = vmatpush3.bf16.msra.mxu1 %v12821_v10  ;;  %9208 = vmatpush3.bf16.msra.mxu0 %v12821_v10  ;;  %vm13240_vm11 = vmmov %vm13231_vm2 }
 0x8dc   :  { %9189 = vmatprep.subr.bf16.mxu1 %v12823_v4  ;;  %9209 = vmatprep.subr.bf16.mxu0 %v12823_v4  ;;  %vm13241_vm12 = vmmov %vm13231_vm2 }
 0x8dd   :  { %vm13242_vm13 = vmmov %vm13231_vm2 }
 0x8de   :  { %vm13243_vm14 = vmmov %vm13231_vm2 }
 0x8df   :  { %9190 = vmatpush3.bf16.msra.mxu1 %v12823_v4  ;;  %9210 = vmatpush3.bf16.msra.mxu0 %v12823_v4  ;;  %vm13244_vm15 = vmmov %vm13231_vm2 }
 0x8e0   :  { %9191 = vmatprep.subr.bf16.mxu1 %v12825_v22  ;;  %9211 = vmatprep.subr.bf16.mxu0 %v12825_v22  ;;  %vm13245_vm0 = vmmov %vm13231_vm2 }
 0x8e1   :  { %vm13246_vm1 = vmmov %vm13245_vm0 }
 0x8e3   :  { %9192 = vmatpush3.bf16.msra.mxu1 %v12825_v22  ;;  %9212 = vmatpush3.bf16.msra.mxu0 %v12825_v22 }
 0x8e4   :  { %9193 = vmatprep.subr.bf16.mxu1 %v12827_v9  ;;  %9213 = vmatprep.subr.bf16.mxu0 %v12827_v9 }
 0x8e7   :  { %9194 = vmatpush3.bf16.msra.mxu1 %v12827_v9  ;;  %9214 = vmatpush3.bf16.msra.mxu0 %v12827_v9 }
 0x8e8   :  { %9195 = vmatprep.subr.bf16.mxu1 %v12829_v28  ;;  %9215 = vmatprep.subr.bf16.mxu0 %v12829_v28 }
 0x8eb   :  { %9196 = vmatpush3.bf16.msra.mxu1 %v12829_v28  ;;  %9216 = vmatpush3.bf16.msra.mxu0 %v12829_v28 }
 0x8ec   :  { %9197 = vmatprep.subr.bf16.mxu1 %v12831_v40  ;;  %9217 = vmatprep.subr.bf16.mxu0 %v12831_v40 }
 0x8ef   :  { %9198 = vmatpush3.bf16.msra.mxu1 %v12831_v40  ;;  %9218 = vmatpush3.bf16.msra.mxu0 %v12831_v40 }
 0x8f0   :  { %9247 = vmatprep.subr.bf16.mxu0 %v12817_v17  ;;  %9223 = vmatprep.subr.bf16.mxu1 %v10132_v0 }
 0x8f2   :  { %9220 = vmatmul.mubr.bf16.vlgmr.msra.gmra.mrb[244].mxu0 %v10121_v25  ;;  %9200 = vmatmul.mubr.bf16.vlgmr.msra.gmra.mrb[92].mxu1 %v10123_v33 }
 0x8f3   :  { %9248 = vmatpush3.bf16.msra.mxu0 %v12817_v17  ;;  %9263 = vmatprep.mubr.bf16.mxu0 %v10124_v5 }
 0x8f4   :  { %9249 = vmatprep.subr.bf16.mxu0 %v12819_v57  ;;  %9224 = vmatpush3.bf16.msra.mxu1 %v10132_v0 }
 0x8f5   :  { %9225 = vmatprep.subr.bf16.mxu1 %v10133_v46 }
 0x8f7   :  { %9250 = vmatpush3.bf16.msra.mxu0 %v12819_v57 }
 0x8f8   :  { %9251 = vmatprep.subr.bf16.mxu0 %v12821_v10  ;;  %9226 = vmatpush3.bf16.msra.mxu1 %v10133_v46 }
 0x8f9   :  { %9227 = vmatprep.subr.bf16.mxu1 %v10134_v21 }
 0x8fb   :  { %9252 = vmatpush3.bf16.msra.mxu0 %v12821_v10 }
 0x8fc   :  { %9253 = vmatprep.subr.bf16.mxu0 %v12823_v4  ;;  %9228 = vmatpush3.bf16.msra.mxu1 %v10134_v21 }
 0x8fd   :  { %9229 = vmatprep.subr.bf16.mxu1 %v10135_v50 }
 0x8ff   :  { %9254 = vmatpush3.bf16.msra.mxu0 %v12823_v4 }
 0x900   :  { %9255 = vmatprep.subr.bf16.mxu0 %v12825_v22  ;;  %9230 = vmatpush3.bf16.msra.mxu1 %v10135_v50  ;;  %v10165_v50 = vld [vmem:[%s13179_s6 + $0x88] sm:$0xff]  }
 0x901   :  { %9235 = vmatprep.subr.bf16.mxu1 %v10136_v54 }
 0x903   :  { %9256 = vmatpush3.bf16.msra.mxu0 %v12825_v22 }
 0x904   :  { %9257 = vmatprep.subr.bf16.mxu0 %v12827_v9 }
 0x907   :  { %9258 = vmatpush3.bf16.msra.mxu0 %v12827_v9 }
 0x908   :  { %9259 = vmatprep.subr.bf16.mxu0 %v12829_v28 }
 0x90b   :  { %9260 = vmatpush3.bf16.msra.mxu0 %v12829_v28 }
 0x90c   :  { %9261 = vmatprep.subr.bf16.mxu0 %v12831_v40 }
 0x90f   :  { %9262 = vmatpush3.bf16.msra.mxu0 %v12831_v40 }
 0x910   :  { %9311 = vmatprep.subr.bf16.mxu0 %v12817_v17 }
 0x912   :  { %9264 = vmatmul.mubr.bf16.vlgmr.msra.gmra.mrb[248].mxu0 %v10125_v8 }
 0x913   :  { %9312 = vmatpush3.bf16.msra.mxu0 %v12817_v17  ;;  %9327 = vmatprep.mubr.bf16.mxu0 %v10126_v26 }
 0x914   :  { %9313 = vmatprep.subr.bf16.mxu0 %v12819_v57 }
 0x917   :  { %9314 = vmatpush3.bf16.msra.mxu0 %v12819_v57 }
 0x918   :  { %9315 = vmatprep.subr.bf16.mxu0 %v12821_v10 }
 0x91b   :  { %9316 = vmatpush3.bf16.msra.mxu0 %v12821_v10 }
 0x91c   :  { %9317 = vmatprep.subr.bf16.mxu0 %v12823_v4 }
 0x91f   :  { %9318 = vmatpush3.bf16.msra.mxu0 %v12823_v4 }
 0x920   :  { %9319 = vmatprep.subr.bf16.mxu0 %v12825_v22 }
 0x923   :  { %9320 = vmatpush3.bf16.msra.mxu0 %v12825_v22 }
 0x924   :  { %9321 = vmatprep.subr.bf16.mxu0 %v12827_v9 }
 0x927   :  { %9322 = vmatpush3.bf16.msra.mxu0 %v12827_v9 }
 0x928   :  { %9323 = vmatprep.subr.bf16.mxu0 %v12829_v28 }
 0x92b   :  { %9324 = vmatpush3.bf16.msra.mxu0 %v12829_v28 }
 0x92c   :  { %9325 = vmatprep.subr.bf16.mxu0 %v12831_v40 }
 0x92f   :  { %9326 = vmatpush3.bf16.msra.mxu0 %v12831_v40 }
 0x930   :  { %9343 = vmatprep.subr.bf16.mxu0 %v12817_v17 }
 0x932   :  { %9328 = vmatmul.mubr.bf16.vlgmr.msra.gmra.mrb[252].mxu0 %v10127_v6 }
 0x933   :  { %9344 = vmatpush3.bf16.msra.mxu0 %v12817_v17  ;;  %9359 = vmatprep.mubr.bf16.mxu0 %v10128_v18  ;;  %v10164_v18 = vld [vmem:[%s13179_s6 + $0x80] sm:$0xff]  }
 0x934   :  { %9345 = vmatprep.subr.bf16.mxu0 %v12819_v57 }
 0x937   :  { %9346 = vmatpush3.bf16.msra.mxu0 %v12819_v57 }
 0x938   :  { %9347 = vmatprep.subr.bf16.mxu0 %v12821_v10 }
 0x93b   :  { %9348 = vmatpush3.bf16.msra.mxu0 %v12821_v10 }
 0x93c   :  { %9349 = vmatprep.subr.bf16.mxu0 %v12823_v4 }
 0x93f   :  { %9350 = vmatpush3.bf16.msra.mxu0 %v12823_v4 }
 0x940   :  { %9351 = vmatprep.subr.bf16.mxu0 %v12825_v22 }
 0x943   :  { %9352 = vmatpush3.bf16.msra.mxu0 %v12825_v22 }
 0x944   :  { %9353 = vmatprep.subr.bf16.mxu0 %v12827_v9 }
 0x947   :  { %9354 = vmatpush3.bf16.msra.mxu0 %v12827_v9 }
 0x948   :  { %9355 = vmatprep.subr.bf16.mxu0 %v12829_v28 }
 0x94b   :  { %9356 = vmatpush3.bf16.msra.mxu0 %v12829_v28 }
 0x94c   :  { %9357 = vmatprep.subr.bf16.mxu0 %v12831_v40 }
 0x94f   :  { %9358 = vmatpush3.bf16.msra.mxu0 %v12831_v40 }
 0x950   :  { %9375 = vmatprep.subr.bf16.mxu0 %v12817_v17 }
 0x952   :  { %9360 = vmatmul.mubr.bf16.vlgmr.msra.gmra.mrb[0].mxu0 %v10129_v53 }
 0x953   :  { %9376 = vmatpush3.bf16.msra.mxu0 %v12817_v17  ;;  %9391 = vmatprep.mubr.bf16.mxu0 %v10130_v49 }
 0x954   :  { %9377 = vmatprep.subr.bf16.mxu0 %v12819_v57 }
 0x957   :  { %9378 = vmatpush3.bf16.msra.mxu0 %v12819_v57 }
 0x958   :  { %9379 = vmatprep.subr.bf16.mxu0 %v12821_v10 }
 0x95b   :  { %9380 = vmatpush3.bf16.msra.mxu0 %v12821_v10 }
 0x95c   :  { %9381 = vmatprep.subr.bf16.mxu0 %v12823_v4 }
 0x95f   :  { %9382 = vmatpush3.bf16.msra.mxu0 %v12823_v4 }
 0x960   :  { %9383 = vmatprep.subr.bf16.mxu0 %v12825_v22 }
 0x963   :  { %9384 = vmatpush3.bf16.msra.mxu0 %v12825_v22 }
 0x964   :  { %9385 = vmatprep.subr.bf16.mxu0 %v12827_v9 }
 0x967   :  { %9386 = vmatpush3.bf16.msra.mxu0 %v12827_v9 }
 0x968   :  { %9387 = vmatprep.subr.bf16.mxu0 %v12829_v28 }
 0x96b   :  { %9388 = vmatpush3.bf16.msra.mxu0 %v12829_v28 }
 0x96c   :  { %9389 = vmatprep.subr.bf16.mxu0 %v12831_v40 }
 0x96f   :  { %9390 = vmatpush3.bf16.msra.mxu0 %v12831_v40 }
 0x970   :  { %9439 = vmatprep.subr.bf16.mxu0 %v12817_v17 }
 0x972   :  { %9392 = vmatmul.mubr.bf16.vlgmr.msra.gmra.mrb[4].mxu0 %v10131_v61 }
 0x973   :  { %9440 = vmatpush3.bf16.msra.mxu0 %v12817_v17  ;;  %9455 = vmatprep.mubr.bf16.mxu0 %v10164_v18 }
 0x974   :  { %9441 = vmatprep.subr.bf16.mxu0 %v12819_v57 }
 0x977   :  { %9442 = vmatpush3.bf16.msra.mxu0 %v12819_v57 }
 0x978   :  { %9443 = vmatprep.subr.bf16.mxu0 %v12821_v10 }
 0x97b   :  { %9444 = vmatpush3.bf16.msra.mxu0 %v12821_v10 }
 0x97c   :  { %9445 = vmatprep.subr.bf16.mxu0 %v12823_v4 }
 0x97f   :  { %9446 = vmatpush3.bf16.msra.mxu0 %v12823_v4 }
 0x980   :  { %9447 = vmatprep.subr.bf16.mxu0 %v12825_v22 }
 0x983   :  { %9448 = vmatpush3.bf16.msra.mxu0 %v12825_v22 }
 0x984   :  { %9449 = vmatprep.subr.bf16.mxu0 %v12827_v9 }
 0x987   :  { %9450 = vmatpush3.bf16.msra.mxu0 %v12827_v9 }
 0x988   :  { %9451 = vmatprep.subr.bf16.mxu0 %v12829_v28 }
 0x98b   :  { %9452 = vmatpush3.bf16.msra.mxu0 %v12829_v28 }
 0x98c   :  { %9453 = vmatprep.subr.bf16.mxu0 %v12831_v40 }
 0x98f   :  { %9454 = vmatpush3.bf16.msra.mxu0 %v12831_v40 }
 0x992   :  { %9456 = vmatmul.mubr.bf16.vlgmr.msra.gmra.mrb[8].mxu0 %v10165_v50 }
 0x9c5   :  { %v9221_v44 = vpop.f32.mrb[244].mxu0  ;;  %v9201_v41 = vpop.f32.mrb[92].mxu1 }
 0x9c6   :  { %v5461_v27 = vpop.f32.mrb[245].mxu0  ;;  %v5385_v45 = vpop.f32.mrb[93].mxu1 }
 0x9c7   :  { %v9222_v13 = vpop.f32.mrb[246].mxu0  ;;  %v9202_v39 = vpop.f32.mrb[94].mxu1 }
 0x9c8   :  { %v5477_v16 = vpack.c.bf16 %v9222_v13, %v9221_v44  ;;  %v5464_v47 = vpop.f32.mrb[247].mxu0  ;;  %v5401_v37 = vpack.c.bf16 %v9202_v39, %v9201_v41  ;;  %v5388_v62 = vpop.f32.mrb[95].mxu1  ;;  %v10153_v13 = vld [vmem:[%s13182_s7 + $0x98] sm:$0xff]   ;;  %v10154_v39 = vld [vmem:[%s13182_s7 + $0xa0] sm:$0xff]  }
 0x9c9   :  { %v5476_v20 = vpack.c.bf16 %v5464_v47, %v5461_v27  ;;  %v5400_v24 = vpack.c.bf16 %v5388_v62, %v5385_v45  ;;  %v10151_v27 = vld [vmem:[%s13182_s7 + $0x88] sm:$0xff]   ;;  %v10152_v45 = vld [vmem:[%s13182_s7 + $0x90] sm:$0xff]   ;;  %v10158_v62 = vld [vmem:[%s13182_s7 + $0xc0] sm:$0xff]  }
 0x9ca   :  { %v10156_v47 = vld [vmem:[%s13182_s7 + $0xb0] sm:$0xff]  }
 0x9cb   :  { %9231 = vmatprep.mubr.msk.bf16.mxu1 %vm13231_vm2, %v5476_v20  ;;  %v10159_v20 = vld [vmem:[%s13182_s7 + $0xc8] sm:$0xff]   ;;  %vm13247_vm2 = vmmov %vm13245_vm0 }
 0x9cc   :  { %9232 = vmatmul.mubr.msk.bf16.vlgmr.msra.gmra.mrb[96].mxu1 %vm13232_vm3, %v5477_v16  ;;  %v10155_v16 = vld [vmem:[%s13182_s7 + $0xa8] sm:$0xff]   ;;  %vm13248_vm3 = vmmov %vm13245_vm0 }
 0x9cd   :  { %9236 = vmatpush3.bf16.msra.mxu1 %v10136_v54  ;;  %9243 = vmatprep.mubr.msk.bf16.mxu1 %vm13233_vm4, %v5400_v24  ;;  %v10160_v24 = vld [vmem:[%s13182_s7 + $0xd0] sm:$0xff]   ;;  %vm6806_vm4 = vcmask 7168  }
 0x9ce   :  { %9237 = vmatprep.subr.bf16.mxu1 %v10137_v58 }
 0x9d1   :  { %9238 = vmatpush3.bf16.msra.mxu1 %v10137_v58  ;;  %v10161_v58 = vld [vmem:[%s13182_s7 + $0xd8] sm:$0xff]  }
 0x9d2   :  { %9239 = vmatprep.subr.bf16.mxu1 %v10138_v23 }
 0x9d5   :  { %9240 = vmatpush3.bf16.msra.mxu1 %v10138_v23  ;;  %v10162_v23 = vld [vmem:[%s13179_s6 + $0x70] sm:$0xff]  }
 0x9d6   :  { %9241 = vmatprep.subr.bf16.mxu1 %v10139_v7 }
 0x9d9   :  { %9242 = vmatpush3.bf16.msra.mxu1 %v10139_v7 }
 0x9da   :  { %9267 = vmatprep.subr.bf16.mxu1 %v10140_v29 }
 0x9dc   :  { %9244 = vmatmul.mubr.msk.bf16.vlgmr.msra.gmra.mrb[96].mxu1 %vm13234_vm5, %v5401_v37  ;;  %v10157_v37 = vld [vmem:[%s13182_s7 + $0xb8] sm:$0xff]  }
 0x9dd   :  { %9268 = vmatpush3.bf16.msra.mxu1 %v10140_v29 }
 0x9de   :  { %9269 = vmatprep.subr.bf16.mxu1 %v10141_v52 }
 0x9e1   :  { %9270 = vmatpush3.bf16.msra.mxu1 %v10141_v52 }
 0x9e2   :  { %9271 = vmatprep.subr.bf16.mxu1 %v10142_v38 }
 0x9e5   :  { %9272 = vmatpush3.bf16.msra.mxu1 %v10142_v38  ;;  %v9265_v63 = vpop.f32.mrb[248].mxu0 }
 0x9e6   :  { %v5696_v55 = vpop.f32.mrb[249].mxu0  ;;  %9273 = vmatprep.subr.bf16.mxu1 %v10143_v1 }
 0x9e7   :  { %v9266_v43 = vpop.f32.mrb[250].mxu0 }
 0x9e8   :  { %v5712_v34 = vpack.c.bf16 %v9266_v43, %v9265_v63  ;;  %v5699_v31 = vpop.f32.mrb[251].mxu0 }
 0x9e9   :  { %v5711_v36 = vpack.c.bf16 %v5699_v31, %v5696_v55  ;;  %9274 = vmatpush3.bf16.msra.mxu1 %v10143_v1 }
 0x9ea   :  { %9279 = vmatprep.subr.bf16.mxu1 %v12817_v17 }
 0x9eb   :  { %9275 = vmatprep.mubr.msk.bf16.mxu1 %vm13235_vm6, %v5711_v36  ;;  %v10171_v36 = vld [vmem:[%s13182_s7 + $0x108] sm:$0xff]  }
 0x9ec   :  { %9276 = vmatmul.mubr.msk.bf16.vlgmr.msra.gmra.mrb[96].mxu1 %vm13236_vm7, %v5712_v34 }
 0x9ed   :  { %9280 = vmatpush3.bf16.msra.mxu1 %v12817_v17  ;;  %9295 = vmatprep.mubr.bf16.mxu1 %v10144_v51  ;;  %v10172_v51 = vld [vmem:[%s13182_s7 + $0x110] sm:$0xff]  }
 0x9ee   :  { %9281 = vmatprep.subr.bf16.mxu1 %v12819_v57 }
 0x9f1   :  { %9282 = vmatpush3.bf16.msra.mxu1 %v12819_v57 }
 0x9f2   :  { %9283 = vmatprep.subr.bf16.mxu1 %v12821_v10 }
 0x9f5   :  { %9284 = vmatpush3.bf16.msra.mxu1 %v12821_v10 }
 0x9f6   :  { %9285 = vmatprep.subr.bf16.mxu1 %v12823_v4 }
 0x9f9   :  { %9286 = vmatpush3.bf16.msra.mxu1 %v12823_v4 }
 0x9fa   :  { %9287 = vmatprep.subr.bf16.mxu1 %v12825_v22 }
 0x9fd   :  { %9288 = vmatpush3.bf16.msra.mxu1 %v12825_v22 }
 0x9fe   :  { %9289 = vmatprep.subr.bf16.mxu1 %v12827_v9 }
 0xa01   :  { %9290 = vmatpush3.bf16.msra.mxu1 %v12827_v9 }
 0xa02   :  { %9291 = vmatprep.subr.bf16.mxu1 %v12829_v28 }
 0xa05   :  { %9292 = vmatpush3.bf16.msra.mxu1 %v12829_v28  ;;  %v13034_v42 = vpop.f32.mrb[252].mxu0 }
 0xa06   :  { %9293 = vmatprep.subr.bf16.mxu1 %v12831_v40  ;;  %v6016_v48 = vpop.f32.mrb[253].mxu0 }
 0xa07   :  { %v9330_v32 = vpop.f32.mrb[254].mxu0 }
 0xa08   :  { %v6019_v56 = vpop.f32.mrb[255].mxu0  ;;  %v6032_v30 = vpack.c.bf16 %v9330_v32, %v13034_v42  ;;  %v10173_v42 = vld [vmem:[%s13182_s7 + $0x118] sm:$0xff]  }
 0xa09   :  { %9294 = vmatpush3.bf16.msra.mxu1 %v12831_v40  ;;  %v6031_v60 = vpack.c.bf16 %v6019_v56, %v6016_v48 }
 0xa0a   :  { %9299 = vmatprep.subr.bf16.mxu1 %v10146_v35 }
 0xa0c   :  { %9296 = vmatmul.mubr.bf16.vlgmr.msra.gmra.mrb[100].mxu1 %v10145_v14  ;;  %v7641_v14 = vld [vmem:[%s13184_s8] ss:$0 sm:$0xff] }
 0xa0d   :  { %9300 = vmatpush3.bf16.msra.mxu1 %v10146_v35  ;;  %v16_v35 = vstv %s13183_s10 }
 0xa0e   :  { %9301 = vmatprep.subr.bf16.mxu1 %v10147_v3  ;;  %17 = vst [vmem:[#allocation2] sm:$0x1] %v16_v35 }
 0xa11   :  { %9302 = vmatpush3.bf16.msra.mxu1 %v10147_v3 }
 0xa12   :  { %9303 = vmatprep.subr.bf16.mxu1 %v10148_v2 }
 0xa15   :  { %9304 = vmatpush3.bf16.msra.mxu1 %v10148_v2  ;;  %v7642_v2 = vld [vmem:[%s13185_s9] ss:$0 sm:$0xff] }
 0xa16   :  { %9305 = vmatprep.subr.bf16.mxu1 %v10149_v19 }
 0xa19   :  { %9306 = vmatpush3.bf16.msra.mxu1 %v10149_v19 }
 0xa1a   :  { %9331 = vmatprep.subr.bf16.mxu1 %v10150_v15 }
 0xa25   :  { %v9361_v12 = vpop.f32.mrb[0].mxu0 }
 0xa26   :  { %v6176_v59 = vpop.f32.mrb[1].mxu0 }
 0xa27   :  { %v9362_v11 = vpop.f32.mrb[2].mxu0 }
 0xa28   :  { %v6179_v25 = vpop.f32.mrb[3].mxu0  ;;  %v6192_v33 = vpack.c.bf16 %v9362_v11, %v9361_v12 }
 0xa29   :  { %v6191_v5 = vpack.c.bf16 %v6179_v25, %v6176_v59 }
 0xa45   :  { %v9393_v8 = vpop.f32.mrb[4].mxu0 }
 0xa46   :  { %v6336_v26 = vpop.f32.mrb[5].mxu0 }
 0xa47   :  { %v9394_v0 = vpop.f32.mrb[6].mxu0 }
 0xa48   :  { %v6352_v46 = vpack.c.bf16 %v9394_v0, %v9393_v8  ;;  %v6339_v21 = vpop.f32.mrb[7].mxu0 }
 0xa49   :  { %v6351_v6 = vpack.c.bf16 %v6339_v21, %v6336_v26 }
 0xadf   :  { %v9297_v54 = vpop.f32.mrb[100].mxu1 }
 0xae0   :  { %v5856_v53 = vpop.f32.mrb[101].mxu1 }
 0xae1   :  { %v9298_v49 = vpop.f32.mrb[102].mxu1 }
 0xae2   :  { %v5872_v61 = vpack.c.bf16 %v9298_v49, %v9297_v54  ;;  %v5859_v44 = vpop.f32.mrb[103].mxu1 }
 0xae3   :  { %v5871_v41 = vpack.c.bf16 %v5859_v44, %v5856_v53 }
 0xae5   :  { %9307 = vmatprep.mubr.msk.bf16.mxu1 %vm13237_vm8, %v5871_v41 }
 0xae6   :  { %9308 = vmatmul.mubr.msk.bf16.vlgmr.msra.gmra.mrb[96].mxu1 %vm13238_vm9, %v5872_v61 }
 0xae7   :  { %9332 = vmatpush3.bf16.msra.mxu1 %v10150_v15  ;;  %9339 = vmatprep.mubr.msk.bf16.mxu1 %vm13239_vm10, %v6031_v60 }
 0xae8   :  { %9333 = vmatprep.subr.bf16.mxu1 %v10151_v27 }
 0xaeb   :  { %9334 = vmatpush3.bf16.msra.mxu1 %v10151_v27 }
 0xaec   :  { %9335 = vmatprep.subr.bf16.mxu1 %v10152_v45 }
 0xaef   :  { %9336 = vmatpush3.bf16.msra.mxu1 %v10152_v45 }
 0xaf0   :  { %9337 = vmatprep.subr.bf16.mxu1 %v10153_v13 }
 0xaf3   :  { %9338 = vmatpush3.bf16.msra.mxu1 %v10153_v13 }
 0xaf4   :  { %9363 = vmatprep.subr.bf16.mxu1 %v10154_v39 }
 0xaf6   :  { %9340 = vmatmul.mubr.msk.bf16.vlgmr.msra.gmra.mrb[96].mxu1 %vm13240_vm11, %v6032_v30 }
 0xaf7   :  { %9364 = vmatpush3.bf16.msra.mxu1 %v10154_v39  ;;  %9371 = vmatprep.mubr.msk.bf16.mxu1 %vm13241_vm12, %v6191_v5 }
 0xaf8   :  { %9365 = vmatprep.subr.bf16.mxu1 %v10155_v16 }
 0xafb   :  { %9366 = vmatpush3.bf16.msra.mxu1 %v10155_v16 }
 0xafc   :  { %9367 = vmatprep.subr.bf16.mxu1 %v10156_v47 }
 0xaff   :  { %9368 = vmatpush3.bf16.msra.mxu1 %v10156_v47 }
 0xb00   :  { %9369 = vmatprep.subr.bf16.mxu1 %v10157_v37 }
 0xb03   :  { %9370 = vmatpush3.bf16.msra.mxu1 %v10157_v37 }
 0xb04   :  { %9395 = vmatprep.subr.bf16.mxu1 %v10158_v62 }
 0xb06   :  { %9372 = vmatmul.mubr.msk.bf16.vlgmr.msra.gmra.mrb[96].mxu1 %vm13242_vm13, %v6192_v33  ;;  %v7643_v33 = vld [vmem:[#allocation2] ss:$0 sm:$0xff] }
 0xb07   :  { %9396 = vmatpush3.bf16.msra.mxu1 %v10158_v62  ;;  %9403 = vmatprep.mubr.msk.bf16.mxu1 %vm13243_vm14, %v6351_v6 }
 0xb08   :  { %9397 = vmatprep.subr.bf16.mxu1 %v10159_v20 }
 0xb0b   :  { %9398 = vmatpush3.bf16.msra.mxu1 %v10159_v20 }
 0xb0c   :  { %9399 = vmatprep.subr.bf16.mxu1 %v10160_v24 }
 0xb0f   :  { %9400 = vmatpush3.bf16.msra.mxu1 %v10160_v24 }
 0xb10   :  { %9401 = vmatprep.subr.bf16.mxu1 %v10161_v58 }
 0xb13   :  { %9402 = vmatpush3.bf16.msra.mxu1 %v10161_v58 }
 0xb14   :  { %9407 = vmatprep.subr.bf16.mxu1 %v12817_v17 }
 0xb16   :  { %9404 = vmatmul.mubr.msk.bf16.vlgmr.msra.gmra.mrb[96].mxu1 %vm13244_vm15, %v6352_v46 }
 0xb17   :  { %9408 = vmatpush3.bf16.msra.mxu1 %v12817_v17  ;;  %9423 = vmatprep.mubr.bf16.mxu1 %v10162_v23  ;;  %v10166_v17 = vld [vmem:[%s13182_s7 + $0xe0] sm:$0xff]  }
 0xb18   :  { %9409 = vmatprep.subr.bf16.mxu1 %v12819_v57 }
 0xb1b   :  { %9410 = vmatpush3.bf16.msra.mxu1 %v12819_v57  ;;  %v10163_v57 = vld [vmem:[%s13179_s6 + $0x78] sm:$0xff]  }
 0xb1c   :  { %9411 = vmatprep.subr.bf16.mxu1 %v12821_v10 }
 0xb1f   :  { %9412 = vmatpush3.bf16.msra.mxu1 %v12821_v10  ;;  %v10167_v10 = vld [vmem:[%s13182_s7 + $0xe8] sm:$0xff]  }
 0xb20   :  { %9413 = vmatprep.subr.bf16.mxu1 %v12823_v4 }
 0xb23   :  { %9414 = vmatpush3.bf16.msra.mxu1 %v12823_v4  ;;  %v10168_v4 = vld [vmem:[%s13182_s7 + $0xf0] sm:$0xff]  }
 0xb24   :  { %9415 = vmatprep.subr.bf16.mxu1 %v12825_v22 }
 0xb27   :  { %9416 = vmatpush3.bf16.msra.mxu1 %v12825_v22  ;;  %v10169_v22 = vld [vmem:[%s13182_s7 + $0xf8] sm:$0xff]  }
 0xb28   :  { %9417 = vmatprep.subr.bf16.mxu1 %v12827_v9 }
 0xb2b   :  { %9418 = vmatpush3.bf16.msra.mxu1 %v12827_v9  ;;  %v10170_v9 = vld [vmem:[%s13182_s7 + $0x100] sm:$0xff]  }
 0xb2c   :  { %9419 = vmatprep.subr.bf16.mxu1 %v12829_v28 }
 0xb2f   :  { %9420 = vmatpush3.bf16.msra.mxu1 %v12829_v28  ;;  %v9457_v28 = vpop.f32.mrb[8].mxu0 }
 0xb30   :  { %9421 = vmatprep.subr.bf16.mxu1 %v12831_v40 }
 0xb33   :  { %9422 = vmatpush3.bf16.msra.mxu1 %v12831_v40  ;;  %v6656_v40 = vpop.f32.mrb[9].mxu0 }
 0xb34   :  { %9427 = vmatprep.subr.bf16.mxu1 %v10166_v17  ;;  %v9458_v7 = vpop.f32.mrb[10].mxu0 }
 0xb35   :  { %v6672_v29 = vpack.c.bf16 %v9458_v7, %v9457_v28  ;;  %v6659_v52 = vpop.f32.mrb[11].mxu0 }
 0xb36   :  { %9424 = vmatmul.mubr.bf16.vlgmr.msra.gmra.mrb[104].mxu1 %v10163_v57  ;;  %v6671_v38 = vpack.c.bf16 %v6659_v52, %v6656_v40 }
 0xb37   :  { %9428 = vmatpush3.bf16.msra.mxu1 %v10166_v17 }
 0xb38   :  { %9429 = vmatprep.subr.bf16.mxu1 %v10167_v10 }
 0xb3b   :  { %9430 = vmatpush3.bf16.msra.mxu1 %v10167_v10 }
 0xb3c   :  { %9431 = vmatprep.subr.bf16.mxu1 %v10168_v4 }
 0xb3f   :  { %9432 = vmatpush3.bf16.msra.mxu1 %v10168_v4 }
 0xb40   :  { %9433 = vmatprep.subr.bf16.mxu1 %v10169_v22 }
 0xb43   :  { %9434 = vmatpush3.bf16.msra.mxu1 %v10169_v22 }
 0xb44   :  { %9459 = vmatprep.subr.bf16.mxu1 %v10170_v9 }
 0xc09   :  { %v9425_v1 = vpop.f32.mrb[104].mxu1 }
 0xc0a   :  { %v6496_v63 = vpop.f32.mrb[105].mxu1 }
 0xc0b   :  { %v9426_v55 = vpop.f32.mrb[106].mxu1 }
 0xc0c   :  { %v6512_v43 = vpack.c.bf16 %v9426_v55, %v9425_v1  ;;  %v6499_v34 = vpop.f32.mrb[107].mxu1 }
 0xc0d   :  { %v6511_v31 = vpack.c.bf16 %v6499_v34, %v6496_v63 }
 0xc0f   :  { %9435 = vmatprep.mubr.msk.bf16.mxu1 %vm13245_vm0, %v6511_v31 }
 0xc10   :  { %9436 = vmatmul.mubr.msk.bf16.vlgmr.msra.gmra.mrb[96].mxu1 %vm13246_vm1, %v6512_v43 }
 0xc11   :  { %9460 = vmatpush3.bf16.msra.mxu1 %v10170_v9  ;;  %9467 = vmatprep.mubr.msk.bf16.mxu1 %vm13247_vm2, %v6671_v38 }
 0xc12   :  { %9461 = vmatprep.subr.bf16.mxu1 %v10171_v36 }
 0xc15   :  { %9462 = vmatpush3.bf16.msra.mxu1 %v10171_v36 }
 0xc16   :  { %9463 = vmatprep.subr.bf16.mxu1 %v10172_v51 }
 0xc19   :  { %9464 = vmatpush3.bf16.msra.mxu1 %v10172_v51 }
 0xc1a   :  { %9465 = vmatprep.subr.bf16.mxu1 %v10173_v42 }
 0xc1d   :  { %9466 = vmatpush3.bf16.msra.mxu1 %v10173_v42 }
 0xc20   :  { %9468 = vmatmul.mubr.msk.bf16.vlgmr.msra.gmra.mrb[96].mxu1 %vm13248_vm3, %v6672_v29 }
 0xcf3   :  { %v9469_v3 = vpop.f32.mrb[96].mxu1 }
 0xcf4   :  { %v6774_v48 = vadd.f32 %v9469_v3, %v7641_v14  ;;  %v6746_v32 = vpop.f32.mrb[97].mxu1 }
 0xcf5   :  { %v6772_v56 = vadd.f32 %v7641_v14, %v6746_v32  ;;  %v9470_v30 = vpop.f32.mrb[98].mxu1 }
 0xcf6   :  { %v6775_v60 = vadd.f32 %v9470_v30, %v7641_v14  ;;  %v6749_v19 = vpop.f32.mrb[99].mxu1  ;;  %v6785_v15 = vmul.f32 %v7642_v2, %v6774_v48 }
 0xcf7   :  { %v6773_v12 = vadd.f32 %v7641_v14, %v6749_v19  ;;  %v6783_v59 = vmul.f32 %v7642_v2, %v6772_v56 }
 0xcf8   :  { %6791 = vadd.xlane.f32.xlu1 %v6785_v15  ;;  %v6786_v11 = vmul.f32 %v7642_v2, %v6775_v60 }
 0xcf9   :  { %6787 = vadd.xlane.f32.xlu0 %v6783_v59  ;;  %v6784_v25 = vmul.f32 %v7642_v2, %v6773_v12 }
 0xcfc   :  { %6793 = vadd.xlane.f32.xlu1 %v6786_v11 }
 0xcfd   :  { %6789 = vadd.xlane.f32.xlu0 %v6784_v25 }
 0xd85   :  { %v6792_v5 = vpop.xlane.xlu1 %6791 }
 0xd86   :  { %v6804_v8 = vadd.f32 %v7643_v33, %v6792_v5  ;;  %v6788_v26 = vpop.xlane.xlu0 %6787 }
 0xd87   :  { %v6802_v0 = vadd.f32 %v7643_v33, %v6788_v26 }
 0xd88   :  { %6809 = vst.msk [vmem:[%s13186_s11 + $0x10] sm:$0xff] %vm6806_vm4, %v6804_v8 }
 0xd89   :  { %6807 = vst.msk [vmem:[%s13186_s11] sm:$0xff] %vm6806_vm4, %v6802_v0  ;;  %v6794_v46 = vpop.xlane.xlu1 %6793 }
 0xd8a   :  { %v6805_v21 = vadd.f32 %v7643_v33, %v6794_v46  ;;  %v6790_v6 = vpop.xlane.xlu0 %6789 }
 0xd8b   :  { %v6803_v18 = vadd.f32 %v7643_v33, %v6790_v6 }
 0xd8c   :  { %6810 = vst.msk [vmem:[%s13186_s11 + $0x18] sm:$0xff] %vm6806_vm4, %v6805_v21 }
 0xd8d   :  { %6808 = vst.msk [vmem:[%s13186_s11 + $0x8] sm:$0xff] %vm6806_vm4, %v6803_v18 }

</bundles_post_ra>
